<compile_context>
chip_gen: v7x
topology: tpu7x:2x2x1
jax: 0.10.0
libtpu: 0.0.40
codegen_flags: <defaults>
</compile_context>

<pallas_src>
import jax
import jax.numpy as jnp
from jax import lax
from jax.experimental import pallas as pl
from jax.experimental.pallas import tpu as pltpu

CH_PAD = 128   # padded output-channel width (lane dim) for conv1 / conv2
K1_PAD = 128   # conv1 contraction dim: 3*5*5 = 75  -> 128
K2_PAD = 256   # conv2 contraction dim: 6*5*5 = 150 -> 256
FC_PAD = 128   # padded hidden width for fc1 / fc2 outputs

# Whole-array-in-VMEM BlockSpec (shapes here are tiny, so no grid tiling).
VMEM = pl.BlockSpec(memory_space=pltpu.MemorySpace.VMEM)


# ----------------------------- Pallas kernels ------------------------------


def _conv_pool_kernel(p00_ref, p01_ref, p10_ref, p11_ref, w_ref, b_ref, o_ref):
    """Fused conv(matmul) + 2x2 max-pool + bias + ReLU.

    p??: (M, Kp) im2col patches, one per pool-window offset (dy, dx).
    w:   (Kp, 128) zero-padded weight.   b: (1, 128).   o: (M, 128).
    max(relu(z + b)) over the 4 offsets == relu(max(z) + b), so we pool on the
    pre-bias matmul results (fewer VPU ops, one bias/ReLU).
    """
    w = w_ref[...]
    z = jnp.dot(p00_ref[...], w, preferred_element_type=jnp.float32)
    z = jnp.maximum(z, jnp.dot(p01_ref[...], w, preferred_element_type=jnp.float32))
    z = jnp.maximum(z, jnp.dot(p10_ref[...], w, preferred_element_type=jnp.float32))
    z = jnp.maximum(z, jnp.dot(p11_ref[...], w, preferred_element_type=jnp.float32))
    o_ref[...] = jnp.maximum(z + b_ref[...], 0.0)


def _fc_stack_kernel(x_ref, w1_ref, b1_ref, w2_ref, b2_ref, w3_ref, b3_ref, o_ref):
    """fc1 + ReLU -> fc2 + ReLU -> fc3, fully VMEM-resident in one kernel."""
    h = jnp.dot(x_ref[...], w1_ref[...], preferred_element_type=jnp.float32)
    h = jnp.maximum(h + b1_ref[...], 0.0)
    h = jnp.dot(h, w2_ref[...], preferred_element_type=jnp.float32)
    h = jnp.maximum(h + b2_ref[...], 0.0)
    o_ref[...] = (
        jnp.dot(h, w3_ref[...], preferred_element_type=jnp.float32) + b3_ref[...]
    )


# ------------------------------ op wrappers --------------------------------


def _pooled_conv_patches(x, kh, kw, k_pad):
    """NHWC im2col, split by 2x2 pool-window offset.

    x: (N, H, W, C).  Returns ([p00, p01, p10, p11], (N, Hp, Wp)) where each
    p_dydx is (N*Hp*Wp, k_pad); row (n, i, j) holds the patch of the conv
    output position (2i+dy, 2j+dx), K ordered (kh, kw, c), zero-padded.
    """
    N, H, W, C = x.shape
    Ho, Wo = H - kh + 1, W - kw + 1
    Hp, Wp = Ho // 2, Wo // 2
    K = kh * kw * C
    cols = [x[:, i : i + Ho, j : j + Wo, :] for i in range(kh) for j in range(kw)]
    p = jnp.stack(cols, axis=3)  # (N, Ho, Wo, kh*kw, C)
    mats = []
    for dy in range(2):
        for dx in range(2):
            q = p[:, dy::2, dx::2]  # (N, Hp, Wp, kh*kw, C)
            q = q.reshape(N * Hp * Wp, K)
            mats.append(jnp.pad(q, ((0, 0), (0, k_pad - K))))
    return mats, (N, Hp, Wp)


def conv_pool_relu(x_nhwc, w_mat, b_row, k_pad):
    """Valid 5x5 conv + bias + ReLU + 2x2 max-pool. Output (N*Hp*Wp, 128)."""
    mats, (n, hp, wp) = _pooled_conv_patches(x_nhwc, 5, 5, k_pad)
    m = n * hp * wp
    out = pl.pallas_call(
        _conv_pool_kernel,
        out_shape=jax.ShapeDtypeStruct((m, CH_PAD), jnp.float32),
        in_specs=[VMEM] * 6,
        out_specs=VMEM,
    )(*mats, w_mat, b_row)
    return out, (n, hp, wp)


def fc_stack(x_flat, p):
    n = x_flat.shape[0]
    return pl.pallas_call(
        _fc_stack_kernel,
        out_shape=jax.ShapeDtypeStruct((n, 10), jnp.float32),
        in_specs=[VMEM] * 7,
        out_specs=VMEM,
    )(x_flat, p["fc1_w"], p["fc1_b"], p["fc2_w"], p["fc2_b"], p["fc3_w"], p["fc3_b"])


# --------------------------- parameter preparation -------------------------


def init_params(key):
    """Deterministic PyTorch-default-style init (uniform +-1/sqrt(fan_in))."""

    def uniform(k, shape, fan_in):
        bound = 1.0 / float(fan_in) ** 0.5
        return jax.random.uniform(k, shape, jnp.float32, -bound, bound)

    ks = jax.random.split(key, 10)
    return {
        "conv1_w": uniform(ks[0], (6, 3, 5, 5), 3 * 25),
        "conv1_b": uniform(ks[1], (6,), 3 * 25),
        "conv2_w": uniform(ks[2], (16, 6, 5, 5), 6 * 25),
        "conv2_b": uniform(ks[3], (16,), 6 * 25),
        "fc1_w": uniform(ks[4], (120, 16 * 5 * 5), 16 * 5 * 5),
        "fc1_b": uniform(ks[5], (120,), 16 * 5 * 5),
        "fc2_w": uniform(ks[6], (84, 120), 120),
        "fc2_b": uniform(ks[7], (84,), 120),
        "fc3_w": uniform(ks[8], (10, 84), 84),
        "fc3_b": uniform(ks[9], (10,), 84),
    }


def prepare_params(params):
    """One-time padding / permutation of weights into kernel-friendly layouts."""

    def conv_mat(w, b, k_pad):
        cout, cin, kh, kw = w.shape
        # OIHW -> (kh, kw, cin, cout) matches the (kh, kw, c) im2col K order.
        wm = w.transpose(2, 3, 1, 0).reshape(kh * kw * cin, cout)
        wm = jnp.pad(wm, ((0, k_pad - kh * kw * cin), (0, CH_PAD - cout)))
        bm = jnp.pad(b, (0, CH_PAD - cout)).reshape(1, CH_PAD)
        return wm, bm

    c1w, c1b = conv_mat(params["conv1_w"], params["conv1_b"], K1_PAD)
    c2w, c2b = conv_mat(params["conv2_w"], params["conv2_b"], K2_PAD)

    # fc1: torch flattens (N,16,5,5) in (c,h,w) order; our runtime flatten is
    # the channel-padded NHWC (N,5,5,128) in (h,w,c_pad) order.  Absorb both
    # the permutation and the channel padding into the weight (zero rows for
    # padded channels), so the forward needs no crop / transpose before fc1.
    fc1 = params["fc1_w"].reshape(120, 16, 5, 5).transpose(2, 3, 1, 0)  # (5,5,16,120)
    w1f = jnp.zeros((5, 5, CH_PAD, FC_PAD), jnp.float32)
    w1f = w1f.at[:, :, :16, :120].set(fc1).reshape(5 * 5 * CH_PAD, FC_PAD)
    b1f = jnp.pad(params["fc1_b"], (0, FC_PAD - 120)).reshape(1, FC_PAD)

    w2f = jnp.zeros((FC_PAD, FC_PAD), jnp.float32).at[:120, :84].set(params["fc2_w"].T)
    b2f = jnp.pad(params["fc2_b"], (0, FC_PAD - 84)).reshape(1, FC_PAD)

    w3f = jnp.zeros((FC_PAD, 10), jnp.float32).at[:84, :].set(params["fc3_w"].T)
    b3f = params["fc3_b"].reshape(1, 10)

    return {
        "conv1_w": c1w, "conv1_b": c1b,
        "conv2_w": c2w, "conv2_b": c2b,
        "fc1_w": w1f, "fc1_b": b1f,
        "fc2_w": w2f, "fc2_b": b2f,
        "fc3_w": w3f, "fc3_b": b3f,
    }


# ------------------------------ Net forward --------------------------------


def net_forward(p, x):
    # x: (N, 3, 32, 32) float32, NCHW like PyTorch.
    n = x.shape[0]
    x = jnp.transpose(x, (0, 2, 3, 1))                          # NCHW -> NHWC, once
    y1, (_, h1, w1) = conv_pool_relu(x, p["conv1_w"], p["conv1_b"], K1_PAD)
    y1 = y1.reshape(n, h1, w1, CH_PAD)[..., :6]                 # drop padded channels
    y2, (_, h2, w2) = conv_pool_relu(y1, p["conv2_w"], p["conv2_b"], K2_PAD)
    x_flat = y2.reshape(n, h2 * w2 * CH_PAD)                    # channel-padded flatten
    return fc_stack(x_flat, p)                                  # (N, 10)


def net_reference(params, x):
    """Pure-JAX reference for correctness checking (original PyTorch layout)."""

    def conv(x, w, b):
        y = lax.conv_general_dilated(
            x, w, (1, 1), "VALID",
            dimension_numbers=("NCHW", "OIHW", "NCHW"),
            precision=lax.Precision.HIGHEST,
        )
        return jax.nn.relu(y + b[None, :, None, None])

    def pool(x):
        return lax.reduce_window(
            x, -jnp.inf, lax.max, (1, 1, 2, 2), (1, 1, 2, 2), "VALID"
        )

    x = pool(conv(x, params["conv1_w"], params["conv1_b"]))
    x = pool(conv(x, params["conv2_w"], params["conv2_b"]))
    x = x.reshape(x.shape[0], -1)
    x = jax.nn.relu(
        jnp.dot(x, params["fc1_w"].T, precision=lax.Precision.HIGHEST)
        + params["fc1_b"]
    )
    x = jax.nn.relu(
        jnp.dot(x, params["fc2_w"].T, precision=lax.Precision.HIGHEST)
        + params["fc2_b"]
    )
    return (
        jnp.dot(x, params["fc3_w"].T, precision=lax.Precision.HIGHEST)
        + params["fc3_b"]
    )


if __name__ == "__main__":
    key = jax.random.PRNGKey(0)
    kp, kx = jax.random.split(key)
    params = init_params(kp)
    prepared = prepare_params(params)
    # Input implied by fc1 = Linear(16*5*5, ...): 3x32x32 images. Batch = 2.
    x = jax.random.normal(kx, (2, 3, 32, 32), dtype=jnp.float32)

    out = jax.block_until_ready(jax.jit(net_forward)(prepared, x))
    ref = jax.block_until_ready(net_reference(params, x))

    assert out.shape == (2, 10) and out.dtype == jnp.float32
    assert jnp.allclose(out, ref, rtol=1e-2, atol=1e-2), (out, ref)

    print("KERNEL_OK")
</pallas_src>

<mosaic_0001>
module attributes {stable_mosaic.version = 11 : i64} {
  func.func @_conv_pool_kernel(%arg0: memref<392x128xf32, #tpu.memory_space<vmem>>, %arg1: memref<392x128xf32, #tpu.memory_space<vmem>>, %arg2: memref<392x128xf32, #tpu.memory_space<vmem>>, %arg3: memref<392x128xf32, #tpu.memory_space<vmem>>, %arg4: memref<128x128xf32, #tpu.memory_space<vmem>>, %arg5: memref<1x128xf32, #tpu.memory_space<vmem>>, %arg6: memref<392x128xf32, #tpu.memory_space<vmem>>) attributes {dimension_semantics = [], scalar_prefetch = 0 : i64, scratch_operands = 0 : i64, tpu.core_type = #tpu.core_type<tc>} {
    %c0 = arith.constant 0 : index
    %c0_0 = arith.constant 0 : index
    %0 = vector.load %arg4[%c0, %c0_0] : memref<128x128xf32, #tpu.memory_space<vmem>>, vector<128x128xf32>
    %c0_1 = arith.constant 0 : index
    %c0_2 = arith.constant 0 : index
    %1 = vector.load %arg0[%c0_1, %c0_2] : memref<392x128xf32, #tpu.memory_space<vmem>>, vector<392x128xf32>
    %cst = arith.constant dense<0.000000e+00> : vector<392x128xf32>
    %2 = tpu.matmul %1, %0, %cst {dimension_numbers = #tpu.dot_dimension_numbers<[1], [0], [0], [1], [0, 0, 1, 1], [], []>} : vector<392x128xf32>, vector<128x128xf32>, vector<392x128xf32> -> vector<392x128xf32>
    %c0_3 = arith.constant 0 : index
    %c0_4 = arith.constant 0 : index
    %3 = vector.load %arg1[%c0_3, %c0_4] : memref<392x128xf32, #tpu.memory_space<vmem>>, vector<392x128xf32>
    %cst_5 = arith.constant dense<0.000000e+00> : vector<392x128xf32>
    %4 = tpu.matmul %3, %0, %cst_5 {dimension_numbers = #tpu.dot_dimension_numbers<[1], [0], [0], [1], [0, 0, 1, 1], [], []>} : vector<392x128xf32>, vector<128x128xf32>, vector<392x128xf32> -> vector<392x128xf32>
    %5 = arith.maximumf %2, %4 : vector<392x128xf32>
    %c0_6 = arith.constant 0 : index
    %c0_7 = arith.constant 0 : index
    %6 = vector.load %arg2[%c0_6, %c0_7] : memref<392x128xf32, #tpu.memory_space<vmem>>, vector<392x128xf32>
    %cst_8 = arith.constant dense<0.000000e+00> : vector<392x128xf32>
    %7 = tpu.matmul %6, %0, %cst_8 {dimension_numbers = #tpu.dot_dimension_numbers<[1], [0], [0], [1], [0, 0, 1, 1], [], []>} : vector<392x128xf32>, vector<128x128xf32>, vector<392x128xf32> -> vector<392x128xf32>
    %8 = arith.maximumf %5, %7 : vector<392x128xf32>
    %c0_9 = arith.constant 0 : index
    %c0_10 = arith.constant 0 : index
    %9 = vector.load %arg3[%c0_9, %c0_10] : memref<392x128xf32, #tpu.memory_space<vmem>>, vector<392x128xf32>
    %cst_11 = arith.constant dense<0.000000e+00> : vector<392x128xf32>
    %10 = tpu.matmul %9, %0, %cst_11 {dimension_numbers = #tpu.dot_dimension_numbers<[1], [0], [0], [1], [0, 0, 1, 1], [], []>} : vector<392x128xf32>, vector<128x128xf32>, vector<392x128xf32> -> vector<392x128xf32>
    %11 = arith.maximumf %8, %10 : vector<392x128xf32>
    %c0_12 = arith.constant 0 : index
    %c0_13 = arith.constant 0 : index
    %12 = vector.load %arg5[%c0_12, %c0_13] : memref<1x128xf32, #tpu.memory_space<vmem>>, vector<1x128xf32>
    %13 = vector.broadcast %12 : vector<1x128xf32> to vector<392x128xf32>
    %14 = arith.addf %11, %13 : vector<392x128xf32>
    %cst_14 = arith.constant 0.000000e+00 : f32
    %15 = vector.broadcast %cst_14 : f32 to vector<392x128xf32>
    %16 = arith.maximumf %14, %15 : vector<392x128xf32>
    %c0_15 = arith.constant 0 : index
    %c0_16 = arith.constant 0 : index
    %17 = vector.load %arg6[%c0_15, %c0_16] : memref<392x128xf32, #tpu.memory_space<vmem>>, vector<392x128xf32>
    tpu.vector_store %arg6[%c0_15, %c0_16], %16 {strides = array<i32>} : memref<392x128xf32, #tpu.memory_space<vmem>>, vector<392x128xf32>,
    return
  }
}

module attributes {stable_mosaic.version = 11 : i64} {
  func.func @_conv_pool_kernel(%arg0: memref<50x256xf32, #tpu.memory_space<vmem>>, %arg1: memref<50x256xf32, #tpu.memory_space<vmem>>, %arg2: memref<50x256xf32, #tpu.memory_space<vmem>>, %arg3: memref<50x256xf32, #tpu.memory_space<vmem>>, %arg4: memref<256x128xf32, #tpu.memory_space<vmem>>, %arg5: memref<1x128xf32, #tpu.memory_space<vmem>>, %arg6: memref<50x128xf32, #tpu.memory_space<vmem>>) attributes {dimension_semantics = [], scalar_prefetch = 0 : i64, scratch_operands = 0 : i64, tpu.core_type = #tpu.core_type<tc>} {
    %c0 = arith.constant 0 : index
    %c0_0 = arith.constant 0 : index
    %0 = vector.load %arg4[%c0, %c0_0] : memref<256x128xf32, #tpu.memory_space<vmem>>, vector<256x128xf32>
    %c0_1 = arith.constant 0 : index
    %c0_2 = arith.constant 0 : index
    %1 = vector.load %arg0[%c0_1, %c0_2] : memref<50x256xf32, #tpu.memory_space<vmem>>, vector<50x256xf32>
    %cst = arith.constant dense<0.000000e+00> : vector<50x128xf32>
    %2 = tpu.matmul %1, %0, %cst {dimension_numbers = #tpu.dot_dimension_numbers<[1], [0], [0], [1], [0, 0, 1, 1], [], []>} : vector<50x256xf32>, vector<256x128xf32>, vector<50x128xf32> -> vector<50x128xf32>
    %c0_3 = arith.constant 0 : index
    %c0_4 = arith.constant 0 : index
    %3 = vector.load %arg1[%c0_3, %c0_4] : memref<50x256xf32, #tpu.memory_space<vmem>>, vector<50x256xf32>
    %cst_5 = arith.constant dense<0.000000e+00> : vector<50x128xf32>
    %4 = tpu.matmul %3, %0, %cst_5 {dimension_numbers = #tpu.dot_dimension_numbers<[1], [0], [0], [1], [0, 0, 1, 1], [], []>} : vector<50x256xf32>, vector<256x128xf32>, vector<50x128xf32> -> vector<50x128xf32>
    %5 = arith.maximumf %2, %4 : vector<50x128xf32>
    %c0_6 = arith.constant 0 : index
    %c0_7 = arith.constant 0 : index
    %6 = vector.load %arg2[%c0_6, %c0_7] : memref<50x256xf32, #tpu.memory_space<vmem>>, vector<50x256xf32>
    %cst_8 = arith.constant dense<0.000000e+00> : vector<50x128xf32>
    %7 = tpu.matmul %6, %0, %cst_8 {dimension_numbers = #tpu.dot_dimension_numbers<[1], [0], [0], [1], [0, 0, 1, 1], [], []>} : vector<50x256xf32>, vector<256x128xf32>, vector<50x128xf32> -> vector<50x128xf32>
    %8 = arith.maximumf %5, %7 : vector<50x128xf32>
    %c0_9 = arith.constant 0 : index
    %c0_10 = arith.constant 0 : index
    %9 = vector.load %arg3[%c0_9, %c0_10] : memref<50x256xf32, #tpu.memory_space<vmem>>, vector<50x256xf32>
    %cst_11 = arith.constant dense<0.000000e+00> : vector<50x128xf32>
    %10 = tpu.matmul %9, %0, %cst_11 {dimension_numbers = #tpu.dot_dimension_numbers<[1], [0], [0], [1], [0, 0, 1, 1], [], []>} : vector<50x256xf32>, vector<256x128xf32>, vector<50x128xf32> -> vector<50x128xf32>
    %11 = arith.maximumf %8, %10 : vector<50x128xf32>
    %c0_12 = arith.constant 0 : index
    %c0_13 = arith.constant 0 : index
    %12 = vector.load %arg5[%c0_12, %c0_13] : memref<1x128xf32, #tpu.memory_space<vmem>>, vector<1x128xf32>
    %13 = vector.broadcast %12 : vector<1x128xf32> to vector<50x128xf32>
    %14 = arith.addf %11, %13 : vector<50x128xf32>
    %cst_14 = arith.constant 0.000000e+00 : f32
    %15 = vector.broadcast %cst_14 : f32 to vector<50x128xf32>
    %16 = arith.maximumf %14, %15 : vector<50x128xf32>
    %c0_15 = arith.constant 0 : index
    %c0_16 = arith.constant 0 : index
    %17 = vector.load %arg6[%c0_15, %c0_16] : memref<50x128xf32, #tpu.memory_space<vmem>>, vector<50x128xf32>
    tpu.vector_store %arg6[%c0_15, %c0_16], %16 {strides = array<i32>} : memref<50x128xf32, #tpu.memory_space<vmem>>, vector<50x128xf32>,
    return
  }
}

module attributes {stable_mosaic.version = 11 : i64} {
  func.func @_fc_stack_kernel(%arg0: memref<2x3200xf32, #tpu.memory_space<vmem>>, %arg1: memref<3200x128xf32, #tpu.memory_space<vmem>>, %arg2: memref<1x128xf32, #tpu.memory_space<vmem>>, %arg3: memref<128x128xf32, #tpu.memory_space<vmem>>, %arg4: memref<1x128xf32, #tpu.memory_space<vmem>>, %arg5: memref<128x10xf32, #tpu.memory_space<vmem>>, %arg6: memref<1x10xf32, #tpu.memory_space<vmem>>, %arg7: memref<2x10xf32, #tpu.memory_space<vmem>>) attributes {dimension_semantics = [], scalar_prefetch = 0 : i64, scratch_operands = 0 : i64, tpu.core_type = #tpu.core_type<tc>} {
    %c0 = arith.constant 0 : index
    %c0_0 = arith.constant 0 : index
    %0 = vector.load %arg0[%c0, %c0_0] : memref<2x3200xf32, #tpu.memory_space<vmem>>, vector<2x3200xf32>
    %c0_1 = arith.constant 0 : index
    %c0_2 = arith.constant 0 : index
    %1 = vector.load %arg1[%c0_1, %c0_2] : memref<3200x128xf32, #tpu.memory_space<vmem>>, vector<3200x128xf32>
    %cst = arith.constant dense<0.000000e+00> : vector<2x128xf32>
    %2 = tpu.matmul %0, %1, %cst {dimension_numbers = #tpu.dot_dimension_numbers<[1], [0], [0], [1], [0, 0, 1, 1], [], []>} : vector<2x3200xf32>, vector<3200x128xf32>, vector<2x128xf32> -> vector<2x128xf32>
    %c0_3 = arith.constant 0 : index
    %c0_4 = arith.constant 0 : index
    %3 = vector.load %arg2[%c0_3, %c0_4] : memref<1x128xf32, #tpu.memory_space<vmem>>, vector<1x128xf32>
    %4 = vector.broadcast %3 : vector<1x128xf32> to vector<2x128xf32>
    %5 = arith.addf %2, %4 : vector<2x128xf32>
    %cst_5 = arith.constant 0.000000e+00 : f32
    %6 = vector.broadcast %cst_5 : f32 to vector<2x128xf32>
    %7 = arith.maximumf %5, %6 : vector<2x128xf32>
    %c0_6 = arith.constant 0 : index
    %c0_7 = arith.constant 0 : index
    %8 = vector.load %arg3[%c0_6, %c0_7] : memref<128x128xf32, #tpu.memory_space<vmem>>, vector<128x128xf32>
    %cst_8 = arith.constant dense<0.000000e+00> : vector<2x128xf32>
    %9 = tpu.matmul %7, %8, %cst_8 {dimension_numbers = #tpu.dot_dimension_numbers<[1], [0], [0], [1], [0, 0, 1, 1], [], []>} : vector<2x128xf32>, vector<128x128xf32>, vector<2x128xf32> -> vector<2x128xf32>
    %c0_9 = arith.constant 0 : index
    %c0_10 = arith.constant 0 : index
    %10 = vector.load %arg4[%c0_9, %c0_10] : memref<1x128xf32, #tpu.memory_space<vmem>>, vector<1x128xf32>
    %11 = vector.broadcast %10 : vector<1x128xf32> to vector<2x128xf32>
    %12 = arith.addf %9, %11 : vector<2x128xf32>
    %cst_11 = arith.constant 0.000000e+00 : f32
    %13 = vector.broadcast %cst_11 : f32 to vector<2x128xf32>
    %14 = arith.maximumf %12, %13 : vector<2x128xf32>
    %c0_12 = arith.constant 0 : index
    %c0_13 = arith.constant 0 : index
    %15 = vector.load %arg5[%c0_12, %c0_13] : memref<128x10xf32, #tpu.memory_space<vmem>>, vector<128x10xf32>
    %cst_14 = arith.constant dense<0.000000e+00> : vector<2x10xf32>
    %16 = tpu.matmul %14, %15, %cst_14 {dimension_numbers = #tpu.dot_dimension_numbers<[1], [0], [0], [1], [0, 0, 1, 1], [], []>} : vector<2x128xf32>, vector<128x10xf32>, vector<2x10xf32> -> vector<2x10xf32>
    %c0_15 = arith.constant 0 : index
    %c0_16 = arith.constant 0 : index
    %17 = vector.load %arg6[%c0_15, %c0_16] : memref<1x10xf32, #tpu.memory_space<vmem>>, vector<1x10xf32>
    %18 = vector.broadcast %17 : vector<1x10xf32> to vector<2x10xf32>
    %19 = arith.addf %16, %18 : vector<2x10xf32>
    %c0_17 = arith.constant 0 : index
    %c0_18 = arith.constant 0 : index
    %20 = vector.load %arg7[%c0_17, %c0_18] : memref<2x10xf32, #tpu.memory_space<vmem>>, vector<2x10xf32>
    tpu.vector_store %arg7[%c0_17, %c0_18], %19 {strides = array<i32>} : memref<2x10xf32, #tpu.memory_space<vmem>>, vector<2x10xf32>,
    return
  }
}

</mosaic_0001>

<bundles_post_ra>
// kernel: net_forward.3
= control target key start
LH: loop header
LB: loop body
LE: loop exit
PB: predicated region body
PF: predicated region fallthrough
CT: control target
= control target key end

     0   :  { %v2856_v0 = vmov 0.0|0.0   ;;  %vm2857_vm0 = vmmov 0   ;;  %v2858_v6 = vmov 0.0   ;;  %s4644_s4 = inlined_call_operand.vmem [shape: f32[128,128], index: 4, kind: input, shape index: {}]   ;;  %s4645_s0 = inlined_call_operand.vmem [shape: f32[392,128], index: 0, kind: input, shape index: {}]   ;;  %s4646_s1 = inlined_call_operand.vmem [shape: f32[392,128], index: 1, kind: input, shape index: {}]   ;;  %s4647_s2 = inlined_call_operand.vmem [shape: f32[392,128], index: 2, kind: input, shape index: {}]   ;;  %s4648_s3 = inlined_call_operand.vmem [shape: f32[392,128], index: 3, kind: input, shape index: {}]   ;;  %s4649_s5 = inlined_call_operand.vmem [shape: f32[1,128], index: 5, kind: input, shape index: {}]   ;;  %s4650_s6 = inlined_call_operand.vmem [shape: f32[392,128], index: 6, kind: output, shape index: {}]  }
   0x1   :  { %2757 = vmatprep.subr.bf16.mxu0 %v2856_v0  ;;  %v23_v1 = vld [vmem:[%s4644_s4] sm:$0xff]  ;;  %v24_v2 = vld [vmem:[%s4644_s4 + $0x8] sm:$0xff]  ;;  %2781 = vmatprep.subr.bf16.mxu1 %v2856_v0  ;;  %v25_v3 = vld [vmem:[%s4644_s4 + $0x10] sm:$0xff] }
   0x2   :  { %v2905_v4 = vpack.c.bf16 %v24_v2, %v23_v1  ;;  %v26_v5 = vld [vmem:[%s4644_s4 + $0x18] sm:$0xff]  ;;  %2073 = vmatprep.mubr.msk.f32.mxu0 %vm2857_vm0, %v2858_v6  ;;  %2252 = vmatprep.mubr.msk.f32.mxu1 %vm2857_vm0, %v2858_v6  ;;  %v27_v8 = vld [vmem:[%s4644_s4 + $0x20] sm:$0xff]  ;;  %v28_v9 = vld [vmem:[%s4644_s4 + $0x28] sm:$0xff] }
   0x3   :  { %v2916_v7 = vpack.c.bf16 %v26_v5, %v25_v3  ;;  %v2928_v10 = vpack.c.bf16 %v28_v9, %v27_v8  ;;  %v29_v11 = vld [vmem:[%s4644_s4 + $0x30] sm:$0xff]  ;;  %v30_v12 = vld [vmem:[%s4644_s4 + $0x38] sm:$0xff]  ;;  %v31_v14 = vld [vmem:[%s4644_s4 + $0x40] sm:$0xff] }
   0x4   :  { %2759 = vmatpush3.bf16.msra.mxu0 %v2905_v4  ;;  %2783 = vmatpush3.bf16.msra.mxu1 %v2905_v4  ;;  %v2940_v13 = vpack.c.bf16 %v30_v12, %v29_v11  ;;  %v32_v15 = vld [vmem:[%s4644_s4 + $0x48] sm:$0xff]  ;;  %v33_v17 = vld [vmem:[%s4644_s4 + $0x50] sm:$0xff]  ;;  %v34_v18 = vld [vmem:[%s4644_s4 + $0x58] sm:$0xff] }
   0x5   :  { %2760 = vmatprep.subr.bf16.mxu0 %v2856_v0  ;;  %2784 = vmatprep.subr.bf16.mxu1 %v2856_v0  ;;  %v2952_v16 = vpack.c.bf16 %v32_v15, %v31_v14  ;;  %v2964_v19 = vpack.c.bf16 %v34_v18, %v33_v17  ;;  %v35_v20 = vld [vmem:[%s4644_s4 + $0x60] sm:$0xff]  ;;  %v36_v21 = vld [vmem:[%s4644_s4 + $0x68] sm:$0xff]  ;;  %v37_v23 = vld [vmem:[%s4644_s4 + $0x70] sm:$0xff] }
   0x6   :  { %v2976_v22 = vpack.c.bf16 %v36_v21, %v35_v20  ;;  %v38_v24 = vld [vmem:[%s4644_s4 + $0x78] sm:$0xff]  ;;  %v39_v26 = vld [vmem:[%s4645_s0] sm:$0xff]  ;;  %v40_v28 = vld [vmem:[%s4645_s0 + $0x8] sm:$0xff] }
   0x7   :  { %v2988_v25 = vpack.c.bf16 %v38_v24, %v37_v23  ;;  %v398_v27 = vld [vmem:[%s4646_s1] sm:$0xff]  ;;  %v399_v29 = vld [vmem:[%s4646_s1 + $0x8] sm:$0xff]  ;;  %v41_v30 = vld [vmem:[%s4645_s0 + $0x10] sm:$0xff] }
   0x8   :  { %2762 = vmatpush3.bf16.msra.mxu0 %v2916_v7  ;;  %2786 = vmatpush3.bf16.msra.mxu1 %v2916_v7  ;;  %v400_v31 = vld [vmem:[%s4646_s1 + $0x10] sm:$0xff]  ;;  %v42_v32 = vld [vmem:[%s4645_s0 + $0x18] sm:$0xff]  ;;  %v43_v34 = vld [vmem:[%s4645_s0 + $0x20] sm:$0xff] }
   0x9   :  { %2763 = vmatprep.subr.bf16.mxu0 %v2856_v0  ;;  %2787 = vmatprep.subr.bf16.mxu1 %v2856_v0  ;;  %v401_v33 = vld [vmem:[%s4646_s1 + $0x18] sm:$0xff]  ;;  %v402_v35 = vld [vmem:[%s4646_s1 + $0x20] sm:$0xff]  ;;  %v44_v36 = vld [vmem:[%s4645_s0 + $0x28] sm:$0xff] }
   0xa   :  { %v403_v37 = vld [vmem:[%s4646_s1 + $0x28] sm:$0xff]  ;;  %v45_v38 = vld [vmem:[%s4645_s0 + $0x30] sm:$0xff]  ;;  %v46_v40 = vld [vmem:[%s4645_s0 + $0x38] sm:$0xff] }
   0xb   :  { %v404_v39 = vld [vmem:[%s4646_s1 + $0x30] sm:$0xff]  ;;  %v405_v41 = vld [vmem:[%s4646_s1 + $0x38] sm:$0xff]  ;;  %v47_v42 = vld [vmem:[%s4645_s0 + $0x40] sm:$0xff] }
   0xc   :  { %2765 = vmatpush3.bf16.msra.mxu0 %v2928_v10  ;;  %2789 = vmatpush3.bf16.msra.mxu1 %v2928_v10  ;;  %v406_v43 = vld [vmem:[%s4646_s1 + $0x40] sm:$0xff]  ;;  %v48_v44 = vld [vmem:[%s4645_s0 + $0x48] sm:$0xff]  ;;  %v49_v46 = vld [vmem:[%s4645_s0 + $0x50] sm:$0xff] }
   0xd   :  { %2766 = vmatprep.subr.bf16.mxu0 %v2856_v0  ;;  %2790 = vmatprep.subr.bf16.mxu1 %v2856_v0  ;;  %v407_v45 = vld [vmem:[%s4646_s1 + $0x48] sm:$0xff]  ;;  %v408_v47 = vld [vmem:[%s4646_s1 + $0x50] sm:$0xff]  ;;  %v50_v48 = vld [vmem:[%s4645_s0 + $0x58] sm:$0xff] }
   0xe   :  { %v409_v49 = vld [vmem:[%s4646_s1 + $0x58] sm:$0xff]  ;;  %v51_v50 = vld [vmem:[%s4645_s0 + $0x60] sm:$0xff]  ;;  %v52_v52 = vld [vmem:[%s4645_s0 + $0x68] sm:$0xff] }
   0xf   :  { %v410_v51 = vld [vmem:[%s4646_s1 + $0x60] sm:$0xff]  ;;  %v411_v53 = vld [vmem:[%s4646_s1 + $0x68] sm:$0xff]  ;;  %v53_v54 = vld [vmem:[%s4645_s0 + $0x70] sm:$0xff] }
  0x10   :  { %2768 = vmatpush3.bf16.msra.mxu0 %v2940_v13  ;;  %2792 = vmatpush3.bf16.msra.mxu1 %v2940_v13  ;;  %v412_v55 = vld [vmem:[%s4646_s1 + $0x70] sm:$0xff]  ;;  %v54_v56 = vld [vmem:[%s4645_s0 + $0x78] sm:$0xff]  ;;  %v55_v58 = vld [vmem:[%s4645_s0 + $0x80] sm:$0xff] }
  0x11   :  { %2769 = vmatprep.subr.bf16.mxu0 %v2856_v0  ;;  %2793 = vmatprep.subr.bf16.mxu1 %v2856_v0  ;;  %v413_v57 = vld [vmem:[%s4646_s1 + $0x78] sm:$0xff]  ;;  %v414_v59 = vld [vmem:[%s4646_s1 + $0x80] sm:$0xff]  ;;  %v56_v60 = vld [vmem:[%s4645_s0 + $0x88] sm:$0xff] }
  0x12   :  { %v415_v61 = vld [vmem:[%s4646_s1 + $0x88] sm:$0xff]  ;;  %v57_v62 = vld [vmem:[%s4645_s0 + $0x90] sm:$0xff]  ;;  %v417_v1 = vld [vmem:[%s4646_s1 + $0x98] sm:$0xff] }
  0x13   :  { %v416_v63 = vld [vmem:[%s4646_s1 + $0x90] sm:$0xff]  ;;  %v59_v2 = vld [vmem:[%s4645_s0 + $0xa0] sm:$0xff]  ;;  %v419_v5 = vld [vmem:[%s4646_s1 + $0xa8] sm:$0xff] }
  0x14   :  { %2771 = vmatpush3.bf16.msra.mxu0 %v2952_v16  ;;  %2795 = vmatpush3.bf16.msra.mxu1 %v2952_v16  ;;  %v418_v3 = vld [vmem:[%s4646_s1 + $0xa0] sm:$0xff]  ;;  %v420_v8 = vld [vmem:[%s4646_s1 + $0xb0] sm:$0xff]  ;;  %v62_v9 = vld [vmem:[%s4645_s0 + $0xb8] sm:$0xff] }
  0x15   :  { %2772 = vmatprep.subr.bf16.mxu0 %v2856_v0  ;;  %2796 = vmatprep.subr.bf16.mxu1 %v2856_v0  ;;  %v63_v11 = vld [vmem:[%s4645_s0 + $0xc0] sm:$0xff]  ;;  %v423_v14 = vld [vmem:[%s4646_s1 + $0xc8] sm:$0xff]  ;;  %v65_v15 = vld [vmem:[%s4645_s0 + $0xd0] sm:$0xff] }
  0x16   :  { %v422_v12 = vld [vmem:[%s4646_s1 + $0xc0] sm:$0xff]  ;;  %v66_v17 = vld [vmem:[%s4645_s0 + $0xd8] sm:$0xff]  ;;  %v68_v21 = vld [vmem:[%s4645_s0 + $0xe8] sm:$0xff] }
  0x17   :  { %v425_v18 = vld [vmem:[%s4646_s1 + $0xd8] sm:$0xff]  ;;  %v426_v20 = vld [vmem:[%s4646_s1 + $0xe0] sm:$0xff]  ;;  %v69_v23 = vld [vmem:[%s4645_s0 + $0xf0] sm:$0xff] }
  0x18   :  { %2774 = vmatpush3.bf16.msra.mxu0 %v2964_v19  ;;  %2798 = vmatpush3.bf16.msra.mxu1 %v2964_v19  ;;  %v428_v24 = vld [vmem:[%s4646_s1 + $0xf0] sm:$0xff] }
  0x19   :  { %2775 = vmatprep.subr.bf16.mxu0 %v2856_v0  ;;  %2799 = vmatprep.subr.bf16.mxu1 %v2856_v0 }
  0x1c   :  { %2777 = vmatpush3.bf16.msra.mxu0 %v2976_v22  ;;  %2801 = vmatpush3.bf16.msra.mxu1 %v2976_v22 }
  0x1d   :  { %2778 = vmatprep.subr.bf16.mxu0 %v2856_v0  ;;  %2802 = vmatprep.subr.bf16.mxu1 %v2856_v0 }
  0x20   :  { %2780 = vmatpush3.bf16.msra.mxu0 %v2988_v25  ;;  %2804 = vmatpush3.bf16.msra.mxu1 %v2988_v25 }
  0x21   :  { %2805 = vmatprep.subr.bf16.mxu0 %v2856_v0  ;;  %2829 = vmatprep.subr.bf16.mxu1 %v2856_v0 }
  0x23   :  { %2074 = vmatmul.mubr.f32.vlgmr.msra.gmra.mrb[0].mxu0 %v39_v26  ;;  %2253 = vmatmul.mubr.f32.vlgmr.msra.gmra.mrb[0].mxu1 %v398_v27  ;;  %v429_v26 = vld [vmem:[%s4646_s1 + $0xf8] sm:$0xff]  ;;  %v71_v27 = vld [vmem:[%s4645_s0 + $0x100] sm:$0xff] }
  0x24   :  { %2807 = vmatpush3.bf16.msra.mxu0 %v2905_v4  ;;  %2076 = vmatprep.mubr.msk.f32.mxu0 %vm2857_vm0, %v2858_v6 }
  0x25   :  { %2831 = vmatpush3.bf16.msra.mxu1 %v2905_v4  ;;  %2255 = vmatprep.mubr.msk.f32.mxu1 %vm2857_vm0, %v2858_v6  ;;  %v60_v4 = vld [vmem:[%s4645_s0 + $0xa8] sm:$0xff] }
  0x26   :  { %2808 = vmatprep.subr.bf16.mxu0 %v2856_v0  ;;  %2832 = vmatprep.subr.bf16.mxu1 %v2856_v0 }
  0x27   :  { %2077 = vmatmul.mubr.f32.gmra.mrb[2].mxu0 %v40_v28  ;;  %2256 = vmatmul.mubr.f32.gmra.mrb[2].mxu1 %v399_v29  ;;  %v430_v28 = vld [vmem:[%s4646_s1 + $0x100] sm:$0xff]  ;;  %v72_v29 = vld [vmem:[%s4645_s0 + $0x108] sm:$0xff] }
  0x28   :  { %2079 = vmatprep.mubr.msk.f32.mxu0 %vm2857_vm0, %v2858_v6  ;;  %2258 = vmatprep.mubr.msk.f32.mxu1 %vm2857_vm0, %v2858_v6 }
  0x29   :  { %2810 = vmatpush3.bf16.msra.mxu0 %v2916_v7  ;;  %2834 = vmatpush3.bf16.msra.mxu1 %v2916_v7  ;;  %v61_v7 = vld [vmem:[%s4645_s0 + $0xb0] sm:$0xff] }
  0x2a   :  { %2811 = vmatprep.subr.bf16.mxu0 %v2856_v0  ;;  %2835 = vmatprep.subr.bf16.mxu1 %v2856_v0 }
  0x2b   :  { %2080 = vmatmul.mubr.f32.gmra.mrb[4].mxu0 %v41_v30  ;;  %2259 = vmatmul.mubr.f32.gmra.mrb[4].mxu1 %v400_v31  ;;  %v431_v30 = vld [vmem:[%s4646_s1 + $0x108] sm:$0xff]  ;;  %v73_v31 = vld [vmem:[%s4645_s0 + $0x110] sm:$0xff] }
  0x2c   :  { %2082 = vmatprep.mubr.msk.f32.mxu0 %vm2857_vm0, %v2858_v6  ;;  %2261 = vmatprep.mubr.msk.f32.mxu1 %vm2857_vm0, %v2858_v6 }
  0x2d   :  { %2813 = vmatpush3.bf16.msra.mxu0 %v2928_v10  ;;  %2837 = vmatpush3.bf16.msra.mxu1 %v2928_v10  ;;  %v421_v10 = vld [vmem:[%s4646_s1 + $0xb8] sm:$0xff] }
  0x2e   :  { %2814 = vmatprep.subr.bf16.mxu0 %v2856_v0  ;;  %2838 = vmatprep.subr.bf16.mxu1 %v2856_v0 }
  0x2f   :  { %2083 = vmatmul.mubr.f32.gmra.mrb[6].mxu0 %v42_v32  ;;  %2262 = vmatmul.mubr.f32.gmra.mrb[6].mxu1 %v401_v33  ;;  %v432_v32 = vld [vmem:[%s4646_s1 + $0x110] sm:$0xff]  ;;  %v74_v33 = vld [vmem:[%s4645_s0 + $0x118] sm:$0xff] }
  0x30   :  { %2085 = vmatprep.mubr.msk.f32.mxu0 %vm2857_vm0, %v2858_v6  ;;  %2264 = vmatprep.mubr.msk.f32.mxu1 %vm2857_vm0, %v2858_v6 }
  0x31   :  { %2816 = vmatpush3.bf16.msra.mxu0 %v2940_v13  ;;  %2840 = vmatpush3.bf16.msra.mxu1 %v2940_v13  ;;  %v64_v13 = vld [vmem:[%s4645_s0 + $0xc8] sm:$0xff] }
  0x32   :  { %2817 = vmatprep.subr.bf16.mxu0 %v2856_v0  ;;  %2841 = vmatprep.subr.bf16.mxu1 %v2856_v0 }
  0x33   :  { %2086 = vmatmul.mubr.f32.gmra.mrb[8].mxu0 %v43_v34  ;;  %2265 = vmatmul.mubr.f32.gmra.mrb[8].mxu1 %v402_v35  ;;  %v433_v34 = vld [vmem:[%s4646_s1 + $0x118] sm:$0xff]  ;;  %v75_v35 = vld [vmem:[%s4645_s0 + $0x120] sm:$0xff] }
  0x34   :  { %2088 = vmatprep.mubr.msk.f32.mxu0 %vm2857_vm0, %v2858_v6  ;;  %2267 = vmatprep.mubr.msk.f32.mxu1 %vm2857_vm0, %v2858_v6 }
  0x35   :  { %2819 = vmatpush3.bf16.msra.mxu0 %v2952_v16  ;;  %2843 = vmatpush3.bf16.msra.mxu1 %v2952_v16  ;;  %v424_v16 = vld [vmem:[%s4646_s1 + $0xd0] sm:$0xff] }
  0x36   :  { %2820 = vmatprep.subr.bf16.mxu0 %v2856_v0  ;;  %2844 = vmatprep.subr.bf16.mxu1 %v2856_v0 }
  0x37   :  { %2089 = vmatmul.mubr.f32.gmra.mrb[10].mxu0 %v44_v36  ;;  %2268 = vmatmul.mubr.f32.gmra.mrb[10].mxu1 %v403_v37  ;;  %v434_v36 = vld [vmem:[%s4646_s1 + $0x120] sm:$0xff]  ;;  %v76_v37 = vld [vmem:[%s4645_s0 + $0x128] sm:$0xff] }
  0x38   :  { %2091 = vmatprep.mubr.msk.f32.mxu0 %vm2857_vm0, %v2858_v6  ;;  %2270 = vmatprep.mubr.msk.f32.mxu1 %vm2857_vm0, %v2858_v6 }
  0x39   :  { %2822 = vmatpush3.bf16.msra.mxu0 %v2964_v19  ;;  %2846 = vmatpush3.bf16.msra.mxu1 %v2964_v19  ;;  %v67_v19 = vld [vmem:[%s4645_s0 + $0xe0] sm:$0xff] }
  0x3a   :  { %2823 = vmatprep.subr.bf16.mxu0 %v2856_v0  ;;  %2847 = vmatprep.subr.bf16.mxu1 %v2856_v0 }
  0x3b   :  { %2092 = vmatmul.mubr.f32.gmra.mrb[12].mxu0 %v45_v38  ;;  %2271 = vmatmul.mubr.f32.gmra.mrb[12].mxu1 %v404_v39  ;;  %v435_v38 = vld [vmem:[%s4646_s1 + $0x128] sm:$0xff]  ;;  %v77_v39 = vld [vmem:[%s4645_s0 + $0x130] sm:$0xff] }
  0x3c   :  { %2094 = vmatprep.mubr.msk.f32.mxu0 %vm2857_vm0, %v2858_v6  ;;  %2273 = vmatprep.mubr.msk.f32.mxu1 %vm2857_vm0, %v2858_v6 }
  0x3d   :  { %2825 = vmatpush3.bf16.msra.mxu0 %v2976_v22  ;;  %2849 = vmatpush3.bf16.msra.mxu1 %v2976_v22  ;;  %v427_v22 = vld [vmem:[%s4646_s1 + $0xe8] sm:$0xff] }
  0x3e   :  { %2826 = vmatprep.subr.bf16.mxu0 %v2856_v0  ;;  %2850 = vmatprep.subr.bf16.mxu1 %v2856_v0  ;;  %v58_v0 = vld [vmem:[%s4645_s0 + $0x98] sm:$0xff] }
  0x3f   :  { %2095 = vmatmul.mubr.f32.gmra.mrb[14].mxu0 %v46_v40  ;;  %2274 = vmatmul.mubr.f32.gmra.mrb[14].mxu1 %v405_v41  ;;  %v436_v40 = vld [vmem:[%s4646_s1 + $0x130] sm:$0xff]  ;;  %v78_v41 = vld [vmem:[%s4645_s0 + $0x138] sm:$0xff] }
  0x40   :  { %2097 = vmatprep.mubr.msk.f32.mxu0 %vm2857_vm0, %v2858_v6  ;;  %2276 = vmatprep.mubr.msk.f32.mxu1 %vm2857_vm0, %v2858_v6 }
  0x41   :  { %2828 = vmatpush3.bf16.msra.mxu0 %v2988_v25  ;;  %2852 = vmatpush3.bf16.msra.mxu1 %v2988_v25  ;;  %v70_v25 = vld [vmem:[%s4645_s0 + $0xf8] sm:$0xff] }
  0x43   :  { %2098 = vmatmul.mubr.f32.gmra.mrb[16].mxu0 %v47_v42  ;;  %2277 = vmatmul.mubr.f32.gmra.mrb[16].mxu1 %v406_v43  ;;  %v437_v42 = vld [vmem:[%s4646_s1 + $0x138] sm:$0xff]  ;;  %v79_v43 = vld [vmem:[%s4645_s0 + $0x140] sm:$0xff] }
  0x44   :  { %2100 = vmatprep.mubr.msk.f32.mxu0 %vm2857_vm0, %v2858_v6  ;;  %2279 = vmatprep.mubr.msk.f32.mxu1 %vm2857_vm0, %v2858_v6 }
  0x47   :  { %2101 = vmatmul.mubr.f32.gmra.mrb[18].mxu0 %v48_v44  ;;  %2280 = vmatmul.mubr.f32.gmra.mrb[18].mxu1 %v407_v45  ;;  %v438_v44 = vld [vmem:[%s4646_s1 + $0x140] sm:$0xff]  ;;  %v80_v45 = vld [vmem:[%s4645_s0 + $0x148] sm:$0xff] }
  0x48   :  { %2103 = vmatprep.mubr.msk.f32.mxu0 %vm2857_vm0, %v2858_v6  ;;  %2282 = vmatprep.mubr.msk.f32.mxu1 %vm2857_vm0, %v2858_v6 }
  0x4b   :  { %2104 = vmatmul.mubr.f32.gmra.mrb[20].mxu0 %v49_v46  ;;  %2283 = vmatmul.mubr.f32.gmra.mrb[20].mxu1 %v408_v47  ;;  %v439_v46 = vld [vmem:[%s4646_s1 + $0x148] sm:$0xff]  ;;  %v81_v47 = vld [vmem:[%s4645_s0 + $0x150] sm:$0xff] }
  0x4c   :  { %2106 = vmatprep.mubr.msk.f32.mxu0 %vm2857_vm0, %v2858_v6  ;;  %2285 = vmatprep.mubr.msk.f32.mxu1 %vm2857_vm0, %v2858_v6 }
  0x4f   :  { %2107 = vmatmul.mubr.f32.gmra.mrb[22].mxu0 %v50_v48  ;;  %2286 = vmatmul.mubr.f32.gmra.mrb[22].mxu1 %v409_v49  ;;  %v440_v48 = vld [vmem:[%s4646_s1 + $0x150] sm:$0xff]  ;;  %v82_v49 = vld [vmem:[%s4645_s0 + $0x158] sm:$0xff] }
  0x50   :  { %2109 = vmatprep.mubr.msk.f32.mxu0 %vm2857_vm0, %v2858_v6  ;;  %2288 = vmatprep.mubr.msk.f32.mxu1 %vm2857_vm0, %v2858_v6 }
  0x53   :  { %2110 = vmatmul.mubr.f32.gmra.mrb[24].mxu0 %v51_v50  ;;  %2289 = vmatmul.mubr.f32.gmra.mrb[24].mxu1 %v410_v51  ;;  %v441_v50 = vld [vmem:[%s4646_s1 + $0x158] sm:$0xff]  ;;  %v83_v51 = vld [vmem:[%s4645_s0 + $0x160] sm:$0xff] }
  0x54   :  { %2112 = vmatprep.mubr.msk.f32.mxu0 %vm2857_vm0, %v2858_v6  ;;  %2291 = vmatprep.mubr.msk.f32.mxu1 %vm2857_vm0, %v2858_v6 }
  0x57   :  { %2113 = vmatmul.mubr.f32.gmra.mrb[26].mxu0 %v52_v52  ;;  %2292 = vmatmul.mubr.f32.gmra.mrb[26].mxu1 %v411_v53  ;;  %v442_v52 = vld [vmem:[%s4646_s1 + $0x160] sm:$0xff]  ;;  %v84_v53 = vld [vmem:[%s4645_s0 + $0x168] sm:$0xff] }
  0x58   :  { %2115 = vmatprep.mubr.msk.f32.mxu0 %vm2857_vm0, %v2858_v6  ;;  %2294 = vmatprep.mubr.msk.f32.mxu1 %vm2857_vm0, %v2858_v6 }
  0x5b   :  { %2116 = vmatmul.mubr.f32.gmra.mrb[28].mxu0 %v53_v54  ;;  %2295 = vmatmul.mubr.f32.gmra.mrb[28].mxu1 %v412_v55  ;;  %v443_v54 = vld [vmem:[%s4646_s1 + $0x168] sm:$0xff]  ;;  %v85_v55 = vld [vmem:[%s4645_s0 + $0x170] sm:$0xff] }
  0x5c   :  { %2118 = vmatprep.mubr.msk.f32.mxu0 %vm2857_vm0, %v2858_v6  ;;  %2297 = vmatprep.mubr.msk.f32.mxu1 %vm2857_vm0, %v2858_v6 }
  0x5f   :  { %2119 = vmatmul.mubr.f32.gmra.mrb[30].mxu0 %v54_v56  ;;  %2298 = vmatmul.mubr.f32.gmra.mrb[30].mxu1 %v413_v57  ;;  %v444_v56 = vld [vmem:[%s4646_s1 + $0x170] sm:$0xff]  ;;  %v86_v57 = vld [vmem:[%s4645_s0 + $0x178] sm:$0xff] }
  0x60   :  { %2121 = vmatprep.mubr.msk.f32.mxu0 %vm2857_vm0, %v2858_v6  ;;  %2300 = vmatprep.mubr.msk.f32.mxu1 %vm2857_vm0, %v2858_v6 }
  0x63   :  { %2122 = vmatmul.mubr.f32.gmra.mrb[32].mxu0 %v55_v58  ;;  %2301 = vmatmul.mubr.f32.gmra.mrb[32].mxu1 %v414_v59  ;;  %v445_v58 = vld [vmem:[%s4646_s1 + $0x178] sm:$0xff]  ;;  %v87_v59 = vld [vmem:[%s4645_s0 + $0x180] sm:$0xff] }
  0x64   :  { %2124 = vmatprep.mubr.msk.f32.mxu0 %vm2857_vm0, %v2858_v6  ;;  %2303 = vmatprep.mubr.msk.f32.mxu1 %vm2857_vm0, %v2858_v6 }
  0x67   :  { %2125 = vmatmul.mubr.f32.gmra.mrb[34].mxu0 %v56_v60  ;;  %2304 = vmatmul.mubr.f32.gmra.mrb[34].mxu1 %v415_v61  ;;  %v446_v60 = vld [vmem:[%s4646_s1 + $0x180] sm:$0xff] }
  0x68   :  { %2127 = vmatprep.mubr.msk.f32.mxu0 %vm2857_vm0, %v2858_v6  ;;  %2306 = vmatprep.mubr.msk.f32.mxu1 %vm2857_vm0, %v2858_v6  ;;  %v806_v61 = vld [vmem:[%s4647_s2] sm:$0xff] }
  0x6b   :  { %2128 = vmatmul.mubr.f32.gmra.mrb[36].mxu0 %v57_v62  ;;  %2307 = vmatmul.mubr.f32.gmra.mrb[36].mxu1 %v416_v63  ;;  %v1214_v62 = vld [vmem:[%s4648_s3] sm:$0xff]  ;;  %v807_v63 = vld [vmem:[%s4647_s2 + $0x8] sm:$0xff] }
  0x6c   :  { %2130 = vmatprep.mubr.msk.f32.mxu0 %vm2857_vm0, %v2858_v6  ;;  %2309 = vmatprep.mubr.msk.f32.mxu1 %vm2857_vm0, %v2858_v6 }
  0x6f   :  { %2131 = vmatmul.mubr.f32.gmra.mrb[38].mxu0 %v58_v0  ;;  %2310 = vmatmul.mubr.f32.gmra.mrb[38].mxu1 %v417_v1  ;;  %v1215_v0 = vld [vmem:[%s4648_s3 + $0x8] sm:$0xff]  ;;  %v808_v1 = vld [vmem:[%s4647_s2 + $0x10] sm:$0xff] }
  0x70   :  { %2133 = vmatprep.mubr.msk.f32.mxu0 %vm2857_vm0, %v2858_v6  ;;  %2312 = vmatprep.mubr.msk.f32.mxu1 %vm2857_vm0, %v2858_v6 }
  0x73   :  { %2134 = vmatmul.mubr.f32.gmra.mrb[40].mxu0 %v59_v2  ;;  %2313 = vmatmul.mubr.f32.gmra.mrb[40].mxu1 %v418_v3  ;;  %v1216_v2 = vld [vmem:[%s4648_s3 + $0x10] sm:$0xff]  ;;  %v809_v3 = vld [vmem:[%s4647_s2 + $0x18] sm:$0xff] }
  0x74   :  { %2136 = vmatprep.mubr.msk.f32.mxu0 %vm2857_vm0, %v2858_v6  ;;  %2315 = vmatprep.mubr.msk.f32.mxu1 %vm2857_vm0, %v2858_v6 }
  0x77   :  { %2137 = vmatmul.mubr.f32.gmra.mrb[42].mxu0 %v60_v4  ;;  %2316 = vmatmul.mubr.f32.gmra.mrb[42].mxu1 %v419_v5  ;;  %v1217_v4 = vld [vmem:[%s4648_s3 + $0x18] sm:$0xff]  ;;  %v810_v5 = vld [vmem:[%s4647_s2 + $0x20] sm:$0xff] }
  0x78   :  { %2139 = vmatprep.mubr.msk.f32.mxu0 %vm2857_vm0, %v2858_v6  ;;  %2318 = vmatprep.mubr.msk.f32.mxu1 %vm2857_vm0, %v2858_v6 }
  0x7b   :  { %2140 = vmatmul.mubr.f32.gmra.mrb[44].mxu0 %v61_v7  ;;  %2319 = vmatmul.mubr.f32.gmra.mrb[44].mxu1 %v420_v8  ;;  %v1218_v7 = vld [vmem:[%s4648_s3 + $0x20] sm:$0xff] }
  0x7c   :  { %2142 = vmatprep.mubr.msk.f32.mxu0 %vm2857_vm0, %v2858_v6  ;;  %2321 = vmatprep.mubr.msk.f32.mxu1 %vm2857_vm0, %v2858_v6 }
  0x7f   :  { %2143 = vmatmul.mubr.f32.gmra.mrb[46].mxu0 %v62_v9  ;;  %2322 = vmatmul.mubr.f32.gmra.mrb[46].mxu1 %v421_v10 }
  0x80   :  { %2145 = vmatprep.mubr.msk.f32.mxu0 %vm2857_vm0, %v2858_v6  ;;  %2324 = vmatprep.mubr.msk.f32.mxu1 %vm2857_vm0, %v2858_v6 }
  0x83   :  { %2146 = vmatmul.mubr.f32.gmra.mrb[48].mxu0 %v63_v11  ;;  %2325 = vmatmul.mubr.f32.gmra.mrb[48].mxu1 %v422_v12 }
  0x84   :  { %2148 = vmatprep.mubr.msk.f32.mxu0 %vm2857_vm0, %v2858_v6  ;;  %2327 = vmatprep.mubr.msk.f32.mxu1 %vm2857_vm0, %v2858_v6 }
  0x87   :  { %2149 = vmatmul.mubr.f32.gmra.mrb[50].mxu0 %v64_v13  ;;  %2328 = vmatmul.mubr.f32.gmra.mrb[50].mxu1 %v423_v14  ;;  %v811_v13 = vld [vmem:[%s4647_s2 + $0x28] sm:$0xff] }
  0x88   :  { %2151 = vmatprep.mubr.msk.f32.mxu0 %vm2857_vm0, %v2858_v6  ;;  %2330 = vmatprep.mubr.msk.f32.mxu1 %vm2857_vm0, %v2858_v6  ;;  %v1219_v14 = vld [vmem:[%s4648_s3 + $0x28] sm:$0xff] }
  0x8b   :  { %2152 = vmatmul.mubr.f32.gmra.mrb[52].mxu0 %v65_v15  ;;  %2331 = vmatmul.mubr.f32.gmra.mrb[52].mxu1 %v424_v16 }
  0x8c   :  { %2154 = vmatprep.mubr.msk.f32.mxu0 %vm2857_vm0, %v2858_v6  ;;  %2333 = vmatprep.mubr.msk.f32.mxu1 %vm2857_vm0, %v2858_v6 }
  0x8f   :  { %2155 = vmatmul.mubr.f32.gmra.mrb[54].mxu0 %v66_v17  ;;  %2334 = vmatmul.mubr.f32.gmra.mrb[54].mxu1 %v425_v18  ;;  %v838_v18 = vld [vmem:[%s4647_s2 + $0x100] sm:$0xff] }
  0x90   :  { %2157 = vmatprep.mubr.msk.f32.mxu0 %vm2857_vm0, %v2858_v6  ;;  %2336 = vmatprep.mubr.msk.f32.mxu1 %vm2857_vm0, %v2858_v6 }
  0x93   :  { %2158 = vmatmul.mubr.f32.gmra.mrb[56].mxu0 %v67_v19  ;;  %2337 = vmatmul.mubr.f32.gmra.mrb[56].mxu1 %v426_v20  ;;  %v812_v20 = vld [vmem:[%s4647_s2 + $0x30] sm:$0xff] }
  0x94   :  { %2160 = vmatprep.mubr.msk.f32.mxu0 %vm2857_vm0, %v2858_v6  ;;  %2339 = vmatprep.mubr.msk.f32.mxu1 %vm2857_vm0, %v2858_v6 }
  0x97   :  { %2161 = vmatmul.mubr.f32.gmra.mrb[58].mxu0 %v68_v21  ;;  %2340 = vmatmul.mubr.f32.gmra.mrb[58].mxu1 %v427_v22  ;;  %v1220_v21 = vld [vmem:[%s4648_s3 + $0x30] sm:$0xff] }
  0x98   :  { %2163 = vmatprep.mubr.msk.f32.mxu0 %vm2857_vm0, %v2858_v6  ;;  %2342 = vmatprep.mubr.msk.f32.mxu1 %vm2857_vm0, %v2858_v6 }
  0x9b   :  { %2164 = vmatmul.mubr.f32.gmra.mrb[60].mxu0 %v69_v23  ;;  %2343 = vmatmul.mubr.f32.gmra.mrb[60].mxu1 %v428_v24 }
  0x9c   :  { %2166 = vmatprep.mubr.msk.f32.mxu0 %vm2857_vm0, %v2858_v6  ;;  %2345 = vmatprep.mubr.msk.f32.mxu1 %vm2857_vm0, %v2858_v6 }
  0x9f   :  { %2167 = vmatmul.mubr.f32.gmra.mrb[62].mxu0 %v70_v25  ;;  %2346 = vmatmul.mubr.f32.gmra.mrb[62].mxu1 %v429_v26 }
  0xa0   :  { %2169 = vmatprep.mubr.msk.f32.mxu0 %vm2857_vm0, %v2858_v6  ;;  %2348 = vmatprep.mubr.msk.f32.mxu1 %vm2857_vm0, %v2858_v6 }
  0xa3   :  { %2170 = vmatmul.mubr.f32.gmra.mrb[64].mxu0 %v71_v27  ;;  %2349 = vmatmul.mubr.f32.gmra.mrb[64].mxu1 %v430_v28  ;;  %v813_v27 = vld [vmem:[%s4647_s2 + $0x38] sm:$0xff] }
  0xa4   :  { %2172 = vmatprep.mubr.msk.f32.mxu0 %vm2857_vm0, %v2858_v6  ;;  %2351 = vmatprep.mubr.msk.f32.mxu1 %vm2857_vm0, %v2858_v6  ;;  %v1221_v28 = vld [vmem:[%s4648_s3 + $0x38] sm:$0xff] }
  0xa7   :  { %2173 = vmatmul.mubr.f32.gmra.mrb[66].mxu0 %v72_v29  ;;  %2352 = vmatmul.mubr.f32.gmra.mrb[66].mxu1 %v431_v30 }
  0xa8   :  { %2175 = vmatprep.mubr.msk.f32.mxu0 %vm2857_vm0, %v2858_v6  ;;  %2354 = vmatprep.mubr.msk.f32.mxu1 %vm2857_vm0, %v2858_v6 }
  0xab   :  { %2176 = vmatmul.mubr.f32.gmra.mrb[68].mxu0 %v73_v31  ;;  %2355 = vmatmul.mubr.f32.gmra.mrb[68].mxu1 %v432_v32  ;;  %v837_v32 = vld [vmem:[%s4647_s2 + $0xf8] sm:$0xff] }
  0xac   :  { %2178 = vmatprep.mubr.msk.f32.mxu0 %vm2857_vm0, %v2858_v6  ;;  %2357 = vmatprep.mubr.msk.f32.mxu1 %vm2857_vm0, %v2858_v6 }
  0xaf   :  { %2179 = vmatmul.mubr.f32.gmra.mrb[70].mxu0 %v74_v33  ;;  %2358 = vmatmul.mubr.f32.gmra.mrb[70].mxu1 %v433_v34  ;;  %v814_v34 = vld [vmem:[%s4647_s2 + $0x40] sm:$0xff] }
  0xb0   :  { %2181 = vmatprep.mubr.msk.f32.mxu0 %vm2857_vm0, %v2858_v6  ;;  %2360 = vmatprep.mubr.msk.f32.mxu1 %vm2857_vm0, %v2858_v6 }
  0xb3   :  { %2182 = vmatmul.mubr.f32.gmra.mrb[72].mxu0 %v75_v35  ;;  %2361 = vmatmul.mubr.f32.gmra.mrb[72].mxu1 %v434_v36  ;;  %v1222_v35 = vld [vmem:[%s4648_s3 + $0x40] sm:$0xff] }
  0xb4   :  { %2184 = vmatprep.mubr.msk.f32.mxu0 %vm2857_vm0, %v2858_v6  ;;  %2363 = vmatprep.mubr.msk.f32.mxu1 %vm2857_vm0, %v2858_v6 }
  0xb7   :  { %2185 = vmatmul.mubr.f32.gmra.mrb[74].mxu0 %v76_v37  ;;  %2364 = vmatmul.mubr.f32.gmra.mrb[74].mxu1 %v435_v38 }
  0xb8   :  { %2187 = vmatprep.mubr.msk.f32.mxu0 %vm2857_vm0, %v2858_v6  ;;  %2366 = vmatprep.mubr.msk.f32.mxu1 %vm2857_vm0, %v2858_v6 }
  0xbb   :  { %2188 = vmatmul.mubr.f32.gmra.mrb[76].mxu0 %v77_v39  ;;  %2367 = vmatmul.mubr.f32.gmra.mrb[76].mxu1 %v436_v40 }
  0xbc   :  { %2190 = vmatprep.mubr.msk.f32.mxu0 %vm2857_vm0, %v2858_v6  ;;  %2369 = vmatprep.mubr.msk.f32.mxu1 %vm2857_vm0, %v2858_v6 }
  0xbf   :  { %2191 = vmatmul.mubr.f32.gmra.mrb[78].mxu0 %v78_v41  ;;  %2370 = vmatmul.mubr.f32.gmra.mrb[78].mxu1 %v437_v42  ;;  %v815_v41 = vld [vmem:[%s4647_s2 + $0x48] sm:$0xff] }
  0xc0   :  { %2193 = vmatprep.mubr.msk.f32.mxu0 %vm2857_vm0, %v2858_v6  ;;  %2372 = vmatprep.mubr.msk.f32.mxu1 %vm2857_vm0, %v2858_v6  ;;  %v1223_v42 = vld [vmem:[%s4648_s3 + $0x48] sm:$0xff] }
  0xc3   :  { %2194 = vmatmul.mubr.f32.gmra.mrb[80].mxu0 %v79_v43  ;;  %2373 = vmatmul.mubr.f32.gmra.mrb[80].mxu1 %v438_v44 }
  0xc4   :  { %2196 = vmatprep.mubr.msk.f32.mxu0 %vm2857_vm0, %v2858_v6  ;;  %2375 = vmatprep.mubr.msk.f32.mxu1 %vm2857_vm0, %v2858_v6 }
  0xc7   :  { %2197 = vmatmul.mubr.f32.gmra.mrb[82].mxu0 %v80_v45  ;;  %2376 = vmatmul.mubr.f32.gmra.mrb[82].mxu1 %v439_v46  ;;  %v836_v46 = vld [vmem:[%s4647_s2 + $0xf0] sm:$0xff] }
  0xc8   :  { %2199 = vmatprep.mubr.msk.f32.mxu0 %vm2857_vm0, %v2858_v6  ;;  %2378 = vmatprep.mubr.msk.f32.mxu1 %vm2857_vm0, %v2858_v6 }
  0xcb   :  { %2200 = vmatmul.mubr.f32.gmra.mrb[84].mxu0 %v81_v47  ;;  %2379 = vmatmul.mubr.f32.gmra.mrb[84].mxu1 %v440_v48  ;;  %v816_v48 = vld [vmem:[%s4647_s2 + $0x50] sm:$0xff] }
  0xcc   :  { %2202 = vmatprep.mubr.msk.f32.mxu0 %vm2857_vm0, %v2858_v6  ;;  %2381 = vmatprep.mubr.msk.f32.mxu1 %vm2857_vm0, %v2858_v6 }
  0xcf   :  { %2203 = vmatmul.mubr.f32.gmra.mrb[86].mxu0 %v82_v49  ;;  %2382 = vmatmul.mubr.f32.gmra.mrb[86].mxu1 %v441_v50  ;;  %v1224_v49 = vld [vmem:[%s4648_s3 + $0x50] sm:$0xff] }
  0xd0   :  { %2205 = vmatprep.mubr.msk.f32.mxu0 %vm2857_vm0, %v2858_v6  ;;  %2384 = vmatprep.mubr.msk.f32.mxu1 %vm2857_vm0, %v2858_v6 }
  0xd3   :  { %2206 = vmatmul.mubr.f32.gmra.mrb[88].mxu0 %v83_v51  ;;  %2385 = vmatmul.mubr.f32.gmra.mrb[88].mxu1 %v442_v52 }
  0xd4   :  { %2208 = vmatprep.mubr.msk.f32.mxu0 %vm2857_vm0, %v2858_v6  ;;  %2387 = vmatprep.mubr.msk.f32.mxu1 %vm2857_vm0, %v2858_v6 }
  0xd7   :  { %2209 = vmatmul.mubr.f32.gmra.mrb[90].mxu0 %v84_v53  ;;  %2388 = vmatmul.mubr.f32.gmra.mrb[90].mxu1 %v443_v54 }
  0xd8   :  { %2211 = vmatprep.mubr.msk.f32.mxu0 %vm2857_vm0, %v2858_v6  ;;  %2390 = vmatprep.mubr.msk.f32.mxu1 %vm2857_vm0, %v2858_v6 }
  0xdb   :  { %2212 = vmatmul.mubr.f32.gmra.mrb[92].mxu0 %v85_v55  ;;  %2391 = vmatmul.mubr.f32.gmra.mrb[92].mxu1 %v444_v56  ;;  %v817_v55 = vld [vmem:[%s4647_s2 + $0x58] sm:$0xff] }
  0xdc   :  { %2214 = vmatprep.mubr.msk.f32.mxu0 %vm2857_vm0, %v2858_v6  ;;  %2393 = vmatprep.mubr.msk.f32.mxu1 %vm2857_vm0, %v2858_v6  ;;  %v1225_v56 = vld [vmem:[%s4648_s3 + $0x58] sm:$0xff] }
  0xdf   :  { %2215 = vmatmul.mubr.f32.gmra.mrb[94].mxu0 %v86_v57  ;;  %2394 = vmatmul.mubr.f32.gmra.mrb[94].mxu1 %v445_v58 }
  0xe0   :  { %2217 = vmatprep.mubr.msk.f32.mxu0 %vm2857_vm0, %v2858_v6  ;;  %2396 = vmatprep.mubr.msk.f32.mxu1 %vm2857_vm0, %v2858_v6 }
  0xe3   :  { %2218 = vmatmul.mubr.f32.gmra.mrb[96].mxu0 %v87_v59  ;;  %2397 = vmatmul.mubr.f32.gmra.mrb[96].mxu1 %v446_v60  ;;  %v835_v60 = vld [vmem:[%s4647_s2 + $0xe8] sm:$0xff] }
  0xe4   :  { %2431 = vmatprep.mubr.msk.f32.mxu0 %vm2857_vm0, %v2858_v6  ;;  %2610 = vmatprep.mubr.msk.f32.mxu1 %vm2857_vm0, %v2858_v6 }
  0xe7   :  { %2432 = vmatmul.mubr.f32.vlgmr.msra.gmra.mrb[98].mxu0 %v806_v61  ;;  %2611 = vmatmul.mubr.f32.vlgmr.msra.gmra.mrb[98].mxu1 %v1214_v62  ;;  %v818_v62 = vld [vmem:[%s4647_s2 + $0x60] sm:$0xff] }
  0xe8   :  { %2434 = vmatprep.mubr.msk.f32.mxu0 %vm2857_vm0, %v2858_v6  ;;  %2613 = vmatprep.mubr.msk.f32.mxu1 %vm2857_vm0, %v2858_v6 }
  0xeb   :  { %2435 = vmatmul.mubr.f32.gmra.mrb[100].mxu0 %v807_v63  ;;  %2614 = vmatmul.mubr.f32.gmra.mrb[100].mxu1 %v1215_v0  ;;  %v1226_v63 = vld [vmem:[%s4648_s3 + $0x60] sm:$0xff] }
  0xec   :  { %2437 = vmatprep.mubr.msk.f32.mxu0 %vm2857_vm0, %v2858_v6  ;;  %2616 = vmatprep.mubr.msk.f32.mxu1 %vm2857_vm0, %v2858_v6 }
  0xef   :  { %2438 = vmatmul.mubr.f32.gmra.mrb[102].mxu0 %v808_v1  ;;  %2617 = vmatmul.mubr.f32.gmra.mrb[102].mxu1 %v1216_v2 }
  0xf0   :  { %2440 = vmatprep.mubr.msk.f32.mxu0 %vm2857_vm0, %v2858_v6  ;;  %2619 = vmatprep.mubr.msk.f32.mxu1 %vm2857_vm0, %v2858_v6 }
  0xf3   :  { %2441 = vmatmul.mubr.f32.gmra.mrb[104].mxu0 %v809_v3  ;;  %2620 = vmatmul.mubr.f32.gmra.mrb[104].mxu1 %v1217_v4 }
  0xf4   :  { %2443 = vmatprep.mubr.msk.f32.mxu0 %vm2857_vm0, %v2858_v6  ;;  %2622 = vmatprep.mubr.msk.f32.mxu1 %vm2857_vm0, %v2858_v6 }
  0xf6   :  { %v3562_v8 = vpop.f32.mrb[0].mxu0  ;;  %v3564_v9 = vpop.f32.mrb[0].mxu1 }
  0xf7   :  { %v2075_v10 = vpop.f32.mrb[1].mxu0  ;;  %2444 = vmatmul.mubr.f32.gmra.mrb[106].mxu0 %v810_v5  ;;  %v2254_v12 = vpop.f32.mrb[1].mxu1  ;;  %2623 = vmatmul.mubr.f32.gmra.mrb[106].mxu1 %v1218_v7  ;;  %v819_v5 = vld [vmem:[%s4647_s2 + $0x68] sm:$0xff] }
  0xf8   :  { %2446 = vmatprep.mubr.msk.f32.mxu0 %vm2857_vm0, %v2858_v6  ;;  %2625 = vmatprep.mubr.msk.f32.mxu1 %vm2857_vm0, %v2858_v6  ;;  %v1227_v7 = vld [vmem:[%s4648_s3 + $0x68] sm:$0xff] }
  0xfa   :  { %v3578_v15 = vpop.f32.mrb[2].mxu0  ;;  %v3580_v16 = vpop.f32.mrb[2].mxu1 }
  0xfb   :  { %v2078_v17 = vpop.f32.mrb[3].mxu0  ;;  %2447 = vmatmul.mubr.f32.gmra.mrb[108].mxu0 %v811_v13  ;;  %v2257_v19 = vpop.f32.mrb[3].mxu1  ;;  %2626 = vmatmul.mubr.f32.gmra.mrb[108].mxu1 %v1219_v14  ;;  %v834_v14 = vld [vmem:[%s4647_s2 + $0xe0] sm:$0xff] }
  0xfc   :  { %2449 = vmatprep.mubr.msk.f32.mxu0 %vm2857_vm0, %v2858_v6  ;;  %2628 = vmatprep.mubr.msk.f32.mxu1 %vm2857_vm0, %v2858_v6  ;;  %v820_v19 = vld [vmem:[%s4647_s2 + $0x70] sm:$0xff] }
  0xfe   :  { %v3594_v22 = vpop.f32.mrb[4].mxu0  ;;  %v3596_v23 = vpop.f32.mrb[4].mxu1 }
  0xff   :  { %v2081_v24 = vpop.f32.mrb[5].mxu0  ;;  %2450 = vmatmul.mubr.f32.gmra.mrb[110].mxu0 %v812_v20  ;;  %v2260_v26 = vpop.f32.mrb[5].mxu1  ;;  %2629 = vmatmul.mubr.f32.gmra.mrb[110].mxu1 %v1220_v21  ;;  %v1228_v20 = vld [vmem:[%s4648_s3 + $0x70] sm:$0xff] }
 0x100   :  { %2452 = vmatprep.mubr.msk.f32.mxu0 %vm2857_vm0, %v2858_v6  ;;  %2631 = vmatprep.mubr.msk.f32.mxu1 %vm2857_vm0, %v2858_v6 }
 0x102   :  { %v3610_v29 = vpop.f32.mrb[6].mxu0  ;;  %v3612_v30 = vpop.f32.mrb[6].mxu1 }
 0x103   :  { %v2084_v31 = vpop.f32.mrb[7].mxu0  ;;  %2453 = vmatmul.mubr.f32.gmra.mrb[112].mxu0 %v813_v27  ;;  %v2263_v33 = vpop.f32.mrb[7].mxu1  ;;  %2632 = vmatmul.mubr.f32.gmra.mrb[112].mxu1 %v1221_v28 }
 0x104   :  { %2455 = vmatprep.mubr.msk.f32.mxu0 %vm2857_vm0, %v2858_v6  ;;  %2634 = vmatprep.mubr.msk.f32.mxu1 %vm2857_vm0, %v2858_v6  ;;  %v821_v31 = vld [vmem:[%s4647_s2 + $0x78] sm:$0xff] }
 0x105   :  { %v1229_v33 = vld [vmem:[%s4648_s3 + $0x78] sm:$0xff] }
 0x106   :  { %v3626_v36 = vpop.f32.mrb[8].mxu0  ;;  %v3628_v37 = vpop.f32.mrb[8].mxu1 }
 0x107   :  { %v2087_v38 = vpop.f32.mrb[9].mxu0  ;;  %2456 = vmatmul.mubr.f32.gmra.mrb[114].mxu0 %v814_v34  ;;  %v2266_v40 = vpop.f32.mrb[9].mxu1  ;;  %2635 = vmatmul.mubr.f32.gmra.mrb[114].mxu1 %v1222_v35 }
 0x108   :  { %2458 = vmatprep.mubr.msk.f32.mxu0 %vm2857_vm0, %v2858_v6  ;;  %2637 = vmatprep.mubr.msk.f32.mxu1 %vm2857_vm0, %v2858_v6  ;;  %v833_v40 = vld [vmem:[%s4647_s2 + $0xd8] sm:$0xff] }
 0x10a   :  { %v3642_v43 = vpop.f32.mrb[10].mxu0  ;;  %v3644_v44 = vpop.f32.mrb[10].mxu1 }
 0x10b   :  { %v2090_v45 = vpop.f32.mrb[11].mxu0  ;;  %2459 = vmatmul.mubr.f32.gmra.mrb[116].mxu0 %v815_v41  ;;  %v2269_v47 = vpop.f32.mrb[11].mxu1  ;;  %2638 = vmatmul.mubr.f32.gmra.mrb[116].mxu1 %v1223_v42  ;;  %v822_v42 = vld [vmem:[%s4647_s2 + $0x80] sm:$0xff] }
 0x10c   :  { %2461 = vmatprep.mubr.msk.f32.mxu0 %vm2857_vm0, %v2858_v6  ;;  %2640 = vmatprep.mubr.msk.f32.mxu1 %vm2857_vm0, %v2858_v6  ;;  %v1230_v45 = vld [vmem:[%s4648_s3 + $0x80] sm:$0xff] }
 0x10e   :  { %v3658_v50 = vpop.f32.mrb[12].mxu0  ;;  %v3660_v51 = vpop.f32.mrb[12].mxu1 }
 0x10f   :  { %v2093_v52 = vpop.f32.mrb[13].mxu0  ;;  %2462 = vmatmul.mubr.f32.gmra.mrb[118].mxu0 %v816_v48  ;;  %v2272_v54 = vpop.f32.mrb[13].mxu1  ;;  %2641 = vmatmul.mubr.f32.gmra.mrb[118].mxu1 %v1224_v49 }
 0x110   :  { %2464 = vmatprep.mubr.msk.f32.mxu0 %vm2857_vm0, %v2858_v6  ;;  %2643 = vmatprep.mubr.msk.f32.mxu1 %vm2857_vm0, %v2858_v6 }
 0x112   :  { %v3674_v57 = vpop.f32.mrb[14].mxu0  ;;  %v3676_v58 = vpop.f32.mrb[14].mxu1 }
 0x113   :  { %v2096_v59 = vpop.f32.mrb[15].mxu0  ;;  %2465 = vmatmul.mubr.f32.gmra.mrb[120].mxu0 %v817_v55  ;;  %v2275_v61 = vpop.f32.mrb[15].mxu1  ;;  %2644 = vmatmul.mubr.f32.gmra.mrb[120].mxu1 %v1225_v56  ;;  %v823_v55 = vld [vmem:[%s4647_s2 + $0x88] sm:$0xff] }
 0x114   :  { %2467 = vmatprep.mubr.msk.f32.mxu0 %vm2857_vm0, %v2858_v6  ;;  %2646 = vmatprep.mubr.msk.f32.mxu1 %vm2857_vm0, %v2858_v6  ;;  %v1231_v56 = vld [vmem:[%s4648_s3 + $0x88] sm:$0xff] }
 0x116   :  { %v3690_v0 = vpop.f32.mrb[16].mxu0  ;;  %v3692_v1 = vpop.f32.mrb[16].mxu1 }
 0x117   :  { %v2099_v2 = vpop.f32.mrb[17].mxu0  ;;  %2468 = vmatmul.mubr.f32.gmra.mrb[122].mxu0 %v818_v62  ;;  %v2278_v4 = vpop.f32.mrb[17].mxu1  ;;  %2647 = vmatmul.mubr.f32.gmra.mrb[122].mxu1 %v1226_v63  ;;  %v832_v63 = vld [vmem:[%s4647_s2 + $0xd0] sm:$0xff] }
 0x118   :  { %2470 = vmatprep.mubr.msk.f32.mxu0 %vm2857_vm0, %v2858_v6  ;;  %2649 = vmatprep.mubr.msk.f32.mxu1 %vm2857_vm0, %v2858_v6  ;;  %v824_v4 = vld [vmem:[%s4647_s2 + $0x90] sm:$0xff] }
 0x11a   :  { %v3706_v10 = vpop.f32.mrb[18].mxu0  ;;  %v3708_v12 = vpop.f32.mrb[18].mxu1 }
 0x11b   :  { %v2102_v13 = vpop.f32.mrb[19].mxu0  ;;  %2471 = vmatmul.mubr.f32.gmra.mrb[124].mxu0 %v819_v5  ;;  %v2281_v17 = vpop.f32.mrb[19].mxu1  ;;  %2650 = vmatmul.mubr.f32.gmra.mrb[124].mxu1 %v1227_v7  ;;  %v1232_v5 = vld [vmem:[%s4648_s3 + $0x90] sm:$0xff] }
 0x11c   :  { %2473 = vmatprep.mubr.msk.f32.mxu0 %vm2857_vm0, %v2858_v6  ;;  %2652 = vmatprep.mubr.msk.f32.mxu1 %vm2857_vm0, %v2858_v6 }
 0x11e   :  { %v3722_v21 = vpop.f32.mrb[20].mxu0  ;;  %v3724_v24 = vpop.f32.mrb[20].mxu1 }
 0x11f   :  { %v2105_v26 = vpop.f32.mrb[21].mxu0  ;;  %2474 = vmatmul.mubr.f32.gmra.mrb[126].mxu0 %v820_v19  ;;  %v2284_v28 = vpop.f32.mrb[21].mxu1  ;;  %2653 = vmatmul.mubr.f32.gmra.mrb[126].mxu1 %v1228_v20 }
 0x120   :  { %2476 = vmatprep.mubr.msk.f32.mxu0 %vm2857_vm0, %v2858_v6  ;;  %2655 = vmatprep.mubr.msk.f32.mxu1 %vm2857_vm0, %v2858_v6  ;;  %v825_v26 = vld [vmem:[%s4647_s2 + $0x98] sm:$0xff] }
 0x121   :  { %v1233_v28 = vld [vmem:[%s4648_s3 + $0x98] sm:$0xff] }
 0x122   :  { %v3738_v34 = vpop.f32.mrb[22].mxu0  ;;  %v3740_v35 = vpop.f32.mrb[22].mxu1 }
 0x123   :  { %v2108_v38 = vpop.f32.mrb[23].mxu0  ;;  %2477 = vmatmul.mubr.f32.gmra.mrb[128].mxu0 %v821_v31  ;;  %v2287_v41 = vpop.f32.mrb[23].mxu1  ;;  %2656 = vmatmul.mubr.f32.gmra.mrb[128].mxu1 %v1229_v33 }
 0x124   :  { %2479 = vmatprep.mubr.msk.f32.mxu0 %vm2857_vm0, %v2858_v6  ;;  %2658 = vmatprep.mubr.msk.f32.mxu1 %vm2857_vm0, %v2858_v6  ;;  %v831_v41 = vld [vmem:[%s4647_s2 + $0xc8] sm:$0xff] }
 0x126   :  { %v3754_v47 = vpop.f32.mrb[24].mxu0  ;;  %v3756_v48 = vpop.f32.mrb[24].mxu1 }
 0x127   :  { %v2111_v49 = vpop.f32.mrb[25].mxu0  ;;  %2480 = vmatmul.mubr.f32.gmra.mrb[130].mxu0 %v822_v42  ;;  %v2290_v54 = vpop.f32.mrb[25].mxu1  ;;  %2659 = vmatmul.mubr.f32.gmra.mrb[130].mxu1 %v1230_v45  ;;  %v826_v45 = vld [vmem:[%s4647_s2 + $0xa0] sm:$0xff] }
 0x128   :  { %2482 = vmatprep.mubr.msk.f32.mxu0 %vm2857_vm0, %v2858_v6  ;;  %2661 = vmatprep.mubr.msk.f32.mxu1 %vm2857_vm0, %v2858_v6  ;;  %v1234_v49 = vld [vmem:[%s4648_s3 + $0xa0] sm:$0xff] }
 0x12a   :  { %v3770_v59 = vpop.f32.mrb[26].mxu0  ;;  %v3772_v61 = vpop.f32.mrb[26].mxu1 }
 0x12b   :  { %v2114_v62 = vpop.f32.mrb[27].mxu0  ;;  %2483 = vmatmul.mubr.f32.gmra.mrb[132].mxu0 %v823_v55  ;;  %v2293_v2 = vpop.f32.mrb[27].mxu1  ;;  %2662 = vmatmul.mubr.f32.gmra.mrb[132].mxu1 %v1231_v56 }
 0x12c   :  { %2485 = vmatprep.mubr.msk.f32.mxu0 %vm2857_vm0, %v2858_v6  ;;  %2664 = vmatprep.mubr.msk.f32.mxu1 %vm2857_vm0, %v2858_v6 }
 0x12e   :  { %v3786_v7 = vpop.f32.mrb[28].mxu0  ;;  %v3788_v13 = vpop.f32.mrb[28].mxu1 }
 0x12f   :  { %v2117_v17 = vpop.f32.mrb[29].mxu0  ;;  %2486 = vmatmul.mubr.f32.gmra.mrb[134].mxu0 %v824_v4  ;;  %v2296_v20 = vpop.f32.mrb[29].mxu1  ;;  %2665 = vmatmul.mubr.f32.gmra.mrb[134].mxu1 %v1232_v5  ;;  %v827_v4 = vld [vmem:[%s4647_s2 + $0xa8] sm:$0xff] }
 0x130   :  { %2488 = vmatprep.mubr.msk.f32.mxu0 %vm2857_vm0, %v2858_v6  ;;  %2667 = vmatprep.mubr.msk.f32.mxu1 %vm2857_vm0, %v2858_v6  ;;  %v1235_v5 = vld [vmem:[%s4648_s3 + $0xa8] sm:$0xff] }
 0x132   :  { %v3802_v31 = vpop.f32.mrb[30].mxu0  ;;  %v3804_v33 = vpop.f32.mrb[30].mxu1 }
 0x133   :  { %v2120_v38 = vpop.f32.mrb[31].mxu0  ;;  %2489 = vmatmul.mubr.f32.gmra.mrb[136].mxu0 %v825_v26  ;;  %v2299_v42 = vpop.f32.mrb[31].mxu1  ;;  %2668 = vmatmul.mubr.f32.gmra.mrb[136].mxu1 %v1233_v28  ;;  %v830_v28 = vld [vmem:[%s4647_s2 + $0xc0] sm:$0xff] }
 0x134   :  { %2491 = vmatprep.mubr.msk.f32.mxu0 %vm2857_vm0, %v2858_v6  ;;  %2670 = vmatprep.mubr.msk.f32.mxu1 %vm2857_vm0, %v2858_v6  ;;  %v828_v42 = vld [vmem:[%s4647_s2 + $0xb0] sm:$0xff] }
 0x136   :  { %v3818_v54 = vpop.f32.mrb[32].mxu0  ;;  %v3820_v55 = vpop.f32.mrb[32].mxu1 }
 0x137   :  { %v2123_v56 = vpop.f32.mrb[33].mxu0  ;;  %2492 = vmatmul.mubr.f32.gmra.mrb[138].mxu0 %v826_v45  ;;  %v2302_v2 = vpop.f32.mrb[33].mxu1  ;;  %2671 = vmatmul.mubr.f32.gmra.mrb[138].mxu1 %v1234_v49  ;;  %v1236_v45 = vld [vmem:[%s4648_s3 + $0xb0] sm:$0xff] }
 0x138   :  { %2494 = vmatprep.mubr.msk.f32.mxu0 %vm2857_vm0, %v2858_v6  ;;  %2673 = vmatprep.mubr.msk.f32.mxu1 %vm2857_vm0, %v2858_v6 }
 0x13a   :  { %v3834_v17 = vpop.f32.mrb[34].mxu0  ;;  %v3836_v20 = vpop.f32.mrb[34].mxu1 }
 0x13b   :  { %v2126_v26 = vpop.f32.mrb[35].mxu0  ;;  %2495 = vmatmul.mubr.f32.gmra.mrb[140].mxu0 %v827_v4  ;;  %v2305_v38 = vpop.f32.mrb[35].mxu1  ;;  %2674 = vmatmul.mubr.f32.gmra.mrb[140].mxu1 %v1235_v5 }
 0x13c   :  { %2497 = vmatprep.mubr.msk.f32.mxu0 %vm2857_vm0, %v2858_v6  ;;  %2676 = vmatprep.mubr.msk.f32.mxu1 %vm2857_vm0, %v2858_v6  ;;  %v829_v26 = vld [vmem:[%s4647_s2 + $0xb8] sm:$0xff] }
 0x13d   :  { %v1237_v38 = vld [vmem:[%s4648_s3 + $0xb8] sm:$0xff] }
 0x13e   :  { %v3850_v49 = vpop.f32.mrb[36].mxu0  ;;  %v3852_v56 = vpop.f32.mrb[36].mxu1 }
 0x13f   :  { %v2129_v2 = vpop.f32.mrb[37].mxu0  ;;  %2498 = vmatmul.mubr.f32.gmra.mrb[142].mxu0 %v828_v42  ;;  %v2308_v5 = vpop.f32.mrb[37].mxu1  ;;  %2677 = vmatmul.mubr.f32.gmra.mrb[142].mxu1 %v1236_v45 }
 0x140   :  { %2500 = vmatprep.mubr.msk.f32.mxu0 %vm2857_vm0, %v2858_v6  ;;  %2679 = vmatprep.mubr.msk.f32.mxu1 %vm2857_vm0, %v2858_v6 }
 0x142   :  { %v3866_v2 = vpop.f32.mrb[38].mxu0  ;;  %v3868_v4 = vpop.f32.mrb[38].mxu1 }
 0x143   :  { %v2132_v42 = vpop.f32.mrb[39].mxu0  ;;  %2501 = vmatmul.mubr.f32.gmra.mrb[144].mxu0 %v829_v26  ;;  %v2311_v5 = vpop.f32.mrb[39].mxu1  ;;  %2680 = vmatmul.mubr.f32.gmra.mrb[144].mxu1 %v1237_v38 }
 0x144   :  { %2503 = vmatprep.mubr.msk.f32.mxu0 %vm2857_vm0, %v2858_v6  ;;  %2682 = vmatprep.mubr.msk.f32.mxu1 %vm2857_vm0, %v2858_v6  ;;  %v1238_v42 = vld [vmem:[%s4648_s3 + $0xc0] sm:$0xff] }
 0x146   :  { %v3882_v62 = vpop.f32.mrb[40].mxu0  ;;  %v3884_v45 = vpop.f32.mrb[40].mxu1 }
 0x147   :  { %v2135_v26 = vpop.f32.mrb[41].mxu0  ;;  %2504 = vmatmul.mubr.f32.gmra.mrb[146].mxu0 %v830_v28  ;;  %v2314_v5 = vpop.f32.mrb[41].mxu1  ;;  %2683 = vmatmul.mubr.f32.gmra.mrb[146].mxu1 %v1238_v42 }
 0x148   :  { %2506 = vmatprep.mubr.msk.f32.mxu0 %vm2857_vm0, %v2858_v6  ;;  %2685 = vmatprep.mubr.msk.f32.mxu1 %vm2857_vm0, %v2858_v6  ;;  %v1239_v26 = vld [vmem:[%s4648_s3 + $0xc8] sm:$0xff] }
 0x14a   :  { %v3898_v19 = vpop.f32.mrb[42].mxu0  ;;  %v3900_v38 = vpop.f32.mrb[42].mxu1 }
 0x14b   :  { %v2138_v28 = vpop.f32.mrb[43].mxu0  ;;  %2507 = vmatmul.mubr.f32.gmra.mrb[148].mxu0 %v831_v41  ;;  %v2317_v5 = vpop.f32.mrb[43].mxu1  ;;  %2686 = vmatmul.mubr.f32.gmra.mrb[148].mxu1 %v1239_v26 }
 0x14c   :  { %2509 = vmatprep.mubr.msk.f32.mxu0 %vm2857_vm0, %v2858_v6  ;;  %2688 = vmatprep.mubr.msk.f32.mxu1 %vm2857_vm0, %v2858_v6  ;;  %v1240_v28 = vld [vmem:[%s4648_s3 + $0xd0] sm:$0xff] }
 0x14e   :  { %v3914_v52 = vpop.f32.mrb[44].mxu0  ;;  %v3916_v42 = vpop.f32.mrb[44].mxu1 }
 0x14f   :  { %v2141_v41 = vpop.f32.mrb[45].mxu0  ;;  %2510 = vmatmul.mubr.f32.gmra.mrb[150].mxu0 %v832_v63  ;;  %v2320_v5 = vpop.f32.mrb[45].mxu1  ;;  %2689 = vmatmul.mubr.f32.gmra.mrb[150].mxu1 %v1240_v28 }
 0x150   :  { %2512 = vmatprep.mubr.msk.f32.mxu0 %vm2857_vm0, %v2858_v6  ;;  %2691 = vmatprep.mubr.msk.f32.mxu1 %vm2857_vm0, %v2858_v6  ;;  %v1241_v41 = vld [vmem:[%s4648_s3 + $0xd8] sm:$0xff] }
 0x152   :  { %v3930_v27 = vpop.f32.mrb[46].mxu0  ;;  %v3932_v26 = vpop.f32.mrb[46].mxu1 }
 0x153   :  { %v2144_v63 = vpop.f32.mrb[47].mxu0  ;;  %2513 = vmatmul.mubr.f32.gmra.mrb[152].mxu0 %v833_v40  ;;  %v2323_v5 = vpop.f32.mrb[47].mxu1  ;;  %2692 = vmatmul.mubr.f32.gmra.mrb[152].mxu1 %v1241_v41 }
 0x154   :  { %2515 = vmatprep.mubr.msk.f32.mxu0 %vm2857_vm0, %v2858_v6  ;;  %2694 = vmatprep.mubr.msk.f32.mxu1 %vm2857_vm0, %v2858_v6  ;;  %v1242_v63 = vld [vmem:[%s4648_s3 + $0xe0] sm:$0xff] }
 0x156   :  { %v3946_v3 = vpop.f32.mrb[48].mxu0  ;;  %v3948_v28 = vpop.f32.mrb[48].mxu1 }
 0x157   :  { %4700 = vst [vmem:[#allocation2_spill] sm:$0xff] %v3948_v28  ;;  %v2147_v40 = vpop.f32.mrb[49].mxu0  ;;  %2516 = vmatmul.mubr.f32.gmra.mrb[154].mxu0 %v834_v14  ;;  %v2326_v5 = vpop.f32.mrb[49].mxu1  ;;  %2695 = vmatmul.mubr.f32.gmra.mrb[154].mxu1 %v1242_v63 }
 0x158   :  { %2518 = vmatprep.mubr.msk.f32.mxu0 %vm2857_vm0, %v2858_v6  ;;  %2697 = vmatprep.mubr.msk.f32.mxu1 %vm2857_vm0, %v2858_v6  ;;  %v1243_v40 = vld [vmem:[%s4648_s3 + $0xe8] sm:$0xff] }
 0x15a   :  { %v3962_v53 = vpop.f32.mrb[50].mxu0  ;;  %v3964_v41 = vpop.f32.mrb[50].mxu1 }
 0x15b   :  { %4701 = vst [vmem:[#allocation3_spill] sm:$0xff] %v3962_v53  ;;  %4702 = vst [vmem:[#allocation4_spill] sm:$0xff] %v3964_v41  ;;  %v2150_v14 = vpop.f32.mrb[51].mxu0  ;;  %2519 = vmatmul.mubr.f32.gmra.mrb[156].mxu0 %v835_v60  ;;  %v2329_v5 = vpop.f32.mrb[51].mxu1  ;;  %2698 = vmatmul.mubr.f32.gmra.mrb[156].mxu1 %v1243_v40 }
 0x15c   :  { %2521 = vmatprep.mubr.msk.f32.mxu0 %vm2857_vm0, %v2858_v6  ;;  %2700 = vmatprep.mubr.msk.f32.mxu1 %vm2857_vm0, %v2858_v6  ;;  %v1244_v14 = vld [vmem:[%s4648_s3 + $0xf0] sm:$0xff] }
 0x15e   :  { %v3978_v39 = vpop.f32.mrb[52].mxu0  ;;  %v3980_v63 = vpop.f32.mrb[52].mxu1 }
 0x15f   :  { %4703 = vst [vmem:[#allocation5_spill] sm:$0xff] %v3978_v39  ;;  %4704 = vst [vmem:[#allocation6_spill] sm:$0xff] %v3980_v63  ;;  %v2153_v60 = vpop.f32.mrb[53].mxu0  ;;  %2522 = vmatmul.mubr.f32.gmra.mrb[158].mxu0 %v836_v46  ;;  %v2332_v5 = vpop.f32.mrb[53].mxu1  ;;  %2701 = vmatmul.mubr.f32.gmra.mrb[158].mxu1 %v1244_v14 }
 0x160   :  { %2524 = vmatprep.mubr.msk.f32.mxu0 %vm2857_vm0, %v2858_v6  ;;  %2703 = vmatprep.mubr.msk.f32.mxu1 %vm2857_vm0, %v2858_v6  ;;  %v1245_v60 = vld [vmem:[%s4648_s3 + $0xf8] sm:$0xff] }
 0x162   :  { %v3994_v25 = vpop.f32.mrb[54].mxu0  ;;  %v3996_v40 = vpop.f32.mrb[54].mxu1 }
 0x163   :  { %4705 = vst [vmem:[#allocation7_spill] sm:$0xff] %v3994_v25  ;;  %4706 = vst [vmem:[#allocation8_spill] sm:$0xff] %v3996_v40  ;;  %v2156_v46 = vpop.f32.mrb[55].mxu0  ;;  %2525 = vmatmul.mubr.f32.gmra.mrb[160].mxu0 %v837_v32  ;;  %v2335_v5 = vpop.f32.mrb[55].mxu1  ;;  %2704 = vmatmul.mubr.f32.gmra.mrb[160].mxu1 %v1245_v60  ;;  %v839_v40 = vld [vmem:[%s4647_s2 + $0x108] sm:$0xff] }
 0x164   :  { %2527 = vmatprep.mubr.msk.f32.mxu0 %vm2857_vm0, %v2858_v6  ;;  %2706 = vmatprep.mubr.msk.f32.mxu1 %vm2857_vm0, %v2858_v6  ;;  %v1246_v46 = vld [vmem:[%s4648_s3 + $0x100] sm:$0xff] }
 0x166   :  { %v4010_v11 = vpop.f32.mrb[56].mxu0  ;;  %v4012_v14 = vpop.f32.mrb[56].mxu1 }
 0x167   :  { %4707 = vst [vmem:[#allocation9_spill] sm:$0xff] %v4010_v11  ;;  %4708 = vst [vmem:[#allocation10_spill] sm:$0xff] %v4012_v14  ;;  %v2159_v32 = vpop.f32.mrb[57].mxu0  ;;  %2528 = vmatmul.mubr.f32.gmra.mrb[162].mxu0 %v838_v18  ;;  %v2338_v5 = vpop.f32.mrb[57].mxu1  ;;  %2707 = vmatmul.mubr.f32.gmra.mrb[162].mxu1 %v1246_v46  ;;  %v840_v14 = vld [vmem:[%s4647_s2 + $0x110] sm:$0xff] }
 0x168   :  { %2530 = vmatprep.mubr.msk.f32.mxu0 %vm2857_vm0, %v2858_v6  ;;  %2709 = vmatprep.mubr.msk.f32.mxu1 %vm2857_vm0, %v2858_v6  ;;  %v1247_v32 = vld [vmem:[%s4648_s3 + $0x108] sm:$0xff] }
 0x16a   :  { %v4026_v25 = vpop.f32.mrb[58].mxu0  ;;  %v4028_v60 = vpop.f32.mrb[58].mxu1 }
 0x16b   :  { %4709 = vst [vmem:[#allocation11_spill] sm:$0xff] %v4026_v25  ;;  %4710 = vst [vmem:[#allocation12_spill] sm:$0xff] %v4028_v60  ;;  %v2162_v18 = vpop.f32.mrb[59].mxu0  ;;  %2531 = vmatmul.mubr.f32.gmra.mrb[164].mxu0 %v839_v40  ;;  %v2341_v5 = vpop.f32.mrb[59].mxu1  ;;  %2710 = vmatmul.mubr.f32.gmra.mrb[164].mxu1 %v1247_v32  ;;  %v841_v60 = vld [vmem:[%s4647_s2 + $0x118] sm:$0xff] }
 0x16c   :  { %2533 = vmatprep.mubr.msk.f32.mxu0 %vm2857_vm0, %v2858_v6  ;;  %2712 = vmatprep.mubr.msk.f32.mxu1 %vm2857_vm0, %v2858_v6  ;;  %v1248_v18 = vld [vmem:[%s4648_s3 + $0x110] sm:$0xff] }
 0x16e   :  { %v4042_v11 = vpop.f32.mrb[60].mxu0  ;;  %v4044_v46 = vpop.f32.mrb[60].mxu1 }
 0x16f   :  { %4711 = vst [vmem:[#allocation13_spill] sm:$0xff] %v4042_v11  ;;  %4712 = vst [vmem:[#allocation14_spill] sm:$0xff] %v4044_v46  ;;  %v2165_v40 = vpop.f32.mrb[61].mxu0  ;;  %2534 = vmatmul.mubr.f32.gmra.mrb[166].mxu0 %v840_v14  ;;  %v2344_v5 = vpop.f32.mrb[61].mxu1  ;;  %2713 = vmatmul.mubr.f32.gmra.mrb[166].mxu1 %v1248_v18  ;;  %v842_v46 = vld [vmem:[%s4647_s2 + $0x120] sm:$0xff] }
 0x170   :  { %2536 = vmatprep.mubr.msk.f32.mxu0 %vm2857_vm0, %v2858_v6  ;;  %2715 = vmatprep.mubr.msk.f32.mxu1 %vm2857_vm0, %v2858_v6  ;;  %v1249_v40 = vld [vmem:[%s4648_s3 + $0x118] sm:$0xff] }
 0x172   :  { %v4058_v25 = vpop.f32.mrb[62].mxu0  ;;  %v4060_v32 = vpop.f32.mrb[62].mxu1 }
 0x173   :  { %4713 = vst [vmem:[#allocation15_spill] sm:$0xff] %v4058_v25  ;;  %4714 = vst [vmem:[#allocation16_spill] sm:$0xff] %v4060_v32  ;;  %v2168_v14 = vpop.f32.mrb[63].mxu0  ;;  %2537 = vmatmul.mubr.f32.gmra.mrb[168].mxu0 %v841_v60  ;;  %v2347_v5 = vpop.f32.mrb[63].mxu1  ;;  %2716 = vmatmul.mubr.f32.gmra.mrb[168].mxu1 %v1249_v40  ;;  %v843_v32 = vld [vmem:[%s4647_s2 + $0x128] sm:$0xff] }
 0x174   :  { %2539 = vmatprep.mubr.msk.f32.mxu0 %vm2857_vm0, %v2858_v6  ;;  %2718 = vmatprep.mubr.msk.f32.mxu1 %vm2857_vm0, %v2858_v6  ;;  %v1250_v14 = vld [vmem:[%s4648_s3 + $0x120] sm:$0xff] }
 0x176   :  { %v4074_v11 = vpop.f32.mrb[64].mxu0  ;;  %v4076_v18 = vpop.f32.mrb[64].mxu1 }
 0x177   :  { %4715 = vst [vmem:[#allocation17_spill] sm:$0xff] %v4074_v11  ;;  %4716 = vst [vmem:[#allocation18_spill] sm:$0xff] %v4076_v18  ;;  %v2171_v60 = vpop.f32.mrb[65].mxu0  ;;  %2540 = vmatmul.mubr.f32.gmra.mrb[170].mxu0 %v842_v46  ;;  %v2350_v5 = vpop.f32.mrb[65].mxu1  ;;  %2719 = vmatmul.mubr.f32.gmra.mrb[170].mxu1 %v1250_v14  ;;  %v844_v18 = vld [vmem:[%s4647_s2 + $0x130] sm:$0xff] }
 0x178   :  { %2542 = vmatprep.mubr.msk.f32.mxu0 %vm2857_vm0, %v2858_v6  ;;  %2721 = vmatprep.mubr.msk.f32.mxu1 %vm2857_vm0, %v2858_v6  ;;  %v1251_v60 = vld [vmem:[%s4648_s3 + $0x128] sm:$0xff] }
 0x17a   :  { %v4090_v25 = vpop.f32.mrb[66].mxu0  ;;  %v4092_v40 = vpop.f32.mrb[66].mxu1 }
 0x17b   :  { %4717 = vst [vmem:[#allocation19_spill] sm:$0xff] %v4090_v25  ;;  %4718 = vst [vmem:[#allocation20_spill] sm:$0xff] %v4092_v40  ;;  %v2174_v46 = vpop.f32.mrb[67].mxu0  ;;  %2543 = vmatmul.mubr.f32.gmra.mrb[172].mxu0 %v843_v32  ;;  %v2353_v5 = vpop.f32.mrb[67].mxu1  ;;  %2722 = vmatmul.mubr.f32.gmra.mrb[172].mxu1 %v1251_v60  ;;  %v845_v40 = vld [vmem:[%s4647_s2 + $0x138] sm:$0xff] }
 0x17c   :  { %2545 = vmatprep.mubr.msk.f32.mxu0 %vm2857_vm0, %v2858_v6  ;;  %2724 = vmatprep.mubr.msk.f32.mxu1 %vm2857_vm0, %v2858_v6  ;;  %v1252_v46 = vld [vmem:[%s4648_s3 + $0x130] sm:$0xff] }
 0x17e   :  { %v4106_v11 = vpop.f32.mrb[68].mxu0  ;;  %v4108_v14 = vpop.f32.mrb[68].mxu1 }
 0x17f   :  { %4719 = vst [vmem:[#allocation21_spill] sm:$0xff] %v4106_v11  ;;  %4720 = vst [vmem:[#allocation22_spill] sm:$0xff] %v4108_v14  ;;  %v2177_v32 = vpop.f32.mrb[69].mxu0  ;;  %2546 = vmatmul.mubr.f32.gmra.mrb[174].mxu0 %v844_v18  ;;  %v2356_v5 = vpop.f32.mrb[69].mxu1  ;;  %2725 = vmatmul.mubr.f32.gmra.mrb[174].mxu1 %v1252_v46  ;;  %v846_v14 = vld [vmem:[%s4647_s2 + $0x140] sm:$0xff] }
 0x180   :  { %2548 = vmatprep.mubr.msk.f32.mxu0 %vm2857_vm0, %v2858_v6  ;;  %2727 = vmatprep.mubr.msk.f32.mxu1 %vm2857_vm0, %v2858_v6  ;;  %v1253_v32 = vld [vmem:[%s4648_s3 + $0x138] sm:$0xff] }
 0x182   :  { %v4122_v25 = vpop.f32.mrb[70].mxu0  ;;  %v4124_v60 = vpop.f32.mrb[70].mxu1 }
 0x183   :  { %4721 = vst [vmem:[#allocation23_spill] sm:$0xff] %v4122_v25  ;;  %4722 = vst [vmem:[#allocation24_spill] sm:$0xff] %v4124_v60  ;;  %v2180_v18 = vpop.f32.mrb[71].mxu0  ;;  %2549 = vmatmul.mubr.f32.gmra.mrb[176].mxu0 %v845_v40  ;;  %v2359_v5 = vpop.f32.mrb[71].mxu1  ;;  %2728 = vmatmul.mubr.f32.gmra.mrb[176].mxu1 %v1253_v32  ;;  %v847_v60 = vld [vmem:[%s4647_s2 + $0x148] sm:$0xff] }
 0x184   :  { %2551 = vmatprep.mubr.msk.f32.mxu0 %vm2857_vm0, %v2858_v6  ;;  %2730 = vmatprep.mubr.msk.f32.mxu1 %vm2857_vm0, %v2858_v6  ;;  %v1254_v18 = vld [vmem:[%s4648_s3 + $0x140] sm:$0xff] }
 0x186   :  { %v4138_v11 = vpop.f32.mrb[72].mxu0  ;;  %v4140_v46 = vpop.f32.mrb[72].mxu1 }
 0x187   :  { %4723 = vst [vmem:[#allocation25_spill] sm:$0xff] %v4138_v11  ;;  %4724 = vst [vmem:[#allocation26_spill] sm:$0xff] %v4140_v46  ;;  %v2183_v40 = vpop.f32.mrb[73].mxu0  ;;  %2552 = vmatmul.mubr.f32.gmra.mrb[178].mxu0 %v846_v14  ;;  %v2362_v5 = vpop.f32.mrb[73].mxu1  ;;  %2731 = vmatmul.mubr.f32.gmra.mrb[178].mxu1 %v1254_v18  ;;  %v848_v46 = vld [vmem:[%s4647_s2 + $0x150] sm:$0xff] }
 0x188   :  { %2554 = vmatprep.mubr.msk.f32.mxu0 %vm2857_vm0, %v2858_v6  ;;  %2733 = vmatprep.mubr.msk.f32.mxu1 %vm2857_vm0, %v2858_v6  ;;  %v1255_v40 = vld [vmem:[%s4648_s3 + $0x148] sm:$0xff] }
 0x18a   :  { %v4154_v25 = vpop.f32.mrb[74].mxu0  ;;  %v4156_v32 = vpop.f32.mrb[74].mxu1 }
 0x18b   :  { %4725 = vst [vmem:[#allocation27_spill] sm:$0xff] %v4154_v25  ;;  %4726 = vst [vmem:[#allocation28_spill] sm:$0xff] %v4156_v32  ;;  %v2186_v14 = vpop.f32.mrb[75].mxu0  ;;  %2555 = vmatmul.mubr.f32.gmra.mrb[180].mxu0 %v847_v60  ;;  %v2365_v5 = vpop.f32.mrb[75].mxu1  ;;  %2734 = vmatmul.mubr.f32.gmra.mrb[180].mxu1 %v1255_v40  ;;  %v849_v32 = vld [vmem:[%s4647_s2 + $0x158] sm:$0xff] }
 0x18c   :  { %2557 = vmatprep.mubr.msk.f32.mxu0 %vm2857_vm0, %v2858_v6  ;;  %2736 = vmatprep.mubr.msk.f32.mxu1 %vm2857_vm0, %v2858_v6  ;;  %v1256_v14 = vld [vmem:[%s4648_s3 + $0x150] sm:$0xff] }
 0x18e   :  { %v4170_v11 = vpop.f32.mrb[76].mxu0  ;;  %v4172_v18 = vpop.f32.mrb[76].mxu1 }
 0x18f   :  { %4727 = vst [vmem:[#allocation29_spill] sm:$0xff] %v4170_v11  ;;  %4728 = vst [vmem:[#allocation30_spill] sm:$0xff] %v4172_v18  ;;  %v2189_v60 = vpop.f32.mrb[77].mxu0  ;;  %2558 = vmatmul.mubr.f32.gmra.mrb[182].mxu0 %v848_v46  ;;  %v2368_v5 = vpop.f32.mrb[77].mxu1  ;;  %2737 = vmatmul.mubr.f32.gmra.mrb[182].mxu1 %v1256_v14  ;;  %v850_v18 = vld [vmem:[%s4647_s2 + $0x160] sm:$0xff] }
 0x190   :  { %2560 = vmatprep.mubr.msk.f32.mxu0 %vm2857_vm0, %v2858_v6  ;;  %2739 = vmatprep.mubr.msk.f32.mxu1 %vm2857_vm0, %v2858_v6  ;;  %v1257_v60 = vld [vmem:[%s4648_s3 + $0x158] sm:$0xff] }
 0x192   :  { %v4186_v25 = vpop.f32.mrb[78].mxu0  ;;  %v4188_v40 = vpop.f32.mrb[78].mxu1 }
 0x193   :  { %4729 = vst [vmem:[#allocation31_spill] sm:$0xff] %v4186_v25  ;;  %4730 = vst [vmem:[#allocation32_spill] sm:$0xff] %v4188_v40  ;;  %v2192_v46 = vpop.f32.mrb[79].mxu0  ;;  %2561 = vmatmul.mubr.f32.gmra.mrb[184].mxu0 %v849_v32  ;;  %v2371_v5 = vpop.f32.mrb[79].mxu1  ;;  %2740 = vmatmul.mubr.f32.gmra.mrb[184].mxu1 %v1257_v60  ;;  %v851_v40 = vld [vmem:[%s4647_s2 + $0x168] sm:$0xff] }
 0x194   :  { %2563 = vmatprep.mubr.msk.f32.mxu0 %vm2857_vm0, %v2858_v6  ;;  %2742 = vmatprep.mubr.msk.f32.mxu1 %vm2857_vm0, %v2858_v6  ;;  %v1258_v46 = vld [vmem:[%s4648_s3 + $0x160] sm:$0xff] }
 0x196   :  { %v4202_v11 = vpop.f32.mrb[80].mxu0  ;;  %v4204_v14 = vpop.f32.mrb[80].mxu1 }
 0x197   :  { %4731 = vst [vmem:[#allocation33_spill] sm:$0xff] %v4202_v11  ;;  %4732 = vst [vmem:[#allocation34_spill] sm:$0xff] %v4204_v14  ;;  %v2195_v32 = vpop.f32.mrb[81].mxu0  ;;  %2564 = vmatmul.mubr.f32.gmra.mrb[186].mxu0 %v850_v18  ;;  %v2374_v5 = vpop.f32.mrb[81].mxu1  ;;  %2743 = vmatmul.mubr.f32.gmra.mrb[186].mxu1 %v1258_v46  ;;  %v852_v14 = vld [vmem:[%s4647_s2 + $0x170] sm:$0xff] }
 0x198   :  { %2566 = vmatprep.mubr.msk.f32.mxu0 %vm2857_vm0, %v2858_v6  ;;  %2745 = vmatprep.mubr.msk.f32.mxu1 %vm2857_vm0, %v2858_v6  ;;  %v1259_v32 = vld [vmem:[%s4648_s3 + $0x168] sm:$0xff] }
 0x19a   :  { %v4218_v25 = vpop.f32.mrb[82].mxu0  ;;  %v4220_v60 = vpop.f32.mrb[82].mxu1 }
 0x19b   :  { %4733 = vst [vmem:[#allocation35_spill] sm:$0xff] %v4218_v25  ;;  %4734 = vst [vmem:[#allocation36_spill] sm:$0xff] %v4220_v60  ;;  %v2198_v18 = vpop.f32.mrb[83].mxu0  ;;  %2567 = vmatmul.mubr.f32.gmra.mrb[188].mxu0 %v851_v40  ;;  %v2377_v5 = vpop.f32.mrb[83].mxu1  ;;  %2746 = vmatmul.mubr.f32.gmra.mrb[188].mxu1 %v1259_v32  ;;  %v853_v60 = vld [vmem:[%s4647_s2 + $0x178] sm:$0xff] }
 0x19c   :  { %2569 = vmatprep.mubr.msk.f32.mxu0 %vm2857_vm0, %v2858_v6  ;;  %2748 = vmatprep.mubr.msk.f32.mxu1 %vm2857_vm0, %v2858_v6  ;;  %v1260_v18 = vld [vmem:[%s4648_s3 + $0x170] sm:$0xff] }
 0x19e   :  { %v4234_v11 = vpop.f32.mrb[84].mxu0  ;;  %v4236_v46 = vpop.f32.mrb[84].mxu1 }
 0x19f   :  { %4735 = vst [vmem:[#allocation37_spill] sm:$0xff] %v4234_v11  ;;  %4736 = vst [vmem:[#allocation38_spill] sm:$0xff] %v4236_v46  ;;  %v2201_v40 = vpop.f32.mrb[85].mxu0  ;;  %2570 = vmatmul.mubr.f32.gmra.mrb[190].mxu0 %v852_v14  ;;  %v2380_v5 = vpop.f32.mrb[85].mxu1  ;;  %2749 = vmatmul.mubr.f32.gmra.mrb[190].mxu1 %v1260_v18  ;;  %v854_v46 = vld [vmem:[%s4647_s2 + $0x180] sm:$0xff] }
 0x1a0   :  { %2572 = vmatprep.mubr.msk.f32.mxu0 %vm2857_vm0, %v2858_v6  ;;  %2751 = vmatprep.mubr.msk.f32.mxu1 %vm2857_vm0, %v2858_v6  ;;  %v1261_v40 = vld [vmem:[%s4648_s3 + $0x178] sm:$0xff] }
 0x1a2   :  { %v4250_v25 = vpop.f32.mrb[86].mxu0  ;;  %v4252_v32 = vpop.f32.mrb[86].mxu1 }
 0x1a3   :  { %4737 = vst [vmem:[#allocation39_spill] sm:$0xff] %v4250_v25  ;;  %4738 = vst [vmem:[#allocation40_spill] sm:$0xff] %v4252_v32  ;;  %v2204_v14 = vpop.f32.mrb[87].mxu0  ;;  %2573 = vmatmul.mubr.f32.gmra.mrb[192].mxu0 %v853_v60  ;;  %v2383_v5 = vpop.f32.mrb[87].mxu1  ;;  %2752 = vmatmul.mubr.f32.gmra.mrb[192].mxu1 %v1261_v40 }
 0x1a4   :  { %2575 = vmatprep.mubr.msk.f32.mxu0 %vm2857_vm0, %v2858_v6  ;;  %2754 = vmatprep.mubr.msk.f32.mxu1 %vm2857_vm0, %v2858_v6  ;;  %v1262_v14 = vld [vmem:[%s4648_s3 + $0x180] sm:$0xff] }
 0x1a6   :  { %v4266_v11 = vpop.f32.mrb[88].mxu0  ;;  %v4268_v18 = vpop.f32.mrb[88].mxu1 }
 0x1a7   :  { %4739 = vst [vmem:[#allocation41_spill] sm:$0xff] %v4266_v11  ;;  %4740 = vst [vmem:[#allocation42_spill] sm:$0xff] %v4268_v18  ;;  %v2207_v60 = vpop.f32.mrb[89].mxu0  ;;  %2576 = vmatmul.mubr.f32.gmra.mrb[194].mxu0 %v854_v46  ;;  %v2386_v5 = vpop.f32.mrb[89].mxu1  ;;  %2755 = vmatmul.mubr.f32.gmra.mrb[194].mxu1 %v1262_v14 }
 0x1aa   :  { %v4272_v32 = vpop.f32.mrb[90].mxu0  ;;  %v4274_v25 = vpop.f32.mrb[90].mxu1 }
 0x1ab   :  { %4741 = vst [vmem:[#allocation43_spill] sm:$0xff] %v4272_v32  ;;  %4742 = vst [vmem:[#allocation44_spill] sm:$0xff] %v4274_v25  ;;  %v2210_v6 = vpop.f32.mrb[91].mxu0  ;;  %v2389_v39 = vpop.f32.mrb[91].mxu1 }
 0x1ae   :  { %v4278_v41 = vpop.f32.mrb[92].mxu0  ;;  %v4280_v53 = vpop.f32.mrb[92].mxu1 }
 0x1af   :  { %4743 = vst [vmem:[#allocation45_spill] sm:$0xff] %v4278_v41  ;;  %4744 = vst [vmem:[#allocation46_spill] sm:$0xff] %v4280_v53  ;;  %v2213_v60 = vpop.f32.mrb[93].mxu0  ;;  %v2392_v46 = vpop.f32.mrb[93].mxu1  ;;  %v4749_v53 = vmax.f32 %v3562_v8, %v3564_v9 }
 0x1b2   :  { %v4284_v5 = vpop.f32.mrb[94].mxu0  ;;  %v4286_v14 = vpop.f32.mrb[94].mxu1 }
 0x1b3   :  { %4745 = vst [vmem:[#allocation47_spill] sm:$0xff] %v4284_v5  ;;  %4746 = vst [vmem:[#allocation48_spill] sm:$0xff] %v4286_v14  ;;  %v2216_v18 = vpop.f32.mrb[95].mxu0  ;;  %v2395_v11 = vpop.f32.mrb[95].mxu1 }
 0x1b4   :  { %v4302_v11 = vld [vmem:[%s4649_s5] ss:$0 sm:$0xff] }
 0x1b6   :  { %v4290_v63 = vpop.f32.mrb[96].mxu0  ;;  %v4292_v39 = vpop.f32.mrb[96].mxu1 }
 0x1b7   :  { %4747 = vst [vmem:[#allocation49_spill] sm:$0xff] %v4290_v63  ;;  %4748 = vst [vmem:[#allocation50_spill] sm:$0xff] %v4292_v39  ;;  %v2219_v25 = vpop.f32.mrb[97].mxu0  ;;  %v2398_v32 = vpop.f32.mrb[97].mxu1 }
 0x1b8   :  { %v4750_v32 = vmax.f32 %v3578_v15, %v3580_v16 }
 0x1ba   :  { %v921_v40 = vpop.f32.mrb[98].mxu0  ;;  %v1329_v46 = vpop.f32.mrb[98].mxu1 }
 0x1bb   :  { %v1165_v41 = vmax.f32 %v4749_v53, %v921_v40  ;;  %v2433_v18 = vpop.f32.mrb[99].mxu0  ;;  %v2612_v28 = vpop.f32.mrb[99].mxu1  ;;  %v4751_v40 = vmax.f32 %v3594_v22, %v3596_v23 }
 0x1bd   :  { %v1573_v6 = vmax.f32 %v1165_v41, %v1329_v46 }
 0x1be   :  { %v926_v14 = vpop.f32.mrb[100].mxu0  ;;  %v1334_v25 = vpop.f32.mrb[100].mxu1 }
 0x1bf   :  { %v1629_v5 = vadd.f32 %v4302_v11, %v1573_v6  ;;  %v1166_v60 = vmax.f32 %v4750_v32, %v926_v14  ;;  %v2436_v39 = vpop.f32.mrb[101].mxu0  ;;  %v2615_v63 = vpop.f32.mrb[101].mxu1 }
 0x1c0   :  { %v4752_v39 = vmax.f32 %v3610_v29, %v3612_v30 }
 0x1c1   :  { %v1678_v8 = vmax.f32 %v1629_v5, 0.0  ;;  %v1574_v9 = vmax.f32 %v1166_v60, %v1334_v25 }
 0x1c2   :  { %v931_v53 = vpop.f32.mrb[102].mxu0  ;;  %v1339_v28 = vpop.f32.mrb[102].mxu1 }
 0x1c3   :  { %1727 = vst [vmem:[%s4650_s6] sm:$0xff] %v1678_v8  ;;  %v1630_v41 = vadd.f32 %v4302_v11, %v1574_v9  ;;  %v1167_v6 = vmax.f32 %v4751_v40, %v931_v53  ;;  %v2439_v46 = vpop.f32.mrb[103].mxu0  ;;  %v2618_v18 = vpop.f32.mrb[103].mxu1 }
 0x1c5   :  { %v1679_v15 = vmax.f32 %v1630_v41, 0.0  ;;  %v1575_v16 = vmax.f32 %v1167_v6, %v1339_v28  ;;  %v4753_v28 = vmax.f32 %v3626_v36, %v3628_v37 }
 0x1c6   :  { %v936_v14 = vpop.f32.mrb[104].mxu0  ;;  %v1344_v63 = vpop.f32.mrb[104].mxu1 }
 0x1c7   :  { %1728 = vst [vmem:[%s4650_s6 + $0x8] sm:$0xff] %v1679_v15  ;;  %v1631_v5 = vadd.f32 %v4302_v11, %v1575_v16  ;;  %v1168_v60 = vmax.f32 %v4752_v39, %v936_v14  ;;  %v2442_v25 = vpop.f32.mrb[105].mxu0  ;;  %v2621_v32 = vpop.f32.mrb[105].mxu1  ;;  %v4754_v16 = vmax.f32 %v3642_v43, %v3644_v44 }
 0x1c8   :  { %v4755_v32 = vmax.f32 %v3658_v50, %v3660_v51 }
 0x1c9   :  { %v1680_v22 = vmax.f32 %v1631_v5, 0.0  ;;  %v1576_v23 = vmax.f32 %v1168_v60, %v1344_v63 }
 0x1ca   :  { %v941_v8 = vpop.f32.mrb[106].mxu0  ;;  %v1349_v9 = vpop.f32.mrb[106].mxu1 }
 0x1cb   :  { %1729 = vst [vmem:[%s4650_s6 + $0x10] sm:$0xff] %v1680_v22  ;;  %v1632_v53 = vadd.f32 %v4302_v11, %v1576_v23  ;;  %v1169_v41 = vmax.f32 %v4753_v28, %v941_v8  ;;  %v2445_v40 = vpop.f32.mrb[107].mxu0  ;;  %v2624_v6 = vpop.f32.mrb[107].mxu1 }
 0x1cd   :  { %v1681_v29 = vmax.f32 %v1632_v53, 0.0  ;;  %v1577_v30 = vmax.f32 %v1169_v41, %v1349_v9  ;;  %v4756_v41 = vmax.f32 %v3674_v57, %v3676_v58 }
 0x1ce   :  { %v946_v46 = vpop.f32.mrb[108].mxu0  ;;  %v1354_v18 = vpop.f32.mrb[108].mxu1 }
 0x1cf   :  { %1730 = vst [vmem:[%s4650_s6 + $0x18] sm:$0xff] %v1681_v29  ;;  %v1633_v15 = vadd.f32 %v4302_v11, %v1577_v30  ;;  %v1170_v14 = vmax.f32 %v4754_v16, %v946_v46  ;;  %v2448_v63 = vpop.f32.mrb[109].mxu0  ;;  %v2627_v5 = vpop.f32.mrb[109].mxu1 }
 0x1d1   :  { %v1682_v36 = vmax.f32 %v1633_v15, 0.0  ;;  %v1578_v37 = vmax.f32 %v1170_v14, %v1354_v18  ;;  %v4757_v15 = vmax.f32 %v3690_v0, %v3692_v1 }
 0x1d2   :  { %v951_v39 = vpop.f32.mrb[110].mxu0  ;;  %v1359_v60 = vpop.f32.mrb[110].mxu1 }
 0x1d3   :  { %1731 = vst [vmem:[%s4650_s6 + $0x20] sm:$0xff] %v1682_v36  ;;  %v1634_v25 = vadd.f32 %v4302_v11, %v1578_v37  ;;  %v1171_v22 = vmax.f32 %v4755_v32, %v951_v39  ;;  %v2451_v23 = vpop.f32.mrb[111].mxu0  ;;  %v2630_v8 = vpop.f32.mrb[111].mxu1  ;;  %v4758_v39 = vmax.f32 %v3706_v10, %v3708_v12 }
 0x1d5   :  { %v1683_v43 = vmax.f32 %v1634_v25, 0.0  ;;  %v1579_v44 = vmax.f32 %v1171_v22, %v1359_v60 }
 0x1d6   :  { %v956_v9 = vpop.f32.mrb[112].mxu0  ;;  %v1364_v53 = vpop.f32.mrb[112].mxu1 }
 0x1d7   :  { %1732 = vst [vmem:[%s4650_s6 + $0x28] sm:$0xff] %v1683_v43  ;;  %v1635_v28 = vadd.f32 %v4302_v11, %v1579_v44  ;;  %v1172_v40 = vmax.f32 %v4756_v41, %v956_v9  ;;  %v2454_v6 = vpop.f32.mrb[113].mxu0  ;;  %v2633_v29 = vpop.f32.mrb[113].mxu1  ;;  %v4759_v43 = vmax.f32 %v3722_v21, %v3724_v24 }
 0x1d8   :  { %v4760_v6 = vmax.f32 %v3738_v34, %v3740_v35 }
 0x1d9   :  { %v1684_v50 = vmax.f32 %v1635_v28, 0.0  ;;  %v1580_v51 = vmax.f32 %v1172_v40, %v1364_v53 }
 0x1da   :  { %v961_v30 = vpop.f32.mrb[114].mxu0  ;;  %v1369_v46 = vpop.f32.mrb[114].mxu1 }
 0x1db   :  { %1733 = vst [vmem:[%s4650_s6 + $0x30] sm:$0xff] %v1684_v50  ;;  %v1636_v18 = vadd.f32 %v4302_v11, %v1580_v51  ;;  %v1173_v16 = vmax.f32 %v4757_v15, %v961_v30  ;;  %v2457_v14 = vpop.f32.mrb[115].mxu0  ;;  %v2636_v63 = vpop.f32.mrb[115].mxu1  ;;  %v4761_v15 = vmax.f32 %v3754_v47, %v3756_v48 }
 0x1dd   :  { %v1685_v57 = vmax.f32 %v1636_v18, 0.0  ;;  %v1581_v58 = vmax.f32 %v1173_v16, %v1369_v46 }
 0x1de   :  { %v966_v5 = vpop.f32.mrb[116].mxu0  ;;  %v1374_v36 = vpop.f32.mrb[116].mxu1 }
 0x1df   :  { %1734 = vst [vmem:[%s4650_s6 + $0x38] sm:$0xff] %v1685_v57  ;;  %v1637_v37 = vadd.f32 %v4302_v11, %v1581_v58  ;;  %v1174_v60 = vmax.f32 %v4758_v39, %v966_v5  ;;  %v2460_v25 = vpop.f32.mrb[117].mxu0  ;;  %v2639_v32 = vpop.f32.mrb[117].mxu1 }
 0x1e1   :  { %v1686_v0 = vmax.f32 %v1637_v37, 0.0  ;;  %v1582_v1 = vmax.f32 %v1174_v60, %v1374_v36  ;;  %v4762_v36 = vmax.f32 %v3770_v59, %v3772_v61 }
 0x1e2   :  { %v971_v22 = vpop.f32.mrb[118].mxu0  ;;  %v1379_v23 = vpop.f32.mrb[118].mxu1 }
 0x1e3   :  { %1735 = vst [vmem:[%s4650_s6 + $0x40] sm:$0xff] %v1686_v0  ;;  %v1638_v8 = vadd.f32 %v4302_v11, %v1582_v1  ;;  %v1175_v44 = vmax.f32 %v4759_v43, %v971_v22  ;;  %v2463_v9 = vpop.f32.mrb[119].mxu0  ;;  %v2642_v53 = vpop.f32.mrb[119].mxu1  ;;  %v4763_v1 = vmax.f32 %v3786_v7, %v3788_v13 }
 0x1e4   :  { %v4764_v53 = vmax.f32 %v3802_v31, %v3804_v33 }
 0x1e5   :  { %v1687_v10 = vmax.f32 %v1638_v8, 0.0  ;;  %v1583_v12 = vmax.f32 %v1175_v44, %v1379_v23 }
 0x1e6   :  { %v976_v28 = vpop.f32.mrb[120].mxu0  ;;  %v1384_v41 = vpop.f32.mrb[120].mxu1 }
 0x1e7   :  { %1736 = vst [vmem:[%s4650_s6 + $0x48] sm:$0xff] %v1687_v10  ;;  %v1639_v40 = vadd.f32 %v4302_v11, %v1583_v12  ;;  %v1176_v29 = vmax.f32 %v4760_v6, %v976_v28  ;;  %v2466_v50 = vpop.f32.mrb[121].mxu0  ;;  %v2645_v51 = vpop.f32.mrb[121].mxu1 }
 0x1e9   :  { %v1688_v21 = vmax.f32 %v1639_v40, 0.0  ;;  %v1584_v24 = vmax.f32 %v1176_v29, %v1384_v41  ;;  %v4765_v29 = vmax.f32 %v3818_v54, %v3820_v55 }
 0x1ea   :  { %v981_v30 = vpop.f32.mrb[122].mxu0  ;;  %v1389_v46 = vpop.f32.mrb[122].mxu1 }
 0x1eb   :  { %1737 = vst [vmem:[%s4650_s6 + $0x50] sm:$0xff] %v1688_v21  ;;  %v1640_v18 = vadd.f32 %v4302_v11, %v1584_v24  ;;  %v1177_v16 = vmax.f32 %v4761_v15, %v981_v30  ;;  %v2469_v14 = vpop.f32.mrb[123].mxu0  ;;  %v2648_v63 = vpop.f32.mrb[123].mxu1 }
 0x1ed   :  { %v1689_v34 = vmax.f32 %v1640_v18, 0.0  ;;  %v1585_v35 = vmax.f32 %v1177_v16, %v1389_v46  ;;  %v4766_v18 = vmax.f32 %v3834_v17, %v3836_v20 }
 0x1ee   :  { %v986_v57 = vpop.f32.mrb[124].mxu0  ;;  %v1394_v58 = vpop.f32.mrb[124].mxu1 }
 0x1ef   :  { %1738 = vst [vmem:[%s4650_s6 + $0x58] sm:$0xff] %v1689_v34  ;;  %v1641_v5 = vadd.f32 %v4302_v11, %v1585_v35  ;;  %v1178_v37 = vmax.f32 %v4762_v36, %v986_v57  ;;  %v2472_v39 = vpop.f32.mrb[125].mxu0  ;;  %v2651_v60 = vpop.f32.mrb[125].mxu1  ;;  %v4767_v57 = vmax.f32 %v3850_v49, %v3852_v56 }
 0x1f1   :  { %v1690_v47 = vmax.f32 %v1641_v5, 0.0  ;;  %v1586_v48 = vmax.f32 %v1178_v37, %v1394_v58 }
 0x1f2   :  { %v991_v25 = vpop.f32.mrb[126].mxu0  ;;  %v1399_v32 = vpop.f32.mrb[126].mxu1 }
 0x1f3   :  { %1739 = vst [vmem:[%s4650_s6 + $0x60] sm:$0xff] %v1690_v47  ;;  %v1642_v0 = vadd.f32 %v4302_v11, %v1586_v48  ;;  %v1179_v22 = vmax.f32 %v4763_v1, %v991_v25  ;;  %v2475_v23 = vpop.f32.mrb[127].mxu0  ;;  %v2654_v8 = vpop.f32.mrb[127].mxu1  ;;  %v4768_v47 = vmax.f32 %v3866_v2, %v3868_v4 }
 0x1f4   :  { %v4769_v23 = vmax.f32 %v3882_v62, %v3884_v45 }
 0x1f5   :  { %v1691_v59 = vmax.f32 %v1642_v0, 0.0  ;;  %v1587_v61 = vmax.f32 %v1179_v22, %v1399_v32 }
 0x1f6   :  { %v996_v43 = vpop.f32.mrb[128].mxu0  ;;  %v1404_v44 = vpop.f32.mrb[128].mxu1 }
 0x1f7   :  { %1740 = vst [vmem:[%s4650_s6 + $0x68] sm:$0xff] %v1691_v59  ;;  %v1643_v9 = vadd.f32 %v4302_v11, %v1587_v61  ;;  %v1180_v10 = vmax.f32 %v4764_v53, %v996_v43  ;;  %v2478_v12 = vpop.f32.mrb[129].mxu0  ;;  %v2657_v28 = vpop.f32.mrb[129].mxu1  ;;  %v4770_v53 = vmax.f32 %v3898_v19, %v3900_v38 }
 0x1f9   :  { %v1692_v7 = vmax.f32 %v1643_v9, 0.0  ;;  %v1588_v13 = vmax.f32 %v1180_v10, %v1404_v44 }
 0x1fa   :  { %v1001_v41 = vpop.f32.mrb[130].mxu0  ;;  %v1409_v40 = vpop.f32.mrb[130].mxu1 }
 0x1fb   :  { %1741 = vst [vmem:[%s4650_s6 + $0x70] sm:$0xff] %v1692_v7  ;;  %v1644_v6 = vadd.f32 %v4302_v11, %v1588_v13  ;;  %v1181_v50 = vmax.f32 %v4765_v29, %v1001_v41  ;;  %v2481_v51 = vpop.f32.mrb[131].mxu0  ;;  %v2660_v21 = vpop.f32.mrb[131].mxu1 }
 0x1fd   :  { %v1693_v31 = vmax.f32 %v1644_v6, 0.0  ;;  %v1589_v33 = vmax.f32 %v1181_v50, %v1409_v40  ;;  %v4771_v40 = vmax.f32 %v3914_v52, %v3916_v42 }
 0x1fe   :  { %v1006_v24 = vpop.f32.mrb[132].mxu0  ;;  %v1414_v30 = vpop.f32.mrb[132].mxu1 }
 0x1ff   :  { %1742 = vst [vmem:[%s4650_s6 + $0x78] sm:$0xff] %v1693_v31  ;;  %v1645_v46 = vadd.f32 %v4302_v11, %v1589_v33  ;;  %v1182_v15 = vmax.f32 %v4766_v18, %v1006_v24  ;;  %v2484_v16 = vpop.f32.mrb[133].mxu0  ;;  %v2663_v14 = vpop.f32.mrb[133].mxu1  ;;  %v4772_v33 = vmax.f32 %v3930_v27, %v3932_v26 }
 0x200   :  { %v4773_v14 = vld [vmem:[#allocation2_spill] sm:$0xff] }
 0x201   :  { %v1694_v54 = vmax.f32 %v1645_v46, 0.0  ;;  %v1590_v55 = vmax.f32 %v1182_v15, %v1414_v30 }
 0x202   :  { %v1011_v63 = vpop.f32.mrb[134].mxu0  ;;  %v1419_v34 = vpop.f32.mrb[134].mxu1 }
 0x203   :  { %1743 = vst [vmem:[%s4650_s6 + $0x80] sm:$0xff] %v1694_v54  ;;  %v1646_v35 = vadd.f32 %v4302_v11, %v1590_v55  ;;  %v1183_v58 = vmax.f32 %v4767_v57, %v1011_v63  ;;  %v2487_v5 = vpop.f32.mrb[135].mxu0  ;;  %v2666_v36 = vpop.f32.mrb[135].mxu1  ;;  %v4774_v54 = vmax.f32 %v3946_v3, %v4773_v14 }
 0x204   :  { %v4775_v5 = vld [vmem:[#allocation3_spill] sm:$0xff]  ;;  %v4776_v36 = vld [vmem:[#allocation4_spill] sm:$0xff] }
 0x205   :  { %v1695_v17 = vmax.f32 %v1646_v35, 0.0  ;;  %v1591_v20 = vmax.f32 %v1183_v58, %v1419_v34 }
 0x206   :  { %v1016_v37 = vpop.f32.mrb[136].mxu0  ;;  %v1424_v39 = vpop.f32.mrb[136].mxu1 }
 0x207   :  { %1744 = vst [vmem:[%s4650_s6 + $0x88] sm:$0xff] %v1695_v17  ;;  %v1647_v60 = vadd.f32 %v4302_v11, %v1591_v20  ;;  %v1184_v48 = vmax.f32 %v4768_v47, %v1016_v37  ;;  %v2490_v25 = vpop.f32.mrb[137].mxu0  ;;  %v2669_v32 = vpop.f32.mrb[137].mxu1  ;;  %v4777_v17 = vmax.f32 %v4775_v5, %v4776_v36 }
 0x208   :  { %v4778_v32 = vld [vmem:[#allocation5_spill] sm:$0xff] }
 0x209   :  { %v1696_v49 = vmax.f32 %v1647_v60, 0.0  ;;  %v1592_v56 = vmax.f32 %v1184_v48, %v1424_v39 }
 0x20a   :  { %v1021_v0 = vpop.f32.mrb[138].mxu0  ;;  %v1429_v1 = vpop.f32.mrb[138].mxu1 }
 0x20b   :  { %1745 = vst [vmem:[%s4650_s6 + $0x90] sm:$0xff] %v1696_v49  ;;  %v1648_v22 = vadd.f32 %v4302_v11, %v1592_v56  ;;  %v1185_v8 = vmax.f32 %v4769_v23, %v1021_v0  ;;  %v2493_v59 = vpop.f32.mrb[139].mxu0  ;;  %v2672_v61 = vpop.f32.mrb[139].mxu1  ;;  %v4779_v49 = vld [vmem:[#allocation6_spill] sm:$0xff] }
 0x20c   :  { %v4780_v56 = vmax.f32 %v4778_v32, %v4779_v49 }
 0x20d   :  { %v1697_v4 = vmax.f32 %v1648_v22, 0.0  ;;  %v1593_v2 = vmax.f32 %v1185_v8, %v1429_v1 }
 0x20e   :  { %v1026_v43 = vpop.f32.mrb[140].mxu0  ;;  %v1434_v44 = vpop.f32.mrb[140].mxu1 }
 0x20f   :  { %1746 = vst [vmem:[%s4650_s6 + $0x98] sm:$0xff] %v1697_v4  ;;  %v1649_v9 = vadd.f32 %v4302_v11, %v1593_v2  ;;  %v1186_v10 = vmax.f32 %v4770_v53, %v1026_v43  ;;  %v2496_v12 = vpop.f32.mrb[141].mxu0  ;;  %v2675_v28 = vpop.f32.mrb[141].mxu1  ;;  %v4781_v2 = vld [vmem:[#allocation7_spill] sm:$0xff]  ;;  %v4782_v43 = vld [vmem:[#allocation8_spill] sm:$0xff] }
 0x211   :  { %v1698_v62 = vmax.f32 %v1649_v9, 0.0  ;;  %v1594_v45 = vmax.f32 %v1186_v10, %v1434_v44  ;;  %v4783_v44 = vmax.f32 %v4781_v2, %v4782_v43 }
 0x212   :  { %v1031_v7 = vpop.f32.mrb[142].mxu0  ;;  %v1439_v13 = vpop.f32.mrb[142].mxu1 }
 0x213   :  { %1747 = vst [vmem:[%s4650_s6 + $0xa0] sm:$0xff] %v1698_v62  ;;  %v1650_v41 = vadd.f32 %v4302_v11, %v1594_v45  ;;  %v1187_v6 = vmax.f32 %v4771_v40, %v1031_v7  ;;  %v2499_v29 = vpop.f32.mrb[143].mxu0  ;;  %v2678_v50 = vpop.f32.mrb[143].mxu1 }
 0x215   :  { %v1699_v19 = vmax.f32 %v1650_v41, 0.0  ;;  %v1595_v38 = vmax.f32 %v1187_v6, %v1439_v13  ;;  %v4784_v13 = vld [vmem:[#allocation9_spill] sm:$0xff]  ;;  %v4785_v41 = vld [vmem:[#allocation10_spill] sm:$0xff] }
 0x216   :  { %v1036_v51 = vpop.f32.mrb[144].mxu0  ;;  %v1444_v21 = vpop.f32.mrb[144].mxu1  ;;  %v4786_v40 = vmax.f32 %v4784_v13, %v4785_v41 }
 0x217   :  { %1748 = vst [vmem:[%s4650_s6 + $0xa8] sm:$0xff] %v1699_v19  ;;  %v1651_v31 = vadd.f32 %v4302_v11, %v1595_v38  ;;  %v1188_v24 = vmax.f32 %v4772_v33, %v1036_v51  ;;  %v2502_v30 = vpop.f32.mrb[145].mxu0  ;;  %v2681_v46 = vpop.f32.mrb[145].mxu1  ;;  %v4787_v33 = vld [vmem:[#allocation11_spill] sm:$0xff] }
 0x219   :  { %v1700_v52 = vmax.f32 %v1651_v31, 0.0  ;;  %v1596_v42 = vmax.f32 %v1188_v24, %v1444_v21  ;;  %v4788_v24 = vld [vmem:[#allocation12_spill] sm:$0xff] }
 0x21a   :  { %v1041_v18 = vpop.f32.mrb[146].mxu0  ;;  %v1449_v15 = vpop.f32.mrb[146].mxu1  ;;  %v4789_v30 = vmax.f32 %v4787_v33, %v4788_v24 }
 0x21b   :  { %1749 = vst [vmem:[%s4650_s6 + $0xb0] sm:$0xff] %v1700_v52  ;;  %v1652_v16 = vadd.f32 %v4302_v11, %v1596_v42  ;;  %v1189_v55 = vmax.f32 %v4774_v54, %v1041_v18  ;;  %v2505_v63 = vpop.f32.mrb[147].mxu0  ;;  %v2684_v34 = vpop.f32.mrb[147].mxu1 }
 0x21c   :  { %v4791_v63 = vld [vmem:[#allocation14_spill] sm:$0xff] }
 0x21d   :  { %v1701_v27 = vmax.f32 %v1652_v16, 0.0  ;;  %v1597_v26 = vmax.f32 %v1189_v55, %v1449_v15  ;;  %v4790_v55 = vld [vmem:[#allocation13_spill] sm:$0xff] }
 0x21e   :  { %v1046_v35 = vpop.f32.mrb[148].mxu0  ;;  %v1454_v57 = vpop.f32.mrb[148].mxu1  ;;  %v4792_v34 = vmax.f32 %v4790_v55, %v4791_v63 }
 0x21f   :  { %1750 = vst [vmem:[%s4650_s6 + $0xb8] sm:$0xff] %v1701_v27  ;;  %v1653_v58 = vadd.f32 %v4302_v11, %v1597_v26  ;;  %v1190_v20 = vmax.f32 %v4777_v17, %v1046_v35  ;;  %v2508_v37 = vpop.f32.mrb[149].mxu0  ;;  %v2687_v39 = vpop.f32.mrb[149].mxu1 }
 0x220   :  { %v4794_v37 = vld [vmem:[#allocation16_spill] sm:$0xff] }
 0x221   :  { %v1702_v3 = vmax.f32 %v1653_v58, 0.0  ;;  %v1598_v60 = vmax.f32 %v1190_v20, %v1454_v57  ;;  %v4793_v20 = vld [vmem:[#allocation15_spill] sm:$0xff] }
 0x222   :  { %v1051_v47 = vpop.f32.mrb[150].mxu0  ;;  %v1459_v48 = vpop.f32.mrb[150].mxu1  ;;  %v4795_v39 = vmax.f32 %v4793_v20, %v4794_v37 }
 0x223   :  { %1751 = vst [vmem:[%s4650_s6 + $0xc0] sm:$0xff] %v1702_v3  ;;  %v1654_v25 = vadd.f32 %v4302_v11, %v1598_v60  ;;  %v1191_v0 = vmax.f32 %v4780_v56, %v1051_v47  ;;  %v2511_v1 = vpop.f32.mrb[151].mxu0  ;;  %v2690_v22 = vpop.f32.mrb[151].mxu1 }
 0x224   :  { %v4797_v1 = vld [vmem:[#allocation18_spill] sm:$0xff] }
 0x225   :  { %v1703_v23 = vmax.f32 %v1654_v25, 0.0  ;;  %v1599_v8 = vmax.f32 %v1191_v0, %v1459_v48  ;;  %v4796_v0 = vld [vmem:[#allocation17_spill] sm:$0xff] }
 0x226   :  { %v1056_v59 = vpop.f32.mrb[152].mxu0  ;;  %v1464_v61 = vpop.f32.mrb[152].mxu1  ;;  %v4798_v22 = vmax.f32 %v4796_v0, %v4797_v1 }
 0x227   :  { %1752 = vst [vmem:[%s4650_s6 + $0xc8] sm:$0xff] %v1703_v23  ;;  %v1655_v4 = vadd.f32 %v4302_v11, %v1599_v8  ;;  %v1192_v9 = vmax.f32 %v4783_v44, %v1056_v59  ;;  %v2514_v53 = vpop.f32.mrb[153].mxu0  ;;  %v2693_v10 = vpop.f32.mrb[153].mxu1 }
 0x228   :  { %v4800_v53 = vld [vmem:[#allocation20_spill] sm:$0xff] }
 0x229   :  { %v1704_v12 = vmax.f32 %v1655_v4, 0.0  ;;  %v1600_v28 = vmax.f32 %v1192_v9, %v1464_v61  ;;  %v4799_v9 = vld [vmem:[#allocation19_spill] sm:$0xff] }
 0x22a   :  { %v1061_v62 = vpop.f32.mrb[154].mxu0  ;;  %v1469_v45 = vpop.f32.mrb[154].mxu1  ;;  %v4801_v10 = vmax.f32 %v4799_v9, %v4800_v53 }
 0x22b   :  { %1753 = vst [vmem:[%s4650_s6 + $0xd0] sm:$0xff] %v1704_v12  ;;  %v1656_v7 = vadd.f32 %v4302_v11, %v1600_v28  ;;  %v1193_v6 = vmax.f32 %v4786_v40, %v1061_v62  ;;  %v2517_v29 = vpop.f32.mrb[155].mxu0  ;;  %v2696_v50 = vpop.f32.mrb[155].mxu1 }
 0x22c   :  { %v4803_v29 = vld [vmem:[#allocation22_spill] sm:$0xff] }
 0x22d   :  { %v1705_v19 = vmax.f32 %v1656_v7, 0.0  ;;  %v1601_v38 = vmax.f32 %v1193_v6, %v1469_v45  ;;  %v4802_v6 = vld [vmem:[#allocation21_spill] sm:$0xff] }
 0x22e   :  { %v1066_v51 = vpop.f32.mrb[156].mxu0  ;;  %v1474_v21 = vpop.f32.mrb[156].mxu1  ;;  %v4804_v50 = vmax.f32 %v4802_v6, %v4803_v29 }
 0x22f   :  { %1754 = vst [vmem:[%s4650_s6 + $0xd8] sm:$0xff] %v1705_v19  ;;  %v1657_v31 = vadd.f32 %v4302_v11, %v1601_v38  ;;  %v1194_v46 = vmax.f32 %v4789_v30, %v1066_v51  ;;  %v2520_v52 = vpop.f32.mrb[157].mxu0  ;;  %v2699_v42 = vpop.f32.mrb[157].mxu1 }
 0x230   :  { %v4806_v52 = vld [vmem:[#allocation24_spill] sm:$0xff] }
 0x231   :  { %v1706_v18 = vmax.f32 %v1657_v31, 0.0  ;;  %v1602_v15 = vmax.f32 %v1194_v46, %v1474_v21  ;;  %v4805_v46 = vld [vmem:[#allocation23_spill] sm:$0xff] }
 0x232   :  { %v1071_v16 = vpop.f32.mrb[158].mxu0  ;;  %v1479_v14 = vpop.f32.mrb[158].mxu1  ;;  %v4807_v42 = vmax.f32 %v4805_v46, %v4806_v52 }
 0x233   :  { %1755 = vst [vmem:[%s4650_s6 + $0xe0] sm:$0xff] %v1706_v18  ;;  %v1658_v54 = vadd.f32 %v4302_v11, %v1602_v15  ;;  %v1195_v27 = vmax.f32 %v4792_v34, %v1071_v16  ;;  %v2523_v26 = vpop.f32.mrb[159].mxu0  ;;  %v2702_v35 = vpop.f32.mrb[159].mxu1 }
 0x234   :  { %v4809_v26 = vld [vmem:[#allocation26_spill] sm:$0xff] }
 0x235   :  { %v1707_v57 = vmax.f32 %v1658_v54, 0.0  ;;  %v1603_v58 = vmax.f32 %v1195_v27, %v1479_v14  ;;  %v4808_v27 = vld [vmem:[#allocation25_spill] sm:$0xff] }
 0x236   :  { %v1076_v5 = vpop.f32.mrb[160].mxu0  ;;  %v1484_v36 = vpop.f32.mrb[160].mxu1  ;;  %v4810_v35 = vmax.f32 %v4808_v27, %v4809_v26 }
 0x237   :  { %1756 = vst [vmem:[%s4650_s6 + $0xe8] sm:$0xff] %v1707_v57  ;;  %v1659_v17 = vadd.f32 %v4302_v11, %v1603_v58  ;;  %v1196_v3 = vmax.f32 %v4795_v39, %v1076_v5  ;;  %v2526_v60 = vpop.f32.mrb[161].mxu0  ;;  %v2705_v47 = vpop.f32.mrb[161].mxu1 }
 0x238   :  { %v4812_v60 = vld [vmem:[#allocation28_spill] sm:$0xff] }
 0x239   :  { %v1708_v48 = vmax.f32 %v1659_v17, 0.0  ;;  %v1604_v25 = vmax.f32 %v1196_v3, %v1484_v36  ;;  %v4811_v3 = vld [vmem:[#allocation27_spill] sm:$0xff] }
 0x23a   :  { %v1081_v32 = vpop.f32.mrb[162].mxu0  ;;  %v1489_v49 = vpop.f32.mrb[162].mxu1  ;;  %v4813_v47 = vmax.f32 %v4811_v3, %v4812_v60 }
 0x23b   :  { %1757 = vst [vmem:[%s4650_s6 + $0xf0] sm:$0xff] %v1708_v48  ;;  %v1660_v56 = vadd.f32 %v4302_v11, %v1604_v25  ;;  %v1197_v23 = vmax.f32 %v4798_v22, %v1081_v32  ;;  %v2529_v8 = vpop.f32.mrb[163].mxu0  ;;  %v2708_v59 = vpop.f32.mrb[163].mxu1 }
 0x23c   :  { %v4815_v8 = vld [vmem:[#allocation30_spill] sm:$0xff] }
 0x23d   :  { %v1709_v61 = vmax.f32 %v1660_v56, 0.0  ;;  %v1605_v4 = vmax.f32 %v1197_v23, %v1489_v49  ;;  %v4814_v23 = vld [vmem:[#allocation29_spill] sm:$0xff] }
 0x23e   :  { %v1086_v2 = vpop.f32.mrb[164].mxu0  ;;  %v1494_v43 = vpop.f32.mrb[164].mxu1  ;;  %v4816_v59 = vmax.f32 %v4814_v23, %v4815_v8 }
 0x23f   :  { %1758 = vst [vmem:[%s4650_s6 + $0xf8] sm:$0xff] %v1709_v61  ;;  %v1661_v44 = vadd.f32 %v4302_v11, %v1605_v4  ;;  %v1198_v12 = vmax.f32 %v4801_v10, %v1086_v2  ;;  %v2532_v28 = vpop.f32.mrb[165].mxu0  ;;  %v2711_v62 = vpop.f32.mrb[165].mxu1 }
 0x240   :  { %v4818_v28 = vld [vmem:[#allocation32_spill] sm:$0xff] }
 0x241   :  { %v1710_v45 = vmax.f32 %v1661_v44, 0.0  ;;  %v1606_v7 = vmax.f32 %v1198_v12, %v1494_v43  ;;  %v4817_v12 = vld [vmem:[#allocation31_spill] sm:$0xff] }
 0x242   :  { %v1091_v13 = vpop.f32.mrb[166].mxu0  ;;  %v1499_v41 = vpop.f32.mrb[166].mxu1  ;;  %v4819_v62 = vmax.f32 %v4817_v12, %v4818_v28 }
 0x243   :  { %1759 = vst [vmem:[%s4650_s6 + $0x100] sm:$0xff] %v1710_v45  ;;  %v1662_v40 = vadd.f32 %v4302_v11, %v1606_v7  ;;  %v1199_v19 = vmax.f32 %v4804_v50, %v1091_v13  ;;  %v2535_v38 = vpop.f32.mrb[167].mxu0  ;;  %v2714_v51 = vpop.f32.mrb[167].mxu1 }
 0x244   :  { %v4821_v38 = vld [vmem:[#allocation34_spill] sm:$0xff] }
 0x245   :  { %v1711_v21 = vmax.f32 %v1662_v40, 0.0  ;;  %v1607_v31 = vmax.f32 %v1199_v19, %v1499_v41  ;;  %v4820_v19 = vld [vmem:[#allocation33_spill] sm:$0xff] }
 0x246   :  { %v1096_v33 = vpop.f32.mrb[168].mxu0  ;;  %v1504_v24 = vpop.f32.mrb[168].mxu1  ;;  %v4822_v51 = vmax.f32 %v4820_v19, %v4821_v38 }
 0x247   :  { %1760 = vst [vmem:[%s4650_s6 + $0x108] sm:$0xff] %v1711_v21  ;;  %v1663_v30 = vadd.f32 %v4302_v11, %v1607_v31  ;;  %v1200_v18 = vmax.f32 %v4807_v42, %v1096_v33  ;;  %v2538_v15 = vpop.f32.mrb[169].mxu0  ;;  %v2717_v16 = vpop.f32.mrb[169].mxu1 }
 0x248   :  { %v4824_v15 = vld [vmem:[#allocation36_spill] sm:$0xff] }
 0x249   :  { %v1712_v14 = vmax.f32 %v1663_v30, 0.0  ;;  %v1608_v54 = vmax.f32 %v1200_v18, %v1504_v24  ;;  %v4823_v18 = vld [vmem:[#allocation35_spill] sm:$0xff] }
 0x24a   :  { %v1101_v55 = vpop.f32.mrb[170].mxu0  ;;  %v1509_v63 = vpop.f32.mrb[170].mxu1  ;;  %v4825_v16 = vmax.f32 %v4823_v18, %v4824_v15 }
 0x24b   :  { %1761 = vst [vmem:[%s4650_s6 + $0x110] sm:$0xff] %v1712_v14  ;;  %v1664_v34 = vadd.f32 %v4302_v11, %v1608_v54  ;;  %v1201_v57 = vmax.f32 %v4810_v35, %v1101_v55  ;;  %v2541_v58 = vpop.f32.mrb[171].mxu0  ;;  %v2720_v5 = vpop.f32.mrb[171].mxu1 }
 0x24c   :  { %v4827_v58 = vld [vmem:[#allocation38_spill] sm:$0xff] }
 0x24d   :  { %v1713_v36 = vmax.f32 %v1664_v34, 0.0  ;;  %v1609_v17 = vmax.f32 %v1201_v57, %v1509_v63  ;;  %v4826_v57 = vld [vmem:[#allocation37_spill] sm:$0xff] }
 0x24e   :  { %v1106_v20 = vpop.f32.mrb[172].mxu0  ;;  %v1514_v37 = vpop.f32.mrb[172].mxu1  ;;  %v4828_v5 = vmax.f32 %v4826_v57, %v4827_v58 }
 0x24f   :  { %1762 = vst [vmem:[%s4650_s6 + $0x118] sm:$0xff] %v1713_v36  ;;  %v1665_v39 = vadd.f32 %v4302_v11, %v1609_v17  ;;  %v1202_v48 = vmax.f32 %v4813_v47, %v1106_v20  ;;  %v2544_v25 = vpop.f32.mrb[173].mxu0  ;;  %v2723_v32 = vpop.f32.mrb[173].mxu1 }
 0x250   :  { %v4830_v25 = vld [vmem:[#allocation40_spill] sm:$0xff] }
 0x251   :  { %v1714_v49 = vmax.f32 %v1665_v39, 0.0  ;;  %v1610_v56 = vmax.f32 %v1202_v48, %v1514_v37  ;;  %v4829_v48 = vld [vmem:[#allocation39_spill] sm:$0xff] }
 0x252   :  { %v1111_v0 = vpop.f32.mrb[174].mxu0  ;;  %v1519_v1 = vpop.f32.mrb[174].mxu1  ;;  %v4831_v32 = vmax.f32 %v4829_v48, %v4830_v25 }
 0x253   :  { %1763 = vst [vmem:[%s4650_s6 + $0x120] sm:$0xff] %v1714_v49  ;;  %v1666_v22 = vadd.f32 %v4302_v11, %v1610_v56  ;;  %v1203_v61 = vmax.f32 %v4816_v59, %v1111_v0  ;;  %v2547_v4 = vpop.f32.mrb[175].mxu0  ;;  %v2726_v2 = vpop.f32.mrb[175].mxu1 }
 0x254   :  { %v4833_v4 = vld [vmem:[#allocation42_spill] sm:$0xff] }
 0x255   :  { %v1715_v43 = vmax.f32 %v1666_v22, 0.0  ;;  %v1611_v44 = vmax.f32 %v1203_v61, %v1519_v1  ;;  %v4832_v61 = vld [vmem:[#allocation41_spill] sm:$0xff] }
 0x256   :  { %v1116_v9 = vpop.f32.mrb[176].mxu0  ;;  %v1524_v53 = vpop.f32.mrb[176].mxu1  ;;  %v4834_v2 = vmax.f32 %v4832_v61, %v4833_v4 }
 0x257   :  { %1764 = vst [vmem:[%s4650_s6 + $0x128] sm:$0xff] %v1715_v43  ;;  %v1667_v10 = vadd.f32 %v4302_v11, %v1611_v44  ;;  %v1204_v45 = vmax.f32 %v4819_v62, %v1116_v9  ;;  %v2550_v7 = vpop.f32.mrb[177].mxu0  ;;  %v2729_v13 = vpop.f32.mrb[177].mxu1 }
 0x258   :  { %v4836_v7 = vld [vmem:[#allocation44_spill] sm:$0xff] }
 0x259   :  { %v1716_v41 = vmax.f32 %v1667_v10, 0.0  ;;  %v1612_v40 = vmax.f32 %v1204_v45, %v1524_v53  ;;  %v4835_v45 = vld [vmem:[#allocation43_spill] sm:$0xff] }
 0x25a   :  { %v1121_v6 = vpop.f32.mrb[178].mxu0  ;;  %v1529_v29 = vpop.f32.mrb[178].mxu1  ;;  %v4837_v13 = vmax.f32 %v4835_v45, %v4836_v7 }
 0x25b   :  { %1765 = vst [vmem:[%s4650_s6 + $0x130] sm:$0xff] %v1716_v41  ;;  %v1668_v50 = vadd.f32 %v4302_v11, %v1612_v40  ;;  %v1205_v21 = vmax.f32 %v4822_v51, %v1121_v6  ;;  %v2553_v31 = vpop.f32.mrb[179].mxu0  ;;  %v2732_v33 = vpop.f32.mrb[179].mxu1 }
 0x25c   :  { %v4839_v31 = vld [vmem:[#allocation46_spill] sm:$0xff] }
 0x25d   :  { %v1717_v24 = vmax.f32 %v1668_v50, 0.0  ;;  %v1613_v30 = vmax.f32 %v1205_v21, %v1529_v29  ;;  %v4838_v21 = vld [vmem:[#allocation45_spill] sm:$0xff] }
 0x25e   :  { %v1126_v46 = vpop.f32.mrb[180].mxu0  ;;  %v1534_v52 = vpop.f32.mrb[180].mxu1  ;;  %v4840_v33 = vmax.f32 %v4838_v21, %v4839_v31 }
 0x25f   :  { %1766 = vst [vmem:[%s4650_s6 + $0x138] sm:$0xff] %v1717_v24  ;;  %v1669_v42 = vadd.f32 %v4302_v11, %v1613_v30  ;;  %v1206_v14 = vmax.f32 %v4825_v16, %v1126_v46  ;;  %v2556_v54 = vpop.f32.mrb[181].mxu0  ;;  %v2735_v55 = vpop.f32.mrb[181].mxu1 }
 0x260   :  { %v4842_v54 = vld [vmem:[#allocation48_spill] sm:$0xff] }
 0x261   :  { %v1718_v63 = vmax.f32 %v1669_v42, 0.0  ;;  %v1614_v34 = vmax.f32 %v1206_v14, %v1534_v52  ;;  %v4841_v14 = vld [vmem:[#allocation47_spill] sm:$0xff] }
 0x262   :  { %v1131_v27 = vpop.f32.mrb[182].mxu0  ;;  %v1539_v26 = vpop.f32.mrb[182].mxu1  ;;  %v4843_v55 = vmax.f32 %v4841_v14, %v4842_v54 }
 0x263   :  { %1767 = vst [vmem:[%s4650_s6 + $0x140] sm:$0xff] %v1718_v63  ;;  %v1670_v35 = vadd.f32 %v4302_v11, %v1614_v34  ;;  %v1207_v36 = vmax.f32 %v4828_v5, %v1131_v27  ;;  %v2559_v17 = vpop.f32.mrb[183].mxu0  ;;  %v2738_v20 = vpop.f32.mrb[183].mxu1 }
 0x264   :  { %v4845_v17 = vld [vmem:[#allocation50_spill] sm:$0xff] }
 0x265   :  { %v1719_v37 = vmax.f32 %v1670_v35, 0.0  ;;  %v1615_v39 = vmax.f32 %v1207_v36, %v1539_v26  ;;  %v4844_v36 = vld [vmem:[#allocation49_spill] sm:$0xff] }
 0x266   :  { %v1136_v3 = vpop.f32.mrb[184].mxu0  ;;  %v1544_v60 = vpop.f32.mrb[184].mxu1  ;;  %v4846_v20 = vmax.f32 %v4844_v36, %v4845_v17 }
 0x267   :  { %1768 = vst [vmem:[%s4650_s6 + $0x148] sm:$0xff] %v1719_v37  ;;  %v1671_v47 = vadd.f32 %v4302_v11, %v1615_v39  ;;  %v1208_v49 = vmax.f32 %v4831_v32, %v1136_v3  ;;  %v2562_v56 = vpop.f32.mrb[185].mxu0  ;;  %v2741_v0 = vpop.f32.mrb[185].mxu1 }
 0x269   :  { %v1720_v1 = vmax.f32 %v1671_v47, 0.0  ;;  %v1616_v22 = vmax.f32 %v1208_v49, %v1544_v60 }
 0x26a   :  { %v1141_v23 = vpop.f32.mrb[186].mxu0  ;;  %v1549_v8 = vpop.f32.mrb[186].mxu1 }
 0x26b   :  { %1769 = vst [vmem:[%s4650_s6 + $0x150] sm:$0xff] %v1720_v1  ;;  %v1672_v59 = vadd.f32 %v4302_v11, %v1616_v22  ;;  %v1209_v43 = vmax.f32 %v4834_v2, %v1141_v23  ;;  %v2565_v44 = vpop.f32.mrb[187].mxu0  ;;  %v2744_v9 = vpop.f32.mrb[187].mxu1 }
 0x26d   :  { %v1721_v53 = vmax.f32 %v1672_v59, 0.0  ;;  %v1617_v10 = vmax.f32 %v1209_v43, %v1549_v8 }
 0x26e   :  { %v1146_v12 = vpop.f32.mrb[188].mxu0  ;;  %v1554_v28 = vpop.f32.mrb[188].mxu1 }
 0x26f   :  { %1770 = vst [vmem:[%s4650_s6 + $0x158] sm:$0xff] %v1721_v53  ;;  %v1673_v62 = vadd.f32 %v4302_v11, %v1617_v10  ;;  %v1210_v41 = vmax.f32 %v4837_v13, %v1146_v12  ;;  %v2568_v40 = vpop.f32.mrb[189].mxu0  ;;  %v2747_v6 = vpop.f32.mrb[189].mxu1 }
 0x271   :  { %v1722_v29 = vmax.f32 %v1673_v62, 0.0  ;;  %v1618_v50 = vmax.f32 %v1210_v41, %v1554_v28 }
 0x272   :  { %v1151_v19 = vpop.f32.mrb[190].mxu0  ;;  %v1559_v38 = vpop.f32.mrb[190].mxu1 }
 0x273   :  { %1771 = vst [vmem:[%s4650_s6 + $0x160] sm:$0xff] %v1722_v29  ;;  %v1674_v51 = vadd.f32 %v4302_v11, %v1618_v50  ;;  %v1211_v24 = vmax.f32 %v4840_v33, %v1151_v19  ;;  %v2571_v30 = vpop.f32.mrb[191].mxu0  ;;  %v2750_v46 = vpop.f32.mrb[191].mxu1 }
 0x275   :  { %v1723_v52 = vmax.f32 %v1674_v51, 0.0  ;;  %v1619_v42 = vmax.f32 %v1211_v24, %v1559_v38 }
 0x276   :  { %v1156_v18 = vpop.f32.mrb[192].mxu0  ;;  %v1564_v15 = vpop.f32.mrb[192].mxu1 }
 0x277   :  { %1772 = vst [vmem:[%s4650_s6 + $0x168] sm:$0xff] %v1723_v52  ;;  %v1675_v16 = vadd.f32 %v4302_v11, %v1619_v42  ;;  %v1212_v63 = vmax.f32 %v4843_v55, %v1156_v18  ;;  %v2574_v34 = vpop.f32.mrb[193].mxu0  ;;  %v2753_v27 = vpop.f32.mrb[193].mxu1 }
 0x279   :  { %v1724_v26 = vmax.f32 %v1675_v16, 0.0  ;;  %v1620_v35 = vmax.f32 %v1212_v63, %v1564_v15 }
 0x27a   :  { %v1161_v57 = vpop.f32.mrb[194].mxu0  ;;  %v1569_v58 = vpop.f32.mrb[194].mxu1 }
 0x27b   :  { %1773 = vst [vmem:[%s4650_s6 + $0x170] sm:$0xff] %v1724_v26  ;;  %v1676_v5 = vadd.f32 %v4302_v11, %v1620_v35  ;;  %v1213_v37 = vmax.f32 %v4846_v20, %v1161_v57  ;;  %v2577_v39 = vpop.f32.mrb[195].mxu0  ;;  %v2756_v3 = vpop.f32.mrb[195].mxu1 }
 0x27d   :  { %v1725_v60 = vmax.f32 %v1676_v5, 0.0  ;;  %v1621_v47 = vmax.f32 %v1213_v37, %v1569_v58 }
 0x27f   :  { %1774 = vst [vmem:[%s4650_s6 + $0x178] sm:$0xff] %v1725_v60  ;;  %v1677_v48 = vadd.f32 %v4302_v11, %v1621_v47 }
 0x281   :  { %v1726_v25 = vmax.f32 %v1677_v48, 0.0 }
 0x283   :  { %1775 = vst [vmem:[%s4650_s6 + $0x180] sm:$0xff] %v1726_v25 }

// kernel: net_forward.4
= control target key start
LH: loop header
LB: loop body
LE: loop exit
PB: predicated region body
PF: predicated region fallthrough
CT: control target
= control target key end

     0   :  { %s1366_s4 = inlined_call_operand.vmem [shape: f32[256,128], index: 4, kind: input, shape index: {}]   ;;  %s1367_s0 = inlined_call_operand.vmem [shape: f32[50,256], index: 0, kind: input, shape index: {}]   ;;  %s1368_s1 = inlined_call_operand.vmem [shape: f32[50,256], index: 1, kind: input, shape index: {}]   ;;  %s1369_s2 = inlined_call_operand.vmem [shape: f32[50,256], index: 2, kind: input, shape index: {}]   ;;  %s1370_s3 = inlined_call_operand.vmem [shape: f32[50,256], index: 3, kind: input, shape index: {}]   ;;  %s1371_s5 = inlined_call_operand.vmem [shape: f32[1,128], index: 5, kind: input, shape index: {}]   ;;  %s1372_s6 = inlined_call_operand.vmem [shape: f32[50,128], index: 6, kind: output, shape index: {}]  }
   0x1   :  { %v39_v0 = vld [vmem:[%s1366_s4 + $0x80] sm:$0xff]  ;;  %v40_v1 = vld [vmem:[%s1366_s4 + $0x88] sm:$0xff]  ;;  %v41_v5 = vld [vmem:[%s1366_s4 + $0x90] sm:$0xff] }
   0x2   :  { %v23_v2 = vld [vmem:[%s1366_s4] sm:$0xff]  ;;  %v949_v3 = vpack.c.bf16 %v40_v1, %v39_v0  ;;  %v24_v4 = vld [vmem:[%s1366_s4 + $0x8] sm:$0xff]  ;;  %v42_v6 = vld [vmem:[%s1366_s4 + $0x98] sm:$0xff] }
   0x3   :  { %v960_v7 = vpack.c.bf16 %v24_v4, %v23_v2  ;;  %v962_v8 = vpack.c.bf16 %v42_v6, %v41_v5  ;;  %v25_v9 = vld [vmem:[%s1366_s4 + $0x10] sm:$0xff]  ;;  %v26_v10 = vld [vmem:[%s1366_s4 + $0x18] sm:$0xff]  ;;  %v43_v11 = vld [vmem:[%s1366_s4 + $0xa0] sm:$0xff] }
   0x4   :  { %778 = vmatprep.subr.bf16.mxu0 %v949_v3  ;;  %810 = vmatprep.subr.bf16.mxu1 %v949_v3  ;;  %v44_v12 = vld [vmem:[%s1366_s4 + $0xa8] sm:$0xff]  ;;  %v980_v13 = vpack.c.bf16 %v26_v10, %v25_v9  ;;  %v27_v15 = vld [vmem:[%s1366_s4 + $0x20] sm:$0xff]  ;;  %v45_v17 = vld [vmem:[%s1366_s4 + $0xb0] sm:$0xff] }
   0x5   :  { %780 = vmatpush3.bf16.msra.mxu0 %v960_v7  ;;  %812 = vmatpush3.bf16.msra.mxu1 %v960_v7  ;;  %v984_v14 = vpack.c.bf16 %v44_v12, %v43_v11  ;;  %v28_v16 = vld [vmem:[%s1366_s4 + $0x28] sm:$0xff]  ;;  %v46_v18 = vld [vmem:[%s1366_s4 + $0xb8] sm:$0xff]  ;;  %v29_v21 = vld [vmem:[%s1366_s4 + $0x30] sm:$0xff] }
   0x6   :  { %782 = vmatprep.subr.bf16.mxu0 %v962_v8  ;;  %814 = vmatprep.subr.bf16.mxu1 %v962_v8  ;;  %v1000_v19 = vpack.c.bf16 %v28_v16, %v27_v15  ;;  %v1004_v20 = vpack.c.bf16 %v46_v18, %v45_v17  ;;  %v30_v22 = vld [vmem:[%s1366_s4 + $0x38] sm:$0xff]  ;;  %v47_v23 = vld [vmem:[%s1366_s4 + $0xc0] sm:$0xff]  ;;  %v48_v24 = vld [vmem:[%s1366_s4 + $0xc8] sm:$0xff] }
   0x7   :  { %v56_v25 = vld [vmem:[%s1367_s0 + $0x8] sm:$0xff]  ;;  %v1026_v27 = vpack.c.bf16 %v30_v22, %v29_v21  ;;  %v1030_v28 = vpack.c.bf16 %v48_v24, %v47_v23  ;;  %v31_v29 = vld [vmem:[%s1366_s4 + $0x40] sm:$0xff]  ;;  %v49_v31 = vld [vmem:[%s1366_s4 + $0xd0] sm:$0xff] }
   0x8   :  { %133 = vmatprep.mubr.f32.mxu0 %v56_v25  ;;  %v170_v26 = vld [vmem:[%s1368_s1 + $0x8] sm:$0xff]  ;;  %v50_v32 = vld [vmem:[%s1366_s4 + $0xd8] sm:$0xff]  ;;  %v33_v35 = vld [vmem:[%s1366_s4 + $0x50] sm:$0xff] }
   0x9   :  { %784 = vmatpush3.bf16.msra.mxu0 %v980_v13  ;;  %816 = vmatpush3.bf16.msra.mxu1 %v980_v13  ;;  %v32_v30 = vld [vmem:[%s1366_s4 + $0x48] sm:$0xff]  ;;  %v1050_v34 = vpack.c.bf16 %v50_v32, %v49_v31  ;;  %v34_v36 = vld [vmem:[%s1366_s4 + $0x58] sm:$0xff]  ;;  %v51_v37 = vld [vmem:[%s1366_s4 + $0xe0] sm:$0xff] }
   0xa   :  { %786 = vmatprep.subr.bf16.mxu0 %v984_v14  ;;  %818 = vmatprep.subr.bf16.mxu1 %v984_v14  ;;  %v1046_v33 = vpack.c.bf16 %v32_v30, %v31_v29  ;;  %v52_v38 = vld [vmem:[%s1366_s4 + $0xe8] sm:$0xff]  ;;  %v1066_v39 = vpack.c.bf16 %v34_v36, %v33_v35  ;;  %v35_v41 = vld [vmem:[%s1366_s4 + $0x60] sm:$0xff]  ;;  %v53_v43 = vld [vmem:[%s1366_s4 + $0xf0] sm:$0xff] }
   0xb   :  { %247 = vmatprep.mubr.f32.mxu1 %v170_v26  ;;  %v1070_v40 = vpack.c.bf16 %v52_v38, %v51_v37  ;;  %v36_v42 = vld [vmem:[%s1366_s4 + $0x68] sm:$0xff]  ;;  %v54_v44 = vld [vmem:[%s1366_s4 + $0xf8] sm:$0xff]  ;;  %v37_v47 = vld [vmem:[%s1366_s4 + $0x70] sm:$0xff] }
   0xc   :  { %v1086_v45 = vpack.c.bf16 %v36_v42, %v35_v41  ;;  %v1090_v46 = vpack.c.bf16 %v54_v44, %v53_v43  ;;  %v38_v48 = vld [vmem:[%s1366_s4 + $0x78] sm:$0xff]  ;;  %v55_v50 = vld [vmem:[%s1367_s0] sm:$0xff]  ;;  %v57_v54 = vld [vmem:[%s1367_s0 + $0x10] sm:$0xff] }
   0xd   :  { %788 = vmatpush3.bf16.msra.mxu0 %v1000_v19  ;;  %820 = vmatpush3.bf16.msra.mxu1 %v1000_v19  ;;  %v1100_v49 = vpack.c.bf16 %v38_v48, %v37_v47  ;;  %v169_v51 = vld [vmem:[%s1368_s1] sm:$0xff]  ;;  %v58_v52 = vld [vmem:[%s1367_s0 + $0x18] sm:$0xff]  ;;  %v171_v55 = vld [vmem:[%s1368_s1 + $0x10] sm:$0xff] }
   0xe   :  { %790 = vmatprep.subr.bf16.mxu0 %v1004_v20  ;;  %822 = vmatprep.subr.bf16.mxu1 %v1004_v20  ;;  %v172_v53 = vld [vmem:[%s1368_s1 + $0x18] sm:$0xff]  ;;  %v60_v56 = vld [vmem:[%s1367_s0 + $0x28] sm:$0xff]  ;;  %v59_v58 = vld [vmem:[%s1367_s0 + $0x20] sm:$0xff] }
   0xf   :  { %v174_v57 = vld [vmem:[%s1368_s1 + $0x28] sm:$0xff]  ;;  %v173_v59 = vld [vmem:[%s1368_s1 + $0x20] sm:$0xff]  ;;  %v62_v60 = vld [vmem:[%s1367_s0 + $0x38] sm:$0xff] }
  0x10   :  { %v176_v61 = vld [vmem:[%s1368_s1 + $0x38] sm:$0xff]  ;;  %v61_v62 = vld [vmem:[%s1367_s0 + $0x30] sm:$0xff]  ;;  %v64_v0 = vld [vmem:[%s1367_s0 + $0x48] sm:$0xff] }
  0x11   :  { %792 = vmatpush3.bf16.msra.mxu0 %v1026_v27  ;;  %824 = vmatpush3.bf16.msra.mxu1 %v1026_v27  ;;  %v175_v63 = vld [vmem:[%s1368_s1 + $0x30] sm:$0xff]  ;;  %v178_v1 = vld [vmem:[%s1368_s1 + $0x48] sm:$0xff]  ;;  %v63_v2 = vld [vmem:[%s1367_s0 + $0x40] sm:$0xff] }
  0x12   :  { %794 = vmatprep.subr.bf16.mxu0 %v1030_v28  ;;  %826 = vmatprep.subr.bf16.mxu1 %v1030_v28  ;;  %v66_v4 = vld [vmem:[%s1367_s0 + $0x58] sm:$0xff]  ;;  %v65_v6 = vld [vmem:[%s1367_s0 + $0x50] sm:$0xff]  ;;  %v182_v9 = vld [vmem:[%s1368_s1 + $0x68] sm:$0x3] }
  0x13   :  { %v180_v5 = vld [vmem:[%s1368_s1 + $0x58] sm:$0xff]  ;;  %v67_v10 = vld [vmem:[%s1367_s0 + $0x60] sm:$0x3]  ;;  %v291_v12 = vld [vmem:[%s1369_s2 + $0x8] sm:$0xff] }
  0x14   :  { %v181_v11 = vld [vmem:[%s1368_s1 + $0x60] sm:$0x3]  ;;  %v293_v16 = vld [vmem:[%s1369_s2 + $0x18] sm:$0xff]  ;;  %v292_v18 = vld [vmem:[%s1369_s2 + $0x10] sm:$0xff] }
  0x15   :  { %796 = vmatpush3.bf16.msra.mxu0 %v1046_v33  ;;  %828 = vmatpush3.bf16.msra.mxu1 %v1046_v33  ;;  %v411_v15 = vld [vmem:[%s1370_s3] sm:$0xff]  ;;  %v414_v17 = vld [vmem:[%s1370_s3 + $0x18] sm:$0xff]  ;;  %v416_v21 = vld [vmem:[%s1370_s3 + $0x28] sm:$0xff] }
  0x16   :  { %798 = vmatprep.subr.bf16.mxu0 %v1050_v34  ;;  %830 = vmatprep.subr.bf16.mxu1 %v1050_v34  ;;  %v294_v22 = vld [vmem:[%s1369_s2 + $0x20] sm:$0xff]  ;;  %v297_v24 = vld [vmem:[%s1369_s2 + $0x38] sm:$0xff]  ;;  %v296_v26 = vld [vmem:[%s1369_s2 + $0x30] sm:$0xff] }
  0x17   :  { %v415_v23 = vld [vmem:[%s1370_s3 + $0x20] sm:$0xff]  ;;  %v418_v25 = vld [vmem:[%s1370_s3 + $0x38] sm:$0xff]  ;;  %v420_v29 = vld [vmem:[%s1370_s3 + $0x48] sm:$0xff] }
  0x18   :  { %v298_v30 = vld [vmem:[%s1369_s2 + $0x40] sm:$0xff]  ;;  %v301_v32 = vld [vmem:[%s1369_s2 + $0x58] sm:$0xff]  ;;  %v421_v35 = vld [vmem:[%s1370_s3 + $0x50] sm:$0xff] }
  0x19   :  { %800 = vmatpush3.bf16.msra.mxu0 %v1066_v39  ;;  %832 = vmatpush3.bf16.msra.mxu1 %v1066_v39  ;;  %v419_v31 = vld [vmem:[%s1370_s3 + $0x40] sm:$0xff]  ;;  %v303_v36 = vld [vmem:[%s1369_s2 + $0x68] sm:$0x3] }
  0x1a   :  { %802 = vmatprep.subr.bf16.mxu0 %v1070_v40  ;;  %834 = vmatprep.subr.bf16.mxu1 %v1070_v40  ;;  %v424_v37 = vld [vmem:[%s1370_s3 + $0x68] sm:$0x3]  ;;  %v302_v38 = vld [vmem:[%s1369_s2 + $0x60] sm:$0x3] }
  0x1d   :  { %804 = vmatpush3.bf16.msra.mxu0 %v1086_v45  ;;  %836 = vmatpush3.bf16.msra.mxu1 %v1086_v45 }
  0x1e   :  { %806 = vmatprep.subr.bf16.mxu0 %v1090_v46  ;;  %838 = vmatprep.subr.bf16.mxu1 %v1090_v46 }
  0x21   :  { %808 = vmatpush3.bf16.msra.mxu0 %v1100_v49  ;;  %840 = vmatpush3.bf16.msra.mxu1 %v1100_v49 }
  0x22   :  { %842 = vmatprep.subr.bf16.mxu0 %v949_v3  ;;  %874 = vmatprep.subr.bf16.mxu1 %v949_v3  ;;  %v177_v3 = vld [vmem:[%s1368_s1 + $0x40] sm:$0xff] }
  0x24   :  { %134 = vmatmul.mubr.f32.vlgmr.msra.gmra.mrb[0].mxu0 %v55_v50  ;;  %248 = vmatmul.mubr.f32.vlgmr.msra.gmra.mrb[0].mxu1 %v169_v51 }
  0x25   :  { %844 = vmatpush3.bf16.msra.mxu0 %v960_v7  ;;  %876 = vmatpush3.bf16.msra.mxu1 %v960_v7  ;;  %v179_v7 = vld [vmem:[%s1368_s1 + $0x50] sm:$0xff] }
  0x26   :  { %846 = vmatprep.subr.bf16.mxu0 %v962_v8  ;;  %878 = vmatprep.subr.bf16.mxu1 %v962_v8  ;;  %v68_v8 = vld [vmem:[%s1367_s0 + $0x68] sm:$0x3] }
  0x27   :  { %138 = vmatprep.mubr.f32.mxu0 %v58_v52  ;;  %252 = vmatprep.mubr.f32.mxu1 %v172_v53 }
  0x28   :  { %139 = vmatmul.mubr.f32.gmra.mrb[2].mxu0 %v57_v54  ;;  %253 = vmatmul.mubr.f32.gmra.mrb[2].mxu1 %v171_v55 }
  0x29   :  { %848 = vmatpush3.bf16.msra.mxu0 %v980_v13  ;;  %880 = vmatpush3.bf16.msra.mxu1 %v980_v13  ;;  %v412_v13 = vld [vmem:[%s1370_s3 + $0x8] sm:$0xff] }
  0x2a   :  { %850 = vmatprep.subr.bf16.mxu0 %v984_v14  ;;  %882 = vmatprep.subr.bf16.mxu1 %v984_v14  ;;  %v290_v14 = vld [vmem:[%s1369_s2] sm:$0xff] }
  0x2b   :  { %143 = vmatprep.mubr.f32.mxu0 %v60_v56  ;;  %257 = vmatprep.mubr.f32.mxu1 %v174_v57 }
  0x2c   :  { %144 = vmatmul.mubr.f32.gmra.mrb[4].mxu0 %v59_v58  ;;  %258 = vmatmul.mubr.f32.gmra.mrb[4].mxu1 %v173_v59 }
  0x2d   :  { %852 = vmatpush3.bf16.msra.mxu0 %v1000_v19  ;;  %884 = vmatpush3.bf16.msra.mxu1 %v1000_v19  ;;  %v413_v19 = vld [vmem:[%s1370_s3 + $0x10] sm:$0xff] }
  0x2e   :  { %854 = vmatprep.subr.bf16.mxu0 %v1004_v20  ;;  %886 = vmatprep.subr.bf16.mxu1 %v1004_v20  ;;  %v295_v20 = vld [vmem:[%s1369_s2 + $0x28] sm:$0xff] }
  0x2f   :  { %148 = vmatprep.mubr.f32.mxu0 %v62_v60  ;;  %262 = vmatprep.mubr.f32.mxu1 %v176_v61 }
  0x30   :  { %149 = vmatmul.mubr.f32.gmra.mrb[6].mxu0 %v61_v62  ;;  %263 = vmatmul.mubr.f32.gmra.mrb[6].mxu1 %v175_v63 }
  0x31   :  { %856 = vmatpush3.bf16.msra.mxu0 %v1026_v27  ;;  %888 = vmatpush3.bf16.msra.mxu1 %v1026_v27  ;;  %v417_v27 = vld [vmem:[%s1370_s3 + $0x30] sm:$0xff] }
  0x32   :  { %858 = vmatprep.subr.bf16.mxu0 %v1030_v28  ;;  %890 = vmatprep.subr.bf16.mxu1 %v1030_v28  ;;  %v299_v28 = vld [vmem:[%s1369_s2 + $0x48] sm:$0xff] }
  0x33   :  { %153 = vmatprep.mubr.f32.mxu0 %v64_v0  ;;  %267 = vmatprep.mubr.f32.mxu1 %v178_v1 }
  0x34   :  { %154 = vmatmul.mubr.f32.gmra.mrb[8].mxu0 %v63_v2  ;;  %268 = vmatmul.mubr.f32.gmra.mrb[8].mxu1 %v177_v3 }
  0x35   :  { %860 = vmatpush3.bf16.msra.mxu0 %v1046_v33  ;;  %892 = vmatpush3.bf16.msra.mxu1 %v1046_v33  ;;  %v422_v33 = vld [vmem:[%s1370_s3 + $0x58] sm:$0xff] }
  0x36   :  { %862 = vmatprep.subr.bf16.mxu0 %v1050_v34  ;;  %894 = vmatprep.subr.bf16.mxu1 %v1050_v34  ;;  %v300_v34 = vld [vmem:[%s1369_s2 + $0x50] sm:$0xff] }
  0x37   :  { %158 = vmatprep.mubr.f32.mxu0 %v66_v4  ;;  %272 = vmatprep.mubr.f32.mxu1 %v180_v5 }
  0x38   :  { %159 = vmatmul.mubr.f32.gmra.mrb[10].mxu0 %v65_v6  ;;  %273 = vmatmul.mubr.f32.gmra.mrb[10].mxu1 %v179_v7 }
  0x39   :  { %864 = vmatpush3.bf16.msra.mxu0 %v1066_v39  ;;  %896 = vmatpush3.bf16.msra.mxu1 %v1066_v39  ;;  %v423_v39 = vld [vmem:[%s1370_s3 + $0x60] sm:$0x3] }
  0x3a   :  { %866 = vmatprep.subr.bf16.mxu0 %v1070_v40  ;;  %898 = vmatprep.subr.bf16.mxu1 %v1070_v40 }
  0x3b   :  { %163 = vmatprep.mubr.f32.mxu0 %v68_v8  ;;  %277 = vmatprep.mubr.f32.mxu1 %v182_v9 }
  0x3c   :  { %164 = vmatmul.mubr.f32.gmra.mrb[12].mxu0 %v67_v10  ;;  %278 = vmatmul.mubr.f32.gmra.mrb[12].mxu1 %v181_v11 }
  0x3d   :  { %868 = vmatpush3.bf16.msra.mxu0 %v1086_v45  ;;  %900 = vmatpush3.bf16.msra.mxu1 %v1086_v45 }
  0x3e   :  { %870 = vmatprep.subr.bf16.mxu0 %v1090_v46  ;;  %902 = vmatprep.subr.bf16.mxu1 %v1090_v46 }
  0x3f   :  { %368 = vmatprep.mubr.f32.mxu0 %v291_v12  ;;  %489 = vmatprep.mubr.f32.mxu1 %v412_v13 }
  0x41   :  { %872 = vmatpush3.bf16.msra.mxu0 %v1100_v49  ;;  %904 = vmatpush3.bf16.msra.mxu1 %v1100_v49 }
  0x44   :  { %369 = vmatmul.mubr.f32.vlgmr.msra.gmra.mrb[14].mxu0 %v290_v14  ;;  %490 = vmatmul.mubr.f32.vlgmr.msra.gmra.mrb[14].mxu1 %v411_v15 }
  0x45   :  { %373 = vmatprep.mubr.f32.mxu0 %v293_v16  ;;  %494 = vmatprep.mubr.f32.mxu1 %v414_v17 }
  0x48   :  { %374 = vmatmul.mubr.f32.gmra.mrb[16].mxu0 %v292_v18  ;;  %495 = vmatmul.mubr.f32.gmra.mrb[16].mxu1 %v413_v19 }
  0x49   :  { %378 = vmatprep.mubr.f32.mxu0 %v295_v20  ;;  %499 = vmatprep.mubr.f32.mxu1 %v416_v21 }
  0x4c   :  { %379 = vmatmul.mubr.f32.gmra.mrb[18].mxu0 %v294_v22  ;;  %500 = vmatmul.mubr.f32.gmra.mrb[18].mxu1 %v415_v23 }
  0x4d   :  { %383 = vmatprep.mubr.f32.mxu0 %v297_v24  ;;  %504 = vmatprep.mubr.f32.mxu1 %v418_v25 }
  0x50   :  { %384 = vmatmul.mubr.f32.gmra.mrb[20].mxu0 %v296_v26  ;;  %505 = vmatmul.mubr.f32.gmra.mrb[20].mxu1 %v417_v27 }
  0x51   :  { %388 = vmatprep.mubr.f32.mxu0 %v299_v28  ;;  %509 = vmatprep.mubr.f32.mxu1 %v420_v29 }
  0x54   :  { %389 = vmatmul.mubr.f32.gmra.mrb[22].mxu0 %v298_v30  ;;  %510 = vmatmul.mubr.f32.gmra.mrb[22].mxu1 %v419_v31 }
  0x55   :  { %393 = vmatprep.mubr.f32.mxu0 %v301_v32  ;;  %514 = vmatprep.mubr.f32.mxu1 %v422_v33 }
  0x58   :  { %394 = vmatmul.mubr.f32.gmra.mrb[24].mxu0 %v300_v34  ;;  %515 = vmatmul.mubr.f32.gmra.mrb[24].mxu1 %v421_v35  ;;  %v1327_v34 = vld [vmem:[%s1371_s5] ss:$0 sm:$0xff] }
  0x59   :  { %398 = vmatprep.mubr.f32.mxu0 %v303_v36  ;;  %519 = vmatprep.mubr.f32.mxu1 %v424_v37 }
  0x5c   :  { %399 = vmatmul.mubr.f32.gmra.mrb[26].mxu0 %v302_v38  ;;  %520 = vmatmul.mubr.f32.gmra.mrb[26].mxu1 %v423_v39 }
  0xf7   :  { %v597_v40 = vpop.f32.mrb[0].mxu0  ;;  %v650_v41 = vpop.f32.mrb[0].mxu1 }
  0xf8   :  { %v598_v42 = vpop.f32.mrb[1].mxu0  ;;  %v651_v43 = vpop.f32.mrb[1].mxu1 }
  0xf9   :  { %v599_v44 = vadd.f32 %v598_v42, %v597_v40  ;;  %v652_v45 = vadd.f32 %v651_v43, %v650_v41 }
  0xfb   :  { %v283_v46 = vmax.f32 %v599_v44, %v652_v45  ;;  %v600_v47 = vpop.f32.mrb[2].mxu0  ;;  %v653_v48 = vpop.f32.mrb[2].mxu1 }
  0xfc   :  { %v601_v49 = vpop.f32.mrb[3].mxu0  ;;  %v654_v50 = vpop.f32.mrb[3].mxu1 }
  0xfd   :  { %v602_v51 = vadd.f32 %v601_v49, %v600_v47  ;;  %v655_v52 = vadd.f32 %v654_v50, %v653_v48 }
  0xff   :  { %v284_v53 = vmax.f32 %v602_v51, %v655_v52  ;;  %v603_v54 = vpop.f32.mrb[4].mxu0  ;;  %v656_v55 = vpop.f32.mrb[4].mxu1 }
 0x100   :  { %v604_v56 = vpop.f32.mrb[5].mxu0  ;;  %v657_v57 = vpop.f32.mrb[5].mxu1 }
 0x101   :  { %v605_v58 = vadd.f32 %v604_v56, %v603_v54  ;;  %v658_v59 = vadd.f32 %v657_v57, %v656_v55 }
 0x103   :  { %v285_v60 = vmax.f32 %v605_v58, %v658_v59  ;;  %v606_v61 = vpop.f32.mrb[6].mxu0  ;;  %v659_v62 = vpop.f32.mrb[6].mxu1 }
 0x104   :  { %v607_v63 = vpop.f32.mrb[7].mxu0  ;;  %v660_v0 = vpop.f32.mrb[7].mxu1 }
 0x105   :  { %v1300_v1 = vadd.f32 %v607_v63, %v606_v61  ;;  %v1302_v2 = vadd.f32 %v660_v0, %v659_v62 }
 0x107   :  { %v286_v3 = vmax.f32 %v1300_v1, %v1302_v2  ;;  %v609_v4 = vpop.f32.mrb[8].mxu0  ;;  %v662_v5 = vpop.f32.mrb[8].mxu1 }
 0x108   :  { %v610_v6 = vpop.f32.mrb[9].mxu0  ;;  %v663_v7 = vpop.f32.mrb[9].mxu1 }
 0x109   :  { %v1306_v8 = vadd.f32 %v610_v6, %v609_v4  ;;  %v1308_v9 = vadd.f32 %v663_v7, %v662_v5 }
 0x10b   :  { %v287_v10 = vmax.f32 %v1306_v8, %v1308_v9  ;;  %v612_v11 = vpop.f32.mrb[10].mxu0  ;;  %v665_v12 = vpop.f32.mrb[10].mxu1 }
 0x10c   :  { %v613_v13 = vpop.f32.mrb[11].mxu0  ;;  %v666_v14 = vpop.f32.mrb[11].mxu1 }
 0x10d   :  { %v1312_v15 = vadd.f32 %v613_v13, %v612_v11  ;;  %v1314_v16 = vadd.f32 %v666_v14, %v665_v12 }
 0x10f   :  { %v288_v17 = vmax.f32 %v1312_v15, %v1314_v16  ;;  %v615_v18 = vpop.f32.mrb[12].mxu0  ;;  %v668_v19 = vpop.f32.mrb[12].mxu1 }
 0x110   :  { %v616_v20 = vpop.f32.mrb[13].mxu0  ;;  %v669_v21 = vpop.f32.mrb[13].mxu1 }
 0x111   :  { %v1318_v22 = vadd.f32 %v616_v20, %v615_v18  ;;  %v1320_v23 = vadd.f32 %v669_v21, %v668_v19 }
 0x113   :  { %v289_v24 = vmax.f32 %v1318_v22, %v1320_v23 }
 0x117   :  { %v703_v25 = vpop.f32.mrb[14].mxu0  ;;  %v756_v26 = vpop.f32.mrb[14].mxu1 }
 0x118   :  { %v704_v27 = vpop.f32.mrb[15].mxu0  ;;  %v757_v28 = vpop.f32.mrb[15].mxu1 }
 0x119   :  { %v705_v29 = vadd.f32 %v704_v27, %v703_v25  ;;  %v758_v30 = vadd.f32 %v757_v28, %v756_v26 }
 0x11b   :  { %v404_v31 = vmax.f32 %v283_v46, %v705_v29  ;;  %v706_v32 = vpop.f32.mrb[16].mxu0  ;;  %v759_v33 = vpop.f32.mrb[16].mxu1 }
 0x11c   :  { %v707_v35 = vpop.f32.mrb[17].mxu0  ;;  %v760_v36 = vpop.f32.mrb[17].mxu1 }
 0x11d   :  { %v525_v37 = vmax.f32 %v404_v31, %v758_v30  ;;  %v708_v38 = vadd.f32 %v707_v35, %v706_v32  ;;  %v761_v39 = vadd.f32 %v760_v36, %v759_v33 }
 0x11f   :  { %v539_v40 = vadd.f32 %v1327_v34, %v525_v37  ;;  %v405_v41 = vmax.f32 %v284_v53, %v708_v38  ;;  %v709_v42 = vpop.f32.mrb[18].mxu0  ;;  %v762_v43 = vpop.f32.mrb[18].mxu1 }
 0x120   :  { %v710_v44 = vpop.f32.mrb[19].mxu0  ;;  %v763_v45 = vpop.f32.mrb[19].mxu1 }
 0x121   :  { %v546_v46 = vmax.f32 %v539_v40, 0.0  ;;  %v526_v47 = vmax.f32 %v405_v41, %v761_v39  ;;  %v711_v48 = vadd.f32 %v710_v44, %v709_v42  ;;  %v764_v49 = vadd.f32 %v763_v45, %v762_v43 }
 0x123   :  { %553 = vst [vmem:[%s1372_s6] sm:$0xff] %v546_v46  ;;  %v540_v50 = vadd.f32 %v1327_v34, %v526_v47  ;;  %v406_v51 = vmax.f32 %v285_v60, %v711_v48  ;;  %v712_v52 = vpop.f32.mrb[20].mxu0  ;;  %v765_v54 = vpop.f32.mrb[20].mxu1 }
 0x124   :  { %v713_v55 = vpop.f32.mrb[21].mxu0  ;;  %v766_v56 = vpop.f32.mrb[21].mxu1 }
 0x125   :  { %v547_v53 = vmax.f32 %v540_v50, 0.0  ;;  %v527_v57 = vmax.f32 %v406_v51, %v764_v49  ;;  %v714_v58 = vadd.f32 %v713_v55, %v712_v52  ;;  %v767_v59 = vadd.f32 %v766_v56, %v765_v54 }
 0x127   :  { %554 = vst [vmem:[%s1372_s6 + $0x8] sm:$0xff] %v547_v53  ;;  %v541_v61 = vadd.f32 %v1327_v34, %v527_v57  ;;  %v407_v62 = vmax.f32 %v286_v3, %v714_v58  ;;  %v715_v63 = vpop.f32.mrb[22].mxu0  ;;  %v768_v0 = vpop.f32.mrb[22].mxu1 }
 0x128   :  { %v716_v1 = vpop.f32.mrb[23].mxu0  ;;  %v769_v2 = vpop.f32.mrb[23].mxu1 }
 0x129   :  { %v548_v60 = vmax.f32 %v541_v61, 0.0  ;;  %v528_v4 = vmax.f32 %v407_v62, %v767_v59  ;;  %v717_v5 = vadd.f32 %v716_v1, %v715_v63  ;;  %v770_v6 = vadd.f32 %v769_v2, %v768_v0 }
 0x12b   :  { %555 = vst [vmem:[%s1372_s6 + $0x10] sm:$0xff] %v548_v60  ;;  %v542_v7 = vadd.f32 %v1327_v34, %v528_v4  ;;  %v408_v11 = vmax.f32 %v287_v10, %v717_v5  ;;  %v718_v12 = vpop.f32.mrb[24].mxu0  ;;  %v771_v3 = vpop.f32.mrb[24].mxu1 }
 0x12c   :  { %v719_v13 = vpop.f32.mrb[25].mxu0  ;;  %v772_v14 = vpop.f32.mrb[25].mxu1 }
 0x12d   :  { %v549_v18 = vmax.f32 %v542_v7, 0.0  ;;  %v529_v19 = vmax.f32 %v408_v11, %v770_v6  ;;  %v720_v20 = vadd.f32 %v719_v13, %v718_v12  ;;  %v773_v21 = vadd.f32 %v772_v14, %v771_v3 }
 0x12f   :  { %556 = vst [vmem:[%s1372_s6 + $0x18] sm:$0xff] %v549_v18  ;;  %v543_v25 = vadd.f32 %v1327_v34, %v529_v19  ;;  %v409_v26 = vmax.f32 %v288_v17, %v720_v20  ;;  %v721_v8 = vpop.f32.mrb[26].mxu0  ;;  %v774_v9 = vpop.f32.mrb[26].mxu1 }
 0x130   :  { %v722_v10 = vpop.f32.mrb[27].mxu0  ;;  %v775_v27 = vpop.f32.mrb[27].mxu1 }
 0x131   :  { %v550_v28 = vmax.f32 %v543_v25, 0.0  ;;  %v530_v29 = vmax.f32 %v409_v26, %v773_v21  ;;  %v723_v30 = vadd.f32 %v722_v10, %v721_v8  ;;  %v776_v31 = vadd.f32 %v775_v27, %v774_v9 }
 0x133   :  { %557 = vst [vmem:[%s1372_s6 + $0x20] sm:$0xff] %v550_v28  ;;  %v544_v32 = vadd.f32 %v1327_v34, %v530_v29  ;;  %v410_v33 = vmax.f32 %v289_v24, %v723_v30 }
 0x135   :  { %v551_v15 = vmax.f32 %v544_v32, 0.0  ;;  %v531_v16 = vmax.f32 %v410_v33, %v776_v31 }
 0x137   :  { %558 = vst [vmem:[%s1372_s6 + $0x28] sm:$0xff] %v551_v15  ;;  %v545_v17 = vadd.f32 %v1327_v34, %v531_v16 }
 0x139   :  { %v552_v35 = vmax.f32 %v545_v17, 0.0 }
 0x13b   :  { %559 = vst [vmem:[%s1372_s6 + $0x30] sm:$0x3] %v552_v35 }

// kernel: net_forward.5
= control target key start
LH: loop header
LB: loop body
LE: loop exit
PB: predicated region body
PF: predicated region fallthrough
CT: control target
= control target key end

     0   :  { %v2767_v43 = vmov 1983009808   ;;  %v452_v45 = vlaneseq  ;;  %s4241_s0 = inlined_call_operand.vmem [shape: f32[2,3200], index: 0, kind: input, shape index: {}]   ;;  %s4242_s1 = inlined_call_operand.vmem [shape: f32[3200,128], index: 1, kind: input, shape index: {}]   ;;  %s4243_s2 = inlined_call_operand.vmem [shape: f32[1,128], index: 2, kind: input, shape index: {}]   ;;  %s4244_s3 = inlined_call_operand.vmem [shape: f32[128,128], index: 3, kind: input, shape index: {}]   ;;  %s4245_s4 = inlined_call_operand.vmem [shape: f32[1,128], index: 4, kind: input, shape index: {}]   ;;  %s4246_s5 = inlined_call_operand.vmem [shape: f32[128,10], index: 5, kind: input, shape index: {}]   ;;  %s4247_s6 = inlined_call_operand.vmem [shape: f32[1,10], index: 6, kind: input, shape index: {}]   ;;  %s4248_s7 = inlined_call_operand.hbm [shape: f32[2,10], index: 7, kind: output, shape index: {}]  }
   0x1   :  { %v50_v0 = vld [vmem:[%s4242_s1 + $0x80] sm:$0xff]  ;;  %v51_v1 = vld [vmem:[%s4242_s1 + $0x88] sm:$0xff]  ;;  %v52_v11 = vld [vmem:[%s4242_s1 + $0x90] sm:$0xff]  ;;  %v450_v44 = vunpack.c.l.s4 %v2767_v43 }
   0x2   :  { %v34_v2 = vld [vmem:[%s4242_s1] sm:$0xff]  ;;  %v2276_v3 = vpack.c.bf16 %v51_v1, %v50_v0  ;;  %v35_v4 = vld [vmem:[%s4242_s1 + $0x8] sm:$0xff]  ;;  %v53_v13 = vld [vmem:[%s4242_s1 + $0x98] sm:$0xff]  ;;  %v453_v60 = vshrl.u32 %v452_v45, 7 }
   0x3   :  { %v82_v5 = vld [vmem:[%s4242_s1 + $0x180] sm:$0xff]  ;;  %v83_v6 = vld [vmem:[%s4242_s1 + $0x188] sm:$0xff]  ;;  %v2278_v7 = vpack.c.bf16 %v35_v4, %v34_v2  ;;  %v36_v14 = vld [vmem:[%s4242_s1 + $0x10] sm:$0xff]  ;;  %v2280_v16 = vpack.c.bf16 %v53_v13, %v52_v11  ;;  %v451_v59 = vunpack.c.0.s8 %v450_v44 }
   0x4   :  { %v2308_v8 = vpack.c.bf16 %v83_v6, %v82_v5  ;;  %v66_v9 = vld [vmem:[%s4242_s1 + $0x100] sm:$0xff]  ;;  %v67_v10 = vld [vmem:[%s4242_s1 + $0x108] sm:$0xff]  ;;  %2277 = vmatprep.subr.bf16.mxu0 %v2276_v3  ;;  %v37_v15 = vld [vmem:[%s4242_s1 + $0x18] sm:$0xff] }
   0x5   :  { %v2310_v12 = vpack.c.bf16 %v67_v10, %v66_v9  ;;  %2279 = vmatpush3.bf16.msra.mxu0 %v2278_v7  ;;  %v2282_v17 = vpack.c.bf16 %v37_v15, %v36_v14  ;;  %v84_v18 = vld [vmem:[%s4242_s1 + $0x190] sm:$0xff]  ;;  %v85_v19 = vld [vmem:[%s4242_s1 + $0x198] sm:$0xff]  ;;  %v54_v23 = vld [vmem:[%s4242_s1 + $0xa0] sm:$0xff]  ;;  %v2956_v10 = vsub.s32 %v451_v59, %v453_v60 }
   0x6   :  { %2309 = vmatprep.subr.bf16.mxu1 %v2308_v8  ;;  %v68_v20 = vld [vmem:[%s4242_s1 + $0x110] sm:$0xff]  ;;  %v2312_v21 = vpack.c.bf16 %v85_v19, %v84_v18  ;;  %v69_v22 = vld [vmem:[%s4242_s1 + $0x118] sm:$0xff]  ;;  %v55_v24 = vld [vmem:[%s4242_s1 + $0xa8] sm:$0xff]  ;;  %2281 = vmatprep.subr.bf16.mxu0 %v2280_v16 }
   0x7   :  { %2311 = vmatpush3.bf16.msra.mxu1 %v2310_v12  ;;  %v2314_v25 = vpack.c.bf16 %v69_v22, %v68_v20  ;;  %v2284_v26 = vpack.c.bf16 %v55_v24, %v54_v23  ;;  %v38_v27 = vld [vmem:[%s4242_s1 + $0x20] sm:$0xff]  ;;  %v39_v28 = vld [vmem:[%s4242_s1 + $0x28] sm:$0xff]  ;;  %v56_v35 = vld [vmem:[%s4242_s1 + $0xb0] sm:$0xff] }
   0x8   :  { %v86_v29 = vld [vmem:[%s4242_s1 + $0x1a0] sm:$0xff]  ;;  %2313 = vmatprep.subr.bf16.mxu1 %v2312_v21  ;;  %v87_v30 = vld [vmem:[%s4242_s1 + $0x1a8] sm:$0xff]  ;;  %v2286_v33 = vpack.c.bf16 %v39_v28, %v38_v27  ;;  %v57_v36 = vld [vmem:[%s4242_s1 + $0xb8] sm:$0xff] }
   0x9   :  { %v70_v31 = vld [vmem:[%s4242_s1 + $0x120] sm:$0xff]  ;;  %v71_v32 = vld [vmem:[%s4242_s1 + $0x128] sm:$0xff]  ;;  %2283 = vmatpush3.bf16.msra.mxu0 %v2282_v17  ;;  %v2316_v34 = vpack.c.bf16 %v87_v30, %v86_v29  ;;  %v40_v37 = vld [vmem:[%s4242_s1 + $0x30] sm:$0xff]  ;;  %v2288_v39 = vpack.c.bf16 %v57_v36, %v56_v35 }
   0xa   :  { %2285 = vmatprep.subr.bf16.mxu0 %v2284_v26  ;;  %v2318_v38 = vpack.c.bf16 %v71_v32, %v70_v31  ;;  %v41_v40 = vld [vmem:[%s4242_s1 + $0x38] sm:$0xff]  ;;  %v88_v41 = vld [vmem:[%s4242_s1 + $0x1b0] sm:$0xff]  ;;  %v58_v49 = vld [vmem:[%s4242_s1 + $0xc0] sm:$0xff] }
   0xb   :  { %2315 = vmatpush3.bf16.msra.mxu1 %v2314_v25  ;;  %v89_v42 = vld [vmem:[%s4242_s1 + $0x1b8] sm:$0xff]  ;;  %v72_v47 = vld [vmem:[%s4242_s1 + $0x130] sm:$0xff]  ;;  %v59_v50 = vld [vmem:[%s4242_s1 + $0xc8] sm:$0xff]  ;;  %v2290_v51 = vpack.c.bf16 %v41_v40, %v40_v37 }
   0xc   :  { %2317 = vmatprep.subr.bf16.mxu1 %v2316_v34  ;;  %v2320_v46 = vpack.c.bf16 %v89_v42, %v88_v41  ;;  %v73_v48 = vld [vmem:[%s4242_s1 + $0x138] sm:$0xff]  ;;  %v90_v52 = vld [vmem:[%s4242_s1 + $0x1c0] sm:$0xff]  ;;  %v91_v53 = vld [vmem:[%s4242_s1 + $0x1c8] sm:$0xff]  ;;  %v2292_v55 = vpack.c.bf16 %v59_v50, %v58_v49 }
   0xd   :  { %2287 = vmatpush3.bf16.msra.mxu0 %v2286_v33  ;;  %v2322_v54 = vpack.c.bf16 %v73_v48, %v72_v47  ;;  %v42_v56 = vld [vmem:[%s4242_s1 + $0x40] sm:$0xff]  ;;  %v43_v57 = vld [vmem:[%s4242_s1 + $0x48] sm:$0xff]  ;;  %v2324_v61 = vpack.c.bf16 %v91_v53, %v90_v52  ;;  %v60_v63 = vld [vmem:[%s4242_s1 + $0xd0] sm:$0xff] }
   0xe   :  { %2289 = vmatprep.subr.bf16.mxu0 %v2288_v39  ;;  %v74_v58 = vld [vmem:[%s4242_s1 + $0x140] sm:$0xff]  ;;  %v75_v62 = vld [vmem:[%s4242_s1 + $0x148] sm:$0xff]  ;;  %v61_v0 = vld [vmem:[%s4242_s1 + $0xd8] sm:$0xff]  ;;  %v2294_v3 = vpack.c.bf16 %v43_v57, %v42_v56 }
   0xf   :  { %2319 = vmatpush3.bf16.msra.mxu1 %v2318_v38  ;;  %v92_v1 = vld [vmem:[%s4242_s1 + $0x1d0] sm:$0xff]  ;;  %v93_v2 = vld [vmem:[%s4242_s1 + $0x1d8] sm:$0xff]  ;;  %v2326_v5 = vpack.c.bf16 %v75_v62, %v74_v58  ;;  %v2296_v6 = vpack.c.bf16 %v61_v0, %v60_v63  ;;  %v62_v12 = vld [vmem:[%s4242_s1 + $0xe0] sm:$0xff] }
  0x10   :  { %2321 = vmatprep.subr.bf16.mxu1 %v2320_v46  ;;  %v44_v4 = vld [vmem:[%s4242_s1 + $0x50] sm:$0xff]  ;;  %v45_v7 = vld [vmem:[%s4242_s1 + $0x58] sm:$0xff]  ;;  %v2328_v11 = vpack.c.bf16 %v93_v2, %v92_v1  ;;  %v63_v13 = vld [vmem:[%s4242_s1 + $0xe8] sm:$0xff] }
  0x11   :  { %2291 = vmatpush3.bf16.msra.mxu0 %v2290_v51  ;;  %v76_v8 = vld [vmem:[%s4242_s1 + $0x150] sm:$0xff]  ;;  %v77_v9 = vld [vmem:[%s4242_s1 + $0x158] sm:$0xff]  ;;  %v94_v14 = vld [vmem:[%s4242_s1 + $0x1e0] sm:$0xff]  ;;  %v2298_v16 = vpack.c.bf16 %v45_v7, %v44_v4  ;;  %v2300_v19 = vpack.c.bf16 %v63_v13, %v62_v12 }
  0x12   :  { %2293 = vmatprep.subr.bf16.mxu0 %v2292_v55  ;;  %v95_v15 = vld [vmem:[%s4242_s1 + $0x1e8] sm:$0xff]  ;;  %v2330_v17 = vpack.c.bf16 %v77_v9, %v76_v8  ;;  %v27_v18 = vld [vmem:[%s4241_s0] sm:$0xff]  ;;  %v64_v27 = vld [vmem:[%s4242_s1 + $0xf0] sm:$0xff] }
  0x13   :  { %2323 = vmatpush3.bf16.msra.mxu1 %v2322_v54  ;;  %v46_v20 = vld [vmem:[%s4242_s1 + $0x60] sm:$0xff]  ;;  %v47_v21 = vld [vmem:[%s4242_s1 + $0x68] sm:$0xff]  ;;  %v455_v23 = vrot.slane %v27_v18, %v2956_v10  ;;  %v448_v24 = vcombine.high %v27_v18, %v27_v18  ;;  %v2332_v25 = vpack.c.bf16 %v95_v15, %v94_v14  ;;  %v65_v28 = vld [vmem:[%s4242_s1 + $0xf8] sm:$0xff] }
  0x14   :  { %2325 = vmatprep.subr.bf16.mxu1 %v2324_v61  ;;  %v78_v22 = vld [vmem:[%s4242_s1 + $0x160] sm:$0xff]  ;;  %v79_v26 = vld [vmem:[%s4242_s1 + $0x168] sm:$0xff]  ;;  %v96_v29 = vld [vmem:[%s4242_s1 + $0x1f0] sm:$0xff]  ;;  %v2302_v33 = vpack.c.bf16 %v47_v21, %v46_v20  ;;  %v2304_v35 = vpack.c.bf16 %v65_v28, %v64_v27 }
  0x15   :  { %2295 = vmatpush3.bf16.msra.mxu0 %v2294_v3  ;;  %v97_v30 = vld [vmem:[%s4242_s1 + $0x1f8] sm:$0xff]  ;;  %v463_v31 = vcombine.high %v455_v23, %v455_v23  ;;  %v462_v32 = vrot.slane %v448_v24, %v2956_v10  ;;  %v2334_v34 = vpack.c.bf16 %v79_v26, %v78_v22  ;;  %v48_v36 = vld [vmem:[%s4242_s1 + $0x70] sm:$0xff]  ;;  %v114_v42 = vld [vmem:[%s4242_s1 + $0x280] sm:$0xff] }
  0x16   :  { %2297 = vmatprep.subr.bf16.mxu0 %v2296_v6  ;;  %v49_v37 = vld [vmem:[%s4242_s1 + $0x78] sm:$0xff]  ;;  %v80_v38 = vld [vmem:[%s4242_s1 + $0x170] sm:$0xff]  ;;  %v2336_v40 = vpack.c.bf16 %v97_v30, %v96_v29  ;;  %v115_v43 = vld [vmem:[%s4242_s1 + $0x288] sm:$0xff] }
  0x17   :  { %2327 = vmatpush3.bf16.msra.mxu1 %v2326_v5  ;;  %v464_v39 = vcombine.high %v462_v32, %v462_v32  ;;  %646 = vmatprep.mubr.f32.mxu0 %v463_v31  ;;  %v81_v41 = vld [vmem:[%s4242_s1 + $0x178] sm:$0xff]  ;;  %v146_v44 = vld [vmem:[%s4242_s1 + $0x380] sm:$0xff]  ;;  %v147_v45 = vld [vmem:[%s4242_s1 + $0x388] sm:$0xff]  ;;  %v2306_v46 = vpack.c.bf16 %v49_v37, %v48_v36  ;;  %v2340_v48 = vpack.c.bf16 %v115_v43, %v114_v42 }
  0x18   :  { %2329 = vmatprep.subr.bf16.mxu1 %v2328_v11  ;;  %v2338_v47 = vpack.c.bf16 %v81_v41, %v80_v38  ;;  %v98_v49 = vld [vmem:[%s4242_s1 + $0x200] sm:$0xff]  ;;  %v99_v50 = vld [vmem:[%s4242_s1 + $0x208] sm:$0xff]  ;;  %v2372_v52 = vpack.c.bf16 %v147_v45, %v146_v44  ;;  %v116_v54 = vld [vmem:[%s4242_s1 + $0x290] sm:$0xff] }
  0x19   :  { %2299 = vmatpush3.bf16.msra.mxu0 %v2298_v16  ;;  %716 = vmatprep.mubr.f32.mxu1 %v464_v39  ;;  %v130_v51 = vld [vmem:[%s4242_s1 + $0x300] sm:$0xff]  ;;  %v131_v53 = vld [vmem:[%s4242_s1 + $0x308] sm:$0xff]  ;;  %v117_v55 = vld [vmem:[%s4242_s1 + $0x298] sm:$0xff]  ;;  %v2342_v58 = vpack.c.bf16 %v99_v50, %v98_v49 }
  0x1a   :  { %2301 = vmatprep.subr.bf16.mxu0 %v2300_v19  ;;  %v148_v56 = vld [vmem:[%s4242_s1 + $0x390] sm:$0xff]  ;;  %v149_v57 = vld [vmem:[%s4242_s1 + $0x398] sm:$0xff]  ;;  %v2374_v59 = vpack.c.bf16 %v131_v53, %v130_v51  ;;  %v2344_v60 = vpack.c.bf16 %v117_v55, %v116_v54  ;;  %v118_v2 = vld [vmem:[%s4242_s1 + $0x2a0] sm:$0xff] }
  0x1b   :  { %2331 = vmatpush3.bf16.msra.mxu1 %v2330_v17  ;;  %v100_v61 = vld [vmem:[%s4242_s1 + $0x210] sm:$0xff]  ;;  %v101_v62 = vld [vmem:[%s4242_s1 + $0x218] sm:$0xff]  ;;  %v2376_v0 = vpack.c.bf16 %v149_v57, %v148_v56  ;;  %v119_v3 = vld [vmem:[%s4242_s1 + $0x2a8] sm:$0xff] }
  0x1c   :  { %2333 = vmatprep.subr.bf16.mxu1 %v2332_v25  ;;  %v132_v63 = vld [vmem:[%s4242_s1 + $0x310] sm:$0xff]  ;;  %v133_v1 = vld [vmem:[%s4242_s1 + $0x318] sm:$0xff]  ;;  %v150_v4 = vld [vmem:[%s4242_s1 + $0x3a0] sm:$0xff]  ;;  %v2346_v6 = vpack.c.bf16 %v101_v62, %v100_v61  ;;  %v2348_v8 = vpack.c.bf16 %v119_v3, %v118_v2 }
  0x1d   :  { %2303 = vmatpush3.bf16.msra.mxu0 %v2302_v33  ;;  %v151_v5 = vld [vmem:[%s4242_s1 + $0x3a8] sm:$0xff]  ;;  %v2378_v7 = vpack.c.bf16 %v133_v1, %v132_v63  ;;  %v102_v9 = vld [vmem:[%s4242_s1 + $0x220] sm:$0xff]  ;;  %v120_v15 = vld [vmem:[%s4242_s1 + $0x2b0] sm:$0xff] }
  0x1e   :  { %2305 = vmatprep.subr.bf16.mxu0 %v2304_v35  ;;  %v103_v11 = vld [vmem:[%s4242_s1 + $0x228] sm:$0xff]  ;;  %v134_v12 = vld [vmem:[%s4242_s1 + $0x320] sm:$0xff]  ;;  %v2380_v13 = vpack.c.bf16 %v151_v5, %v150_v4  ;;  %v121_v16 = vld [vmem:[%s4242_s1 + $0x2b8] sm:$0xff] }
  0x1f   :  { %2335 = vmatpush3.bf16.msra.mxu1 %v2334_v34  ;;  %v135_v14 = vld [vmem:[%s4242_s1 + $0x328] sm:$0xff]  ;;  %v152_v17 = vld [vmem:[%s4242_s1 + $0x3b0] sm:$0xff]  ;;  %v153_v18 = vld [vmem:[%s4242_s1 + $0x3b8] sm:$0xff]  ;;  %v2350_v19 = vpack.c.bf16 %v103_v11, %v102_v9  ;;  %v2352_v22 = vpack.c.bf16 %v121_v16, %v120_v15 }
  0x20   :  { %2337 = vmatprep.subr.bf16.mxu1 %v2336_v40  ;;  %v104_v20 = vld [vmem:[%s4242_s1 + $0x230] sm:$0xff]  ;;  %v2382_v21 = vpack.c.bf16 %v135_v14, %v134_v12  ;;  %v137_v25 = vld [vmem:[%s4242_s1 + $0x338] sm:$0xff]  ;;  %v2384_v26 = vpack.c.bf16 %v153_v18, %v152_v17  ;;  %v122_v27 = vld [vmem:[%s4242_s1 + $0x2c0] sm:$0xff] }
  0x21   :  { %2307 = vmatpush3.bf16.msra.mxu0 %v2306_v46  ;;  %v136_v24 = vld [vmem:[%s4242_s1 + $0x330] sm:$0xff]  ;;  %v123_v28 = vld [vmem:[%s4242_s1 + $0x2c8] sm:$0xff]  ;;  %v154_v30 = vld [vmem:[%s4242_s1 + $0x3c0] sm:$0xff] }
  0x22   :  { %2341 = vmatprep.subr.bf16.mxu0 %v2340_v48  ;;  %v28_v29 = vld [vmem:[%s4241_s0 + $0x8] sm:$0xff]  ;;  %v2386_v35 = vpack.c.bf16 %v137_v25, %v136_v24  ;;  %v2356_v36 = vpack.c.bf16 %v123_v28, %v122_v27  ;;  %v106_v37 = vld [vmem:[%s4242_s1 + $0x240] sm:$0xff]  ;;  %v124_v44 = vld [vmem:[%s4242_s1 + $0x2d0] sm:$0xff] }
  0x23   :  { %2339 = vmatpush3.bf16.msra.mxu1 %v2338_v47  ;;  %v155_v31 = vld [vmem:[%s4242_s1 + $0x3c8] sm:$0xff]  ;;  %v465_v33 = vcombine.high %v28_v29, %v28_v29  ;;  %v138_v39 = vld [vmem:[%s4242_s1 + $0x340] sm:$0xff]  ;;  %v125_v45 = vld [vmem:[%s4242_s1 + $0x2d8] sm:$0xff] }
  0x24   :  { %2373 = vmatprep.subr.bf16.mxu1 %v2372_v52  ;;  %647 = vmatmul.mubr.f32.vlgmr.msra.gmra.mrb[0].mxu0 %v455_v23  ;;  %v105_v23 = vld [vmem:[%s4242_s1 + $0x238] sm:$0xff]  ;;  %v107_v38 = vld [vmem:[%s4242_s1 + $0x248] sm:$0xff]  ;;  %v2388_v42 = vpack.c.bf16 %v155_v31, %v154_v30  ;;  %v156_v46 = vld [vmem:[%s4242_s1 + $0x3d0] sm:$0xff]  ;;  %v2360_v51 = vpack.c.bf16 %v125_v45, %v124_v44 }
  0x25   :  { %2343 = vmatpush3.bf16.msra.mxu0 %v2342_v58  ;;  %v2354_v34 = vpack.c.bf16 %v105_v23, %v104_v20  ;;  %v3137_v41 = vrot.slane %v465_v33, %v2956_v10  ;;  %v139_v43 = vld [vmem:[%s4242_s1 + $0x348] sm:$0xff]  ;;  %v157_v47 = vld [vmem:[%s4242_s1 + $0x3d8] sm:$0xff]  ;;  %v2358_v49 = vpack.c.bf16 %v107_v38, %v106_v37  ;;  %v108_v52 = vld [vmem:[%s4242_s1 + $0x250] sm:$0xff] }
  0x26   :  { %717 = vmatmul.mubr.f32.vlgmr.msra.gmra.mrb[0].mxu1 %v462_v32  ;;  %2345 = vmatprep.subr.bf16.mxu0 %v2344_v60  ;;  %v3123_v32 = vrot.slane %v28_v29, %v2956_v10  ;;  %v2390_v50 = vpack.c.bf16 %v139_v43, %v138_v39  ;;  %v109_v53 = vld [vmem:[%s4242_s1 + $0x258] sm:$0xff]  ;;  %v140_v54 = vld [vmem:[%s4242_s1 + $0x350] sm:$0xff]  ;;  %v2392_v55 = vpack.c.bf16 %v157_v47, %v156_v46  ;;  %v126_v57 = vld [vmem:[%s4242_s1 + $0x2e0] sm:$0xff] }
  0x27   :  { %2375 = vmatpush3.bf16.msra.mxu1 %v2374_v59  ;;  %v481_v48 = vcombine.high %v3137_v41, %v3137_v41  ;;  %v141_v56 = vld [vmem:[%s4242_s1 + $0x358] sm:$0xff]  ;;  %v127_v58 = vld [vmem:[%s4242_s1 + $0x2e8] sm:$0xff]  ;;  %v158_v59 = vld [vmem:[%s4242_s1 + $0x3e0] sm:$0xff]  ;;  %v2362_v61 = vpack.c.bf16 %v109_v53, %v108_v52 }
  0x28   :  { %2377 = vmatprep.subr.bf16.mxu1 %v2376_v0  ;;  %v480_v40 = vcombine.high %v3123_v32, %v3123_v32  ;;  %v159_v60 = vld [vmem:[%s4242_s1 + $0x3e8] sm:$0xff]  ;;  %v2394_v62 = vpack.c.bf16 %v141_v56, %v140_v54  ;;  %v2364_v63 = vpack.c.bf16 %v127_v58, %v126_v57  ;;  %v110_v0 = vld [vmem:[%s4242_s1 + $0x260] sm:$0xff]  ;;  %v128_v5 = vld [vmem:[%s4242_s1 + $0x2f0] sm:$0xff] }
  0x29   :  { %2347 = vmatpush3.bf16.msra.mxu0 %v2346_v6  ;;  %856 = vmatprep.mubr.f32.mxu1 %v481_v48  ;;  %v111_v1 = vld [vmem:[%s4242_s1 + $0x268] sm:$0xff]  ;;  %v142_v2 = vld [vmem:[%s4242_s1 + $0x360] sm:$0xff]  ;;  %v2396_v3 = vpack.c.bf16 %v159_v60, %v158_v59  ;;  %v129_v6 = vld [vmem:[%s4242_s1 + $0x2f8] sm:$0xff] }
  0x2a   :  { %2349 = vmatprep.subr.bf16.mxu0 %v2348_v8  ;;  %786 = vmatprep.mubr.f32.mxu0 %v480_v40  ;;  %v143_v4 = vld [vmem:[%s4242_s1 + $0x368] sm:$0xff]  ;;  %v161_v8 = vld [vmem:[%s4242_s1 + $0x3f8] sm:$0xff]  ;;  %v2366_v9 = vpack.c.bf16 %v111_v1, %v110_v0  ;;  %v2368_v12 = vpack.c.bf16 %v129_v6, %v128_v5  ;;  %v144_v15 = vld [vmem:[%s4242_s1 + $0x370] sm:$0xff] }
  0x2b   :  { %2379 = vmatpush3.bf16.msra.mxu1 %v2378_v7  ;;  %v160_v7 = vld [vmem:[%s4242_s1 + $0x3f0] sm:$0xff]  ;;  %v2398_v11 = vpack.c.bf16 %v143_v4, %v142_v2  ;;  %v113_v14 = vld [vmem:[%s4242_s1 + $0x278] sm:$0xff]  ;;  %v178_v18 = vld [vmem:[%s4242_s1 + $0x480] sm:$0xff] }
  0x2c   :  { %2381 = vmatprep.subr.bf16.mxu1 %v2380_v13  ;;  %v112_v13 = vld [vmem:[%s4242_s1 + $0x270] sm:$0xff]  ;;  %v2400_v16 = vpack.c.bf16 %v161_v8, %v160_v7  ;;  %v145_v17 = vld [vmem:[%s4242_s1 + $0x378] sm:$0xff]  ;;  %v210_v20 = vld [vmem:[%s4242_s1 + $0x580] sm:$0xff] }
  0x2d   :  { %2351 = vmatpush3.bf16.msra.mxu0 %v2350_v19  ;;  %v179_v19 = vld [vmem:[%s4242_s1 + $0x488] sm:$0xff]  ;;  %v162_v23 = vld [vmem:[%s4242_s1 + $0x400] sm:$0xff]  ;;  %v2402_v24 = vpack.c.bf16 %v145_v17, %v144_v15  ;;  %v180_v30 = vld [vmem:[%s4242_s1 + $0x490] sm:$0xff] }
  0x2e   :  { %2353 = vmatprep.subr.bf16.mxu0 %v2352_v22  ;;  %v2370_v22 = vpack.c.bf16 %v113_v14, %v112_v13  ;;  %v2404_v25 = vpack.c.bf16 %v179_v19, %v178_v18  ;;  %v194_v27 = vld [vmem:[%s4242_s1 + $0x500] sm:$0xff]  ;;  %v195_v28 = vld [vmem:[%s4242_s1 + $0x508] sm:$0xff]  ;;  %v181_v31 = vld [vmem:[%s4242_s1 + $0x498] sm:$0xff] }
  0x2f   :  { %2383 = vmatpush3.bf16.msra.mxu1 %v2382_v21  ;;  %v211_v21 = vld [vmem:[%s4242_s1 + $0x588] sm:$0xff]  ;;  %v212_v33 = vld [vmem:[%s4242_s1 + $0x590] sm:$0xff]  ;;  %v2408_v38 = vpack.c.bf16 %v181_v31, %v180_v30  ;;  %v165_v40 = vld [vmem:[%s4242_s1 + $0x418] sm:$0xff] }
  0x30   :  { %2385 = vmatprep.subr.bf16.mxu1 %v2384_v26  ;;  %v163_v26 = vld [vmem:[%s4242_s1 + $0x408] sm:$0xff]  ;;  %v2436_v29 = vpack.c.bf16 %v211_v21, %v210_v20  ;;  %v29_v37 = vld [vmem:[%s4241_s0 + $0x10] sm:$0xff]  ;;  %v197_v46 = vld [vmem:[%s4242_s1 + $0x518] sm:$0xff] }
  0x31   :  { %2355 = vmatpush3.bf16.msra.mxu0 %v2354_v34  ;;  %v213_v34 = vld [vmem:[%s4242_s1 + $0x598] sm:$0xff]  ;;  %v164_v39 = vld [vmem:[%s4242_s1 + $0x410] sm:$0xff]  ;;  %v3265_v43 = vrot.slane %v29_v37, %v2956_v10  ;;  %v482_v44 = vcombine.high %v29_v37, %v29_v37  ;;  %v182_v47 = vld [vmem:[%s4242_s1 + $0x4a0] sm:$0xff] }
  0x32   :  { %2357 = vmatprep.subr.bf16.mxu0 %v2356_v36  ;;  %v2438_v36 = vpack.c.bf16 %v195_v28, %v194_v27  ;;  %v2440_v45 = vpack.c.bf16 %v213_v34, %v212_v33  ;;  %v183_v48 = vld [vmem:[%s4242_s1 + $0x4a8] sm:$0xff]  ;;  %v2410_v53 = vpack.c.bf16 %v165_v40, %v164_v39  ;;  %v198_v57 = vld [vmem:[%s4242_s1 + $0x520] sm:$0xff]  ;;  %v184_v60 = vld [vmem:[%s4242_s1 + $0x4b0] sm:$0xff] }
  0x33   :  { %2387 = vmatpush3.bf16.msra.mxu1 %v2386_v35  ;;  %v2406_v35 = vpack.c.bf16 %v163_v26, %v162_v23  ;;  %v3286_v52 = vrot.slane %v482_v44, %v2956_v10  ;;  %v2412_v54 = vpack.c.bf16 %v183_v48, %v182_v47  ;;  %v167_v56 = vld [vmem:[%s4242_s1 + $0x428] sm:$0xff]  ;;  %v169_v4 = vld [vmem:[%s4242_s1 + $0x438] sm:$0xff]  ;;  %v200_v5 = vld [vmem:[%s4242_s1 + $0x530] sm:$0xff] }
  0x34   :  { %2389 = vmatprep.subr.bf16.mxu1 %v2388_v42  ;;  %v196_v42 = vld [vmem:[%s4242_s1 + $0x510] sm:$0xff]  ;;  %v199_v59 = vld [vmem:[%s4242_s1 + $0x528] sm:$0xff]  ;;  %v201_v7 = vld [vmem:[%s4242_s1 + $0x538] sm:$0xff] }
  0x35   :  { %2359 = vmatpush3.bf16.msra.mxu0 %v2358_v49  ;;  %v214_v49 = vld [vmem:[%s4242_s1 + $0x5a0] sm:$0xff]  ;;  %v2446_v1 = vpack.c.bf16 %v199_v59, %v198_v57  ;;  %v2450_v14 = vpack.c.bf16 %v201_v7, %v200_v5  ;;  %v171_v17 = vld [vmem:[%s4242_s1 + $0x448] sm:$0xff]  ;;  %v188_v21 = vld [vmem:[%s4242_s1 + $0x4d0] sm:$0xff] }
  0x36   :  { %2361 = vmatprep.subr.bf16.mxu0 %v2360_v51  ;;  %v497_v51 = vcombine.high %v3265_v43, %v3265_v43  ;;  %v186_v8 = vld [vmem:[%s4242_s1 + $0x4c0] sm:$0xff]  ;;  %v203_v20 = vld [vmem:[%s4242_s1 + $0x548] sm:$0xff]  ;;  %v220_v23 = vld [vmem:[%s4242_s1 + $0x5d0] sm:$0xff] }
  0x37   :  { %2391 = vmatpush3.bf16.msra.mxu1 %v2390_v50  ;;  %v215_v50 = vld [vmem:[%s4242_s1 + $0x5a8] sm:$0xff]  ;;  %v202_v18 = vld [vmem:[%s4242_s1 + $0x540] sm:$0xff]  ;;  %v172_v28 = vld [vmem:[%s4242_s1 + $0x450] sm:$0xff] }
  0x38   :  { %2393 = vmatprep.subr.bf16.mxu1 %v2392_v55  ;;  %v166_v55 = vld [vmem:[%s4242_s1 + $0x420] sm:$0xff]  ;;  %v2444_v58 = vpack.c.bf16 %v215_v50, %v214_v49  ;;  %v2454_v26 = vpack.c.bf16 %v203_v20, %v202_v18  ;;  %v204_v30 = vld [vmem:[%s4242_s1 + $0x550] sm:$0xff]  ;;  %v205_v33 = vld [vmem:[%s4242_s1 + $0x558] sm:$0xff] }
  0x39   :  { %2363 = vmatpush3.bf16.msra.mxu0 %v2362_v61  ;;  %v185_v61 = vld [vmem:[%s4242_s1 + $0x4b8] sm:$0xff]  ;;  %v2414_v0 = vpack.c.bf16 %v167_v56, %v166_v55  ;;  %v190_v34 = vld [vmem:[%s4242_s1 + $0x4e0] sm:$0xff]  ;;  %v223_v37 = vld [vmem:[%s4242_s1 + $0x5e8] sm:$0xff]  ;;  %v2458_v39 = vpack.c.bf16 %v205_v33, %v204_v30 }
  0x3a   :  { %2365 = vmatprep.subr.bf16.mxu0 %v2364_v63  ;;  %v217_v63 = vld [vmem:[%s4242_s1 + $0x5b8] sm:$0xff]  ;;  %v2416_v2 = vpack.c.bf16 %v185_v61, %v184_v60  ;;  %v175_v44 = vld [vmem:[%s4242_s1 + $0x468] sm:$0xff]  ;;  %v192_v48 = vld [vmem:[%s4242_s1 + $0x4f0] sm:$0xff] }
  0x3b   :  { %2395 = vmatpush3.bf16.msra.mxu1 %v2394_v62  ;;  %v216_v62 = vld [vmem:[%s4242_s1 + $0x5b0] sm:$0xff]  ;;  %v207_v47 = vld [vmem:[%s4242_s1 + $0x568] sm:$0xff]  ;;  %v193_v49 = vld [vmem:[%s4242_s1 + $0x4f8] sm:$0xff] }
  0x3c   :  { %2397 = vmatprep.subr.bf16.mxu1 %v2396_v3  ;;  %v168_v3 = vld [vmem:[%s4242_s1 + $0x430] sm:$0xff]  ;;  %v2448_v6 = vpack.c.bf16 %v217_v63, %v216_v62  ;;  %v2432_v55 = vpack.c.bf16 %v193_v49, %v192_v48  ;;  %v177_v57 = vld [vmem:[%s4242_s1 + $0x478] sm:$0xff]  ;;  %v242_v60 = vld [vmem:[%s4242_s1 + $0x680] sm:$0xff] }
  0x3d   :  { %2367 = vmatpush3.bf16.msra.mxu0 %v2366_v9  ;;  %v187_v9 = vld [vmem:[%s4242_s1 + $0x4c8] sm:$0xff]  ;;  %v2418_v13 = vpack.c.bf16 %v169_v4, %v168_v3  ;;  %v224_v50 = vld [vmem:[%s4242_s1 + $0x5f0] sm:$0xff]  ;;  %v209_v59 = vld [vmem:[%s4242_s1 + $0x578] sm:$0xff] }
  0x3e   :  { %2369 = vmatprep.subr.bf16.mxu0 %v2368_v12  ;;  %v219_v12 = vld [vmem:[%s4242_s1 + $0x5c8] sm:$0xff]  ;;  %v2420_v15 = vpack.c.bf16 %v187_v9, %v186_v8  ;;  %v176_v56 = vld [vmem:[%s4242_s1 + $0x470] sm:$0xff]  ;;  %v274_v62 = vld [vmem:[%s4242_s1 + $0x780] sm:$0xff] }
  0x3f   :  { %2399 = vmatpush3.bf16.msra.mxu1 %v2398_v11  ;;  %v218_v11 = vld [vmem:[%s4242_s1 + $0x5c0] sm:$0xff]  ;;  %v243_v61 = vld [vmem:[%s4242_s1 + $0x688] sm:$0xff]  ;;  %v244_v9 = vld [vmem:[%s4242_s1 + $0x690] sm:$0xff] }
  0x40   :  { %2401 = vmatprep.subr.bf16.mxu1 %v2400_v16  ;;  %v170_v16 = vld [vmem:[%s4242_s1 + $0x440] sm:$0xff]  ;;  %v2452_v19 = vpack.c.bf16 %v219_v12, %v218_v11  ;;  %v275_v63 = vld [vmem:[%s4242_s1 + $0x788] sm:$0xff]  ;;  %v2468_v3 = vpack.c.bf16 %v243_v61, %v242_v60  ;;  %v245_v11 = vld [vmem:[%s4242_s1 + $0x698] sm:$0xff] }
  0x41   :  { %2371 = vmatpush3.bf16.msra.mxu0 %v2370_v22  ;;  %v189_v22 = vld [vmem:[%s4242_s1 + $0x4d8] sm:$0xff]  ;;  %v226_v4 = vld [vmem:[%s4242_s1 + $0x600] sm:$0xff]  ;;  %v227_v5 = vld [vmem:[%s4242_s1 + $0x608] sm:$0xff]  ;;  %v2500_v7 = vpack.c.bf16 %v275_v63, %v274_v62  ;;  %v2472_v18 = vpack.c.bf16 %v245_v11, %v244_v9 }
  0x42   :  { %2405 = vmatprep.subr.bf16.mxu0 %v2404_v25  ;;  %v2422_v25 = vpack.c.bf16 %v171_v17, %v170_v16  ;;  %v2424_v27 = vpack.c.bf16 %v189_v22, %v188_v21  ;;  %v259_v8 = vld [vmem:[%s4242_s1 + $0x708] sm:$0xff]  ;;  %v2470_v16 = vpack.c.bf16 %v227_v5, %v226_v4  ;;  %v229_v20 = vld [vmem:[%s4242_s1 + $0x618] sm:$0xff]  ;;  %v260_v21 = vld [vmem:[%s4242_s1 + $0x710] sm:$0xff] }
  0x43   :  { %2403 = vmatpush3.bf16.msra.mxu1 %v2402_v24  ;;  %v221_v24 = vld [vmem:[%s4242_s1 + $0x5d8] sm:$0xff]  ;;  %v264_v48 = vld [vmem:[%s4242_s1 + $0x730] sm:$0xff]  ;;  %v267_v61 = vld [vmem:[%s4242_s1 + $0x748] sm:$0xff] }
  0x44   :  { %2437 = vmatprep.subr.bf16.mxu1 %v2436_v29  ;;  %787 = vmatmul.mubr.f32.vlgmr.msra.gmra.mrb[2].mxu0 %v3123_v32  ;;  %v2442_v32 = vpack.c.bf16 %v197_v46, %v196_v42  ;;  %v173_v29 = vld [vmem:[%s4242_s1 + $0x458] sm:$0xff]  ;;  %v2456_v31 = vpack.c.bf16 %v221_v24, %v220_v23  ;;  %v174_v42 = vld [vmem:[%s4242_s1 + $0x460] sm:$0xff]  ;;  %v252_v62 = vld [vmem:[%s4242_s1 + $0x6d0] sm:$0xff] }
  0x45   :  { %2407 = vmatpush3.bf16.msra.mxu0 %v2406_v35  ;;  %926 = vmatprep.mubr.f32.mxu0 %v497_v51  ;;  %v191_v35 = vld [vmem:[%s4242_s1 + $0x4e8] sm:$0xff]  ;;  %v225_v51 = vld [vmem:[%s4242_s1 + $0x5f8] sm:$0xff]  ;;  %v246_v24 = vld [vmem:[%s4242_s1 + $0x6a0] sm:$0xff] }
  0x46   :  { %857 = vmatmul.mubr.f32.vlgmr.msra.gmra.mrb[2].mxu1 %v3137_v41  ;;  %2409 = vmatprep.subr.bf16.mxu0 %v2408_v38  ;;  %v498_v41 = vcombine.high %v3286_v52, %v3286_v52  ;;  %v2426_v38 = vpack.c.bf16 %v173_v29, %v172_v28  ;;  %v2428_v40 = vpack.c.bf16 %v191_v35, %v190_v34  ;;  %v261_v23 = vld [vmem:[%s4242_s1 + $0x718] sm:$0xff]  ;;  %v279_v28 = vld [vmem:[%s4242_s1 + $0x7a8] sm:$0xff]  ;;  %v262_v35 = vld [vmem:[%s4242_s1 + $0x720] sm:$0xff] }
  0x47   :  { %2439 = vmatpush3.bf16.msra.mxu1 %v2438_v36  ;;  %v222_v36 = vld [vmem:[%s4242_s1 + $0x5e0] sm:$0xff]  ;;  %v231_v34 = vld [vmem:[%s4242_s1 + $0x628] sm:$0xff]  ;;  %v253_v63 = vld [vmem:[%s4242_s1 + $0x6d8] sm:$0xff] }
  0x48   :  { %2441 = vmatprep.subr.bf16.mxu1 %v2440_v45  ;;  %996 = vmatprep.mubr.f32.mxu1 %v498_v41  ;;  %v206_v45 = vld [vmem:[%s4242_s1 + $0x560] sm:$0xff]  ;;  %v2460_v46 = vpack.c.bf16 %v223_v37, %v222_v36  ;;  %v208_v41 = vld [vmem:[%s4242_s1 + $0x570] sm:$0xff]  ;;  %v2488_v4 = vpack.c.bf16 %v253_v63, %v252_v62  ;;  %v269_v9 = vld [vmem:[%s4242_s1 + $0x758] sm:$0xff] }
  0x49   :  { %2411 = vmatpush3.bf16.msra.mxu0 %v2410_v53  ;;  %v2430_v53 = vpack.c.bf16 %v175_v44, %v174_v42  ;;  %v248_v37 = vld [vmem:[%s4242_s1 + $0x6b0] sm:$0xff]  ;;  %v254_v11 = vld [vmem:[%s4242_s1 + $0x6e0] sm:$0xff] }
  0x4a   :  { %2413 = vmatprep.subr.bf16.mxu0 %v2412_v54  ;;  %v2462_v54 = vpack.c.bf16 %v207_v47, %v206_v45  ;;  %v233_v47 = vld [vmem:[%s4242_s1 + $0x638] sm:$0xff]  ;;  %v236_v5 = vld [vmem:[%s4242_s1 + $0x650] sm:$0xff] }
  0x4b   :  { %2443 = vmatpush3.bf16.msra.mxu1 %v2442_v32  ;;  %v30_v32 = vld [vmem:[%s4241_s0 + $0x18] sm:$0xff]  ;;  %v324_v62 = vld [vmem:[%s4242_s1 + $0x910] sm:$0xff] }
  0x4c   :  { %2445 = vmatprep.subr.bf16.mxu1 %v2444_v58  ;;  %v2464_v58 = vpack.c.bf16 %v225_v51, %v224_v50  ;;  %v3457_v12 = vrot.slane %v30_v32, %v2956_v10  ;;  %v265_v50 = vld [vmem:[%s4242_s1 + $0x738] sm:$0xff]  ;;  %v250_v51 = vld [vmem:[%s4242_s1 + $0x6c0] sm:$0xff] }
  0x4d   :  { %2415 = vmatpush3.bf16.msra.mxu0 %v2414_v0  ;;  %v499_v0 = vcombine.high %v30_v32, %v30_v32  ;;  %v282_v32 = vld [vmem:[%s4242_s1 + $0x7c0] sm:$0xff] }
  0x4e   :  { %2417 = vmatprep.subr.bf16.mxu0 %v2416_v2  ;;  %v2466_v2 = vpack.c.bf16 %v209_v59, %v208_v41  ;;  %v234_v41 = vld [vmem:[%s4242_s1 + $0x640] sm:$0xff] }
  0x4f   :  { %2447 = vmatpush3.bf16.msra.mxu1 %v2446_v1  ;;  %v2434_v1 = vpack.c.bf16 %v177_v57, %v176_v56  ;;  %v2514_v56 = vpack.c.bf16 %v265_v50, %v264_v48  ;;  %v266_v59 = vld [vmem:[%s4242_s1 + $0x740] sm:$0xff]  ;;  %v291_v48 = vld [vmem:[%s4242_s1 + $0x808] sm:$0xff] }
  0x50   :  { %2449 = vmatprep.subr.bf16.mxu1 %v2448_v6  ;;  %v258_v6 = vld [vmem:[%s4242_s1 + $0x700] sm:$0xff] }
  0x51   :  { %2419 = vmatpush3.bf16.msra.mxu0 %v2418_v13  ;;  %v276_v13 = vld [vmem:[%s4242_s1 + $0x790] sm:$0xff]  ;;  %v2502_v17 = vpack.c.bf16 %v259_v8, %v258_v6  ;;  %v237_v6 = vld [vmem:[%s4242_s1 + $0x658] sm:$0xff] }
  0x52   :  { %2421 = vmatprep.subr.bf16.mxu0 %v2420_v15  ;;  %v3466_v15 = vrot.slane %v499_v0, %v2956_v10  ;;  %v284_v0 = vld [vmem:[%s4242_s1 + $0x7d0] sm:$0xff] }
  0x53   :  { %2451 = vmatpush3.bf16.msra.mxu1 %v2450_v14  ;;  %v277_v14 = vld [vmem:[%s4242_s1 + $0x798] sm:$0xff] }
  0x54   :  { %2453 = vmatprep.subr.bf16.mxu1 %v2452_v19  ;;  %v228_v19 = vld [vmem:[%s4242_s1 + $0x610] sm:$0xff]  ;;  %v2504_v22 = vpack.c.bf16 %v277_v14, %v276_v13  ;;  %v515_v29 = vcombine.high %v3466_v15, %v3466_v15  ;;  %v255_v13 = vld [vmem:[%s4242_s1 + $0x6e8] sm:$0xff]  ;;  %v286_v14 = vld [vmem:[%s4242_s1 + $0x7e0] sm:$0xff] }
  0x55   :  { %2423 = vmatpush3.bf16.msra.mxu0 %v2422_v25  ;;  %v247_v25 = vld [vmem:[%s4242_s1 + $0x6a8] sm:$0xff]  ;;  %v2474_v30 = vpack.c.bf16 %v229_v20, %v228_v19  ;;  %v2492_v19 = vpack.c.bf16 %v255_v13, %v254_v11  ;;  %v238_v20 = vld [vmem:[%s4242_s1 + $0x660] sm:$0xff] }
  0x56   :  { %2425 = vmatprep.subr.bf16.mxu0 %v2424_v27  ;;  %v278_v27 = vld [vmem:[%s4242_s1 + $0x7a0] sm:$0xff]  ;;  %v2476_v33 = vpack.c.bf16 %v247_v25, %v246_v24  ;;  %v271_v24 = vld [vmem:[%s4242_s1 + $0x768] sm:$0xff]  ;;  %v256_v25 = vld [vmem:[%s4242_s1 + $0x6f0] sm:$0xff] }
  0x57   :  { %2455 = vmatpush3.bf16.msra.mxu1 %v2454_v26  ;;  %v514_v26 = vcombine.high %v3457_v12, %v3457_v12  ;;  %v2508_v36 = vpack.c.bf16 %v279_v28, %v278_v27  ;;  %v288_v27 = vld [vmem:[%s4242_s1 + $0x7f0] sm:$0xff]  ;;  %v289_v28 = vld [vmem:[%s4242_s1 + $0x7f8] sm:$0xff]  ;;  %v295_v11 = vld [vmem:[%s4242_s1 + $0x828] sm:$0xff] }
  0x58   :  { %2457 = vmatprep.subr.bf16.mxu1 %v2456_v31  ;;  %v2506_v31 = vpack.c.bf16 %v261_v23, %v260_v21  ;;  %v239_v21 = vld [vmem:[%s4242_s1 + $0x668] sm:$0xff]  ;;  %v326_v13 = vld [vmem:[%s4242_s1 + $0x920] sm:$0xff] }
  0x59   :  { %2427 = vmatpush3.bf16.msra.mxu0 %v2426_v38  ;;  %v249_v38 = vld [vmem:[%s4242_s1 + $0x6b8] sm:$0xff] }
  0x5a   :  { %2429 = vmatprep.subr.bf16.mxu0 %v2428_v40  ;;  %v281_v40 = vld [vmem:[%s4242_s1 + $0x7b8] sm:$0xff]  ;;  %v2480_v45 = vpack.c.bf16 %v249_v38, %v248_v37  ;;  %v306_v37 = vld [vmem:[%s4242_s1 + $0x880] sm:$0xff]  ;;  %v307_v38 = vld [vmem:[%s4242_s1 + $0x888] sm:$0xff] }
  0x5b   :  { %2459 = vmatpush3.bf16.msra.mxu1 %v2458_v39  ;;  %v280_v39 = vld [vmem:[%s4242_s1 + $0x7b0] sm:$0xff] }
  0x5c   :  { %2461 = vmatprep.subr.bf16.mxu1 %v2460_v46  ;;  %v232_v46 = vld [vmem:[%s4242_s1 + $0x630] sm:$0xff]  ;;  %v2512_v49 = vpack.c.bf16 %v281_v40, %v280_v39  ;;  %v338_v39 = vld [vmem:[%s4242_s1 + $0x980] sm:$0xff]  ;;  %v339_v40 = vld [vmem:[%s4242_s1 + $0x988] sm:$0xff] }
  0x5d   :  { %2431 = vmatpush3.bf16.msra.mxu0 %v2430_v53  ;;  %v251_v53 = vld [vmem:[%s4242_s1 + $0x6c8] sm:$0xff]  ;;  %v2564_v50 = vpack.c.bf16 %v339_v40, %v338_v39 }
  0x5e   :  { %2433 = vmatprep.subr.bf16.mxu0 %v2432_v55  ;;  %v2482_v55 = vpack.c.bf16 %v233_v47, %v232_v46  ;;  %v2484_v57 = vpack.c.bf16 %v251_v53, %v250_v51  ;;  %v2532_v46 = vpack.c.bf16 %v307_v38, %v306_v37  ;;  %v290_v47 = vld [vmem:[%s4242_s1 + $0x800] sm:$0xff]  ;;  %v323_v51 = vld [vmem:[%s4242_s1 + $0x908] sm:$0xff]  ;;  %v308_v53 = vld [vmem:[%s4242_s1 + $0x890] sm:$0xff] }
  0x5f   :  { %2463 = vmatpush3.bf16.msra.mxu1 %v2462_v54  ;;  %v283_v54 = vld [vmem:[%s4242_s1 + $0x7c8] sm:$0xff] }
  0x60   :  { %2465 = vmatprep.subr.bf16.mxu1 %v2464_v58  ;;  %v235_v58 = vld [vmem:[%s4242_s1 + $0x648] sm:$0xff]  ;;  %v2516_v60 = vpack.c.bf16 %v283_v54, %v282_v32  ;;  %v309_v32 = vld [vmem:[%s4242_s1 + $0x898] sm:$0xff] }
  0x61   :  { %2435 = vmatpush3.bf16.msra.mxu0 %v2434_v1  ;;  %v285_v1 = vld [vmem:[%s4242_s1 + $0x7d8] sm:$0xff] }
  0x62   :  { %2469 = vmatprep.subr.bf16.mxu0 %v2468_v3  ;;  %v2518_v3 = vpack.c.bf16 %v267_v61, %v266_v59  ;;  %v2520_v8 = vpack.c.bf16 %v285_v1, %v284_v0  ;;  %v2536_v59 = vpack.c.bf16 %v309_v32, %v308_v53  ;;  %v293_v61 = vld [vmem:[%s4242_s1 + $0x818] sm:$0xff]  ;;  %v310_v1 = vld [vmem:[%s4242_s1 + $0x8a0] sm:$0xff] }
  0x63   :  { %2467 = vmatpush3.bf16.msra.mxu1 %v2466_v2  ;;  %v2486_v2 = vpack.c.bf16 %v235_v58, %v234_v41  ;;  %v2534_v41 = vpack.c.bf16 %v291_v48, %v290_v47  ;;  %v325_v0 = vld [vmem:[%s4242_s1 + $0x918] sm:$0xff] }
  0x64   :  { %2501 = vmatprep.subr.bf16.mxu1 %v2500_v7  ;;  %927 = vmatmul.mubr.f32.vlgmr.msra.gmra.mrb[4].mxu0 %v3265_v43  ;;  %v230_v43 = vld [vmem:[%s4242_s1 + $0x620] sm:$0xff]  ;;  %v268_v7 = vld [vmem:[%s4242_s1 + $0x750] sm:$0xff] }
  0x65   :  { %2471 = vmatpush3.bf16.msra.mxu0 %v2470_v16  ;;  %1066 = vmatprep.mubr.f32.mxu0 %v514_v26  ;;  %v2478_v42 = vpack.c.bf16 %v231_v34, %v230_v43  ;;  %v287_v16 = vld [vmem:[%s4242_s1 + $0x7e8] sm:$0xff]  ;;  %v257_v26 = vld [vmem:[%s4242_s1 + $0x6f8] sm:$0xff]  ;;  %v240_v43 = vld [vmem:[%s4242_s1 + $0x670] sm:$0xff] }
  0x66   :  { %997 = vmatmul.mubr.f32.vlgmr.msra.gmra.mrb[4].mxu1 %v3286_v52  ;;  %2473 = vmatprep.subr.bf16.mxu0 %v2472_v18  ;;  %v263_v52 = vld [vmem:[%s4242_s1 + $0x728] sm:$0xff]  ;;  %v2522_v18 = vpack.c.bf16 %v269_v9, %v268_v7  ;;  %v2524_v23 = vpack.c.bf16 %v287_v16, %v286_v14  ;;  %v241_v34 = vld [vmem:[%s4242_s1 + $0x678] sm:$0xff]  ;;  %v312_v16 = vld [vmem:[%s4242_s1 + $0x8b0] sm:$0xff] }
  0x67   :  { %2503 = vmatpush3.bf16.msra.mxu1 %v2502_v17  ;;  %1136 = vmatprep.mubr.f32.mxu1 %v515_v29  ;;  %v2510_v44 = vpack.c.bf16 %v263_v52, %v262_v35  ;;  %v2490_v17 = vpack.c.bf16 %v237_v6, %v236_v5  ;;  %v2494_v29 = vpack.c.bf16 %v239_v21, %v238_v20  ;;  %v272_v35 = vld [vmem:[%s4242_s1 + $0x770] sm:$0xff]  ;;  %v273_v52 = vld [vmem:[%s4242_s1 + $0x778] sm:$0xff]  ;;  %v343_v5 = vld [vmem:[%s4242_s1 + $0x9a8] sm:$0xff] }
  0x68   :  { %2505 = vmatprep.subr.bf16.mxu1 %v2504_v22  ;;  %v270_v22 = vld [vmem:[%s4242_s1 + $0x760] sm:$0xff] }
  0x69   :  { %2475 = vmatpush3.bf16.msra.mxu0 %v2474_v30  ;;  %v31_v30 = vld [vmem:[%s4241_s0 + $0x20] sm:$0xff] }
  0x6a   :  { %2477 = vmatprep.subr.bf16.mxu0 %v2476_v33  ;;  %v2496_v33 = vpack.c.bf16 %v257_v26, %v256_v25  ;;  %v3664_v54 = vrot.slane %v31_v30, %v2956_v10 }
  0x6b   :  { %2507 = vmatpush3.bf16.msra.mxu1 %v2506_v31  ;;  %v2526_v31 = vpack.c.bf16 %v271_v24, %v270_v22 }
  0x6c   :  { %2509 = vmatprep.subr.bf16.mxu1 %v2508_v36  ;;  %v2528_v36 = vpack.c.bf16 %v289_v28, %v288_v27 }
  0x6d   :  { %2479 = vmatpush3.bf16.msra.mxu0 %v2478_v42  ;;  %v516_v42 = vcombine.high %v31_v30, %v31_v30 }
  0x6e   :  { %2481 = vmatprep.subr.bf16.mxu0 %v2480_v45  ;;  %v2530_v45 = vpack.c.bf16 %v273_v52, %v272_v35 }
  0x6f   :  { %2511 = vmatpush3.bf16.msra.mxu1 %v2510_v44  ;;  %v2498_v44 = vpack.c.bf16 %v241_v34, %v240_v43 }
  0x70   :  { %2513 = vmatprep.subr.bf16.mxu1 %v2512_v49  ;;  %v322_v49 = vld [vmem:[%s4242_s1 + $0x900] sm:$0xff] }
  0x71   :  { %2483 = vmatpush3.bf16.msra.mxu0 %v2482_v55  ;;  %v340_v55 = vld [vmem:[%s4242_s1 + $0x990] sm:$0xff]  ;;  %v2566_v58 = vpack.c.bf16 %v323_v51, %v322_v49 }
  0x72   :  { %2485 = vmatprep.subr.bf16.mxu0 %v2484_v57  ;;  %v3673_v57 = vrot.slane %v516_v42, %v2956_v10 }
  0x73   :  { %2515 = vmatpush3.bf16.msra.mxu1 %v2514_v56  ;;  %v341_v56 = vld [vmem:[%s4242_s1 + $0x998] sm:$0xff] }
  0x74   :  { %2517 = vmatprep.subr.bf16.mxu1 %v2516_v60  ;;  %v292_v60 = vld [vmem:[%s4242_s1 + $0x810] sm:$0xff]  ;;  %v2568_v63 = vpack.c.bf16 %v341_v56, %v340_v55  ;;  %v532_v6 = vcombine.high %v3673_v57, %v3673_v57 }
  0x75   :  { %2487 = vmatpush3.bf16.msra.mxu0 %v2486_v2  ;;  %v311_v2 = vld [vmem:[%s4242_s1 + $0x8a8] sm:$0xff]  ;;  %v2538_v7 = vpack.c.bf16 %v293_v61, %v292_v60 }
  0x76   :  { %2489 = vmatprep.subr.bf16.mxu0 %v2488_v4  ;;  %v342_v4 = vld [vmem:[%s4242_s1 + $0x9a0] sm:$0xff]  ;;  %v2540_v9 = vpack.c.bf16 %v311_v2, %v310_v1 }
  0x77   :  { %2519 = vmatpush3.bf16.msra.mxu1 %v2518_v3  ;;  %v531_v3 = vcombine.high %v3664_v54, %v3664_v54  ;;  %v2572_v14 = vpack.c.bf16 %v343_v5, %v342_v4 }
  0x78   :  { %2521 = vmatprep.subr.bf16.mxu1 %v2520_v8  ;;  %v2570_v8 = vpack.c.bf16 %v325_v0, %v324_v62 }
  0x79   :  { %2491 = vmatpush3.bf16.msra.mxu0 %v2490_v17  ;;  %v313_v17 = vld [vmem:[%s4242_s1 + $0x8b8] sm:$0xff] }
  0x7a   :  { %2493 = vmatprep.subr.bf16.mxu0 %v2492_v19  ;;  %v345_v19 = vld [vmem:[%s4242_s1 + $0x9b8] sm:$0xff] }
  0x7b   :  { %2523 = vmatpush3.bf16.msra.mxu1 %v2522_v18  ;;  %v344_v18 = vld [vmem:[%s4242_s1 + $0x9b0] sm:$0xff] }
  0x7c   :  { %2525 = vmatprep.subr.bf16.mxu1 %v2524_v23 }
  0x7d   :  { %2495 = vmatpush3.bf16.msra.mxu0 %v2494_v29 }
  0x7e   :  { %2497 = vmatprep.subr.bf16.mxu0 %v2496_v33 }
  0x7f   :  { %2527 = vmatpush3.bf16.msra.mxu1 %v2526_v31 }
  0x80   :  { %2529 = vmatprep.subr.bf16.mxu1 %v2528_v36 }
  0x81   :  { %2499 = vmatpush3.bf16.msra.mxu0 %v2498_v44 }
  0x82   :  { %2533 = vmatprep.subr.bf16.mxu0 %v2532_v46 }
  0x83   :  { %2531 = vmatpush3.bf16.msra.mxu1 %v2530_v45 }
  0x84   :  { %2565 = vmatprep.subr.bf16.mxu1 %v2564_v50  ;;  %1067 = vmatmul.mubr.f32.vlgmr.msra.gmra.mrb[6].mxu0 %v3457_v12  ;;  %v294_v12 = vld [vmem:[%s4242_s1 + $0x820] sm:$0xff] }
  0x85   :  { %2535 = vmatpush3.bf16.msra.mxu0 %v2534_v41  ;;  %1206 = vmatprep.mubr.f32.mxu0 %v531_v3  ;;  %v2542_v20 = vpack.c.bf16 %v295_v11, %v294_v12 }
  0x86   :  { %1137 = vmatmul.mubr.f32.vlgmr.msra.gmra.mrb[6].mxu1 %v3466_v15  ;;  %2537 = vmatprep.subr.bf16.mxu0 %v2536_v59  ;;  %v327_v15 = vld [vmem:[%s4242_s1 + $0x928] sm:$0xff] }
  0x87   :  { %2567 = vmatpush3.bf16.msra.mxu1 %v2566_v58  ;;  %1276 = vmatprep.mubr.f32.mxu1 %v532_v6 }
  0x88   :  { %2569 = vmatprep.subr.bf16.mxu1 %v2568_v63 }
  0x89   :  { %2539 = vmatpush3.bf16.msra.mxu0 %v2538_v7 }
  0x8a   :  { %12 = vsyncpa [#allocation3], 0  ;;  %2541 = vmatprep.subr.bf16.mxu0 %v2540_v9  ;;  %v2574_v21 = vpack.c.bf16 %v327_v15, %v326_v13  ;;  %v2544_v22 = vpack.c.bf16 %v313_v17, %v312_v16  ;;  %v296_v23 = vld [vmem:[%s4242_s1 + $0x830] sm:$0xff]  ;;  %v297_v24 = vld [vmem:[%s4242_s1 + $0x838] sm:$0xff]  ;;  %v2576_v26 = vpack.c.bf16 %v345_v19, %v344_v18  ;;  %vm2769_vm0 = vmmov 0   ;;  %s2771_s23 = smov [#allocation2]  }
  0x8b   :  { %2571 = vmatpush3.bf16.msra.mxu1 %v2570_v8  ;;  %v328_v25 = vld [vmem:[%s4242_s1 + $0x930] sm:$0xff]  ;;  %v329_v27 = vld [vmem:[%s4242_s1 + $0x938] sm:$0xff]  ;;  %v314_v28 = vld [vmem:[%s4242_s1 + $0x8c0] sm:$0xff]  ;;  %v2546_v33 = vpack.c.bf16 %v297_v24, %v296_v23  ;;  %s1688_s24 = sshll.u32 %s2771_s23, 4  ;;  %vm1680_vm1 = vcmask 74752   ;;  %s1689_s24 = int_to_ptr.vmem [resolvable:$true] %s1688_s24 }
  0x8c   :  { %2573 = vmatprep.subr.bf16.mxu1 %v2572_v14  ;;  %v315_v29 = vld [vmem:[%s4242_s1 + $0x8c8] sm:$0xff]  ;;  %v346_v30 = vld [vmem:[%s4242_s1 + $0x9c0] sm:$0xff]  ;;  %v2578_v43 = vpack.c.bf16 %v329_v27, %v328_v25  ;;  %v316_v39 = vld [vmem:[%s4242_s1 + $0x8d0] sm:$0xff]  ;;  %p2748_p1 = scmp.lt.s32.totalorder %s1689_s24, %s1689_s24 }
  0x8d   :  { %v347_v31 = vld [vmem:[%s4242_s1 + $0x9c8] sm:$0xff]  ;;  %2543 = vmatpush3.bf16.msra.mxu0 %v2542_v20  ;;  %v2548_v34 = vpack.c.bf16 %v315_v29, %v314_v28  ;;  %v298_v35 = vld [vmem:[%s4242_s1 + $0x840] sm:$0xff]  ;;  %v317_v40 = vld [vmem:[%s4242_s1 + $0x8d8] sm:$0xff] }
  0x8e   :  { %2545 = vmatprep.subr.bf16.mxu0 %v2544_v22  ;;  %v299_v36 = vld [vmem:[%s4242_s1 + $0x848] sm:$0xff]  ;;  %v330_v52 = vld [vmem:[%s4242_s1 + $0x940] sm:$0xff]  ;;  %v2580_v37 = vpack.c.bf16 %v347_v31, %v346_v30  ;;  %v348_v42 = vld [vmem:[%s4242_s1 + $0x9d0] sm:$0xff]  ;;  %v2552_v47 = vpack.c.bf16 %v317_v40, %v316_v39 }
  0x8f   :  { %2575 = vmatpush3.bf16.msra.mxu1 %v2574_v21  ;;  %v331_v38 = vld [vmem:[%s4242_s1 + $0x948] sm:$0xff]  ;;  %v349_v44 = vld [vmem:[%s4242_s1 + $0x9d8] sm:$0xff]  ;;  %v2550_v45 = vpack.c.bf16 %v299_v36, %v298_v35  ;;  %v300_v48 = vld [vmem:[%s4242_s1 + $0x850] sm:$0xff] }
  0x90   :  { %2577 = vmatprep.subr.bf16.mxu1 %v2576_v26  ;;  %v2582_v46 = vpack.c.bf16 %v331_v38, %v330_v52  ;;  %v301_v49 = vld [vmem:[%s4242_s1 + $0x858] sm:$0xff]  ;;  %v332_v50 = vld [vmem:[%s4242_s1 + $0x950] sm:$0xff]  ;;  %v2584_v51 = vpack.c.bf16 %v349_v44, %v348_v42  ;;  %v318_v32 = vld [vmem:[%s4242_s1 + $0x8e0] sm:$0xff] }
  0x91   :  { %2547 = vmatpush3.bf16.msra.mxu0 %v2546_v33  ;;  %v333_v53 = vld [vmem:[%s4242_s1 + $0x958] sm:$0xff]  ;;  %v319_v55 = vld [vmem:[%s4242_s1 + $0x8e8] sm:$0xff]  ;;  %v350_v56 = vld [vmem:[%s4242_s1 + $0x9e0] sm:$0xff]  ;;  %v2554_v58 = vpack.c.bf16 %v301_v49, %v300_v48 }
  0x92   :  { %2549 = vmatprep.subr.bf16.mxu0 %v2548_v34  ;;  %v351_v41 = vld [vmem:[%s4242_s1 + $0x9e8] sm:$0xff]  ;;  %v2586_v59 = vpack.c.bf16 %v333_v53, %v332_v50  ;;  %v2556_v60 = vpack.c.bf16 %v319_v55, %v318_v32  ;;  %v302_v61 = vld [vmem:[%s4242_s1 + $0x860] sm:$0xff]  ;;  %v320_v2 = vld [vmem:[%s4242_s1 + $0x8f0] sm:$0xff] }
  0x93   :  { %2579 = vmatpush3.bf16.msra.mxu1 %v2578_v43  ;;  %v303_v62 = vld [vmem:[%s4242_s1 + $0x868] sm:$0xff]  ;;  %v334_v63 = vld [vmem:[%s4242_s1 + $0x960] sm:$0xff]  ;;  %v2588_v0 = vpack.c.bf16 %v351_v41, %v350_v56  ;;  %v321_v3 = vld [vmem:[%s4242_s1 + $0x8f8] sm:$0xff] }
  0x94   :  { %2581 = vmatprep.subr.bf16.mxu1 %v2580_v37  ;;  %v335_v1 = vld [vmem:[%s4242_s1 + $0x968] sm:$0xff]  ;;  %v352_v4 = vld [vmem:[%s4242_s1 + $0x9f0] sm:$0xff]  ;;  %v353_v5 = vld [vmem:[%s4242_s1 + $0x9f8] sm:$0xff]  ;;  %v2558_v6 = vpack.c.bf16 %v303_v62, %v302_v61  ;;  %v2560_v9 = vpack.c.bf16 %v321_v3, %v320_v2 }
  0x95   :  { %2551 = vmatpush3.bf16.msra.mxu0 %v2550_v45  ;;  %v32_v7 = vld [vmem:[%s4241_s0 + $0x28] sm:$0xff]  ;;  %v2590_v8 = vpack.c.bf16 %v335_v1, %v334_v63  ;;  %v304_v12 = vld [vmem:[%s4242_s1 + $0x870] sm:$0xff]  ;;  %v305_v11 = vld [vmem:[%s4242_s1 + $0x878] sm:$0xff]  ;;  %v2592_v14 = vpack.c.bf16 %v353_v5, %v352_v4 }
  0x96   :  { %2553 = vmatprep.subr.bf16.mxu0 %v2552_v47  ;;  %v336_v13 = vld [vmem:[%s4242_s1 + $0x970] sm:$0xff]  ;;  %v337_v15 = vld [vmem:[%s4242_s1 + $0x978] sm:$0xff]  ;;  %v370_v16 = vld [vmem:[%s4242_s1 + $0xa80] sm:$0xff]  ;;  %v533_v20 = vcombine.high %v32_v7, %v32_v7  ;;  %v2562_v21 = vpack.c.bf16 %v305_v11, %v304_v12  ;;  %v3871_v31 = vrot.slane %v32_v7, %v2956_v10 }
  0x97   :  { %2583 = vmatpush3.bf16.msra.mxu1 %v2582_v46  ;;  %v371_v17 = vld [vmem:[%s4242_s1 + $0xa88] sm:$0xff]  ;;  %v402_v18 = vld [vmem:[%s4242_s1 + $0xb80] sm:$0xff]  ;;  %v2594_v22 = vpack.c.bf16 %v337_v15, %v336_v13  ;;  %v372_v29 = vld [vmem:[%s4242_s1 + $0xa90] sm:$0xff] }
  0x98   :  { %2585 = vmatprep.subr.bf16.mxu1 %v2584_v51  ;;  %v403_v19 = vld [vmem:[%s4242_s1 + $0xb88] sm:$0xff]  ;;  %v2596_v23 = vpack.c.bf16 %v371_v17, %v370_v16  ;;  %v354_v24 = vld [vmem:[%s4242_s1 + $0xa00] sm:$0xff]  ;;  %v373_v30 = vld [vmem:[%s4242_s1 + $0xa98] sm:$0xff]  ;;  %v3880_v34 = vrot.slane %v533_v20, %v2956_v10  ;;  %v548_v45 = vcombine.high %v3871_v31, %v3871_v31 }
  0x99   :  { %2555 = vmatpush3.bf16.msra.mxu0 %v2554_v58  ;;  %v355_v25 = vld [vmem:[%s4242_s1 + $0xa08] sm:$0xff]  ;;  %v386_v26 = vld [vmem:[%s4242_s1 + $0xb00] sm:$0xff]  ;;  %v2628_v27 = vpack.c.bf16 %v403_v19, %v402_v18  ;;  %v404_v33 = vld [vmem:[%s4242_s1 + $0xb90] sm:$0xff]  ;;  %v2600_v52 = vpack.c.bf16 %v373_v30, %v372_v29 }
  0x9a   :  { %2557 = vmatprep.subr.bf16.mxu0 %v2556_v60  ;;  %v387_v28 = vld [vmem:[%s4242_s1 + $0xb08] sm:$0xff]  ;;  %v405_v43 = vld [vmem:[%s4242_s1 + $0xb98] sm:$0xff]  ;;  %v2598_v35 = vpack.c.bf16 %v355_v25, %v354_v24  ;;  %v356_v37 = vld [vmem:[%s4242_s1 + $0xa10] sm:$0xff]  ;;  %v549_v48 = vcombine.high %v3880_v34, %v3880_v34 }
  0x9b   :  { %2587 = vmatpush3.bf16.msra.mxu1 %v2586_v59  ;;  %v2630_v36 = vpack.c.bf16 %v387_v28, %v386_v26  ;;  %v357_v38 = vld [vmem:[%s4242_s1 + $0xa18] sm:$0xff]  ;;  %v388_v39 = vld [vmem:[%s4242_s1 + $0xb10] sm:$0xff]  ;;  %v2632_v10 = vpack.c.bf16 %v405_v43, %v404_v33  ;;  %v374_v42 = vld [vmem:[%s4242_s1 + $0xaa0] sm:$0xff] }
  0x9c   :  { %2589 = vmatprep.subr.bf16.mxu1 %v2588_v0  ;;  %v389_v40 = vld [vmem:[%s4242_s1 + $0xb18] sm:$0xff]  ;;  %v375_v44 = vld [vmem:[%s4242_s1 + $0xaa8] sm:$0xff]  ;;  %v406_v46 = vld [vmem:[%s4242_s1 + $0xba0] sm:$0xff]  ;;  %v2602_v49 = vpack.c.bf16 %v357_v38, %v356_v37 }
  0x9d   :  { %2559 = vmatpush3.bf16.msra.mxu0 %v2558_v6  ;;  %v407_v47 = vld [vmem:[%s4242_s1 + $0xba8] sm:$0xff]  ;;  %v2634_v50 = vpack.c.bf16 %v389_v40, %v388_v39  ;;  %v2604_v51 = vpack.c.bf16 %v375_v44, %v374_v42  ;;  %v390_v32 = vld [vmem:[%s4242_s1 + $0xb20] sm:$0xff]  ;;  %v376_v56 = vld [vmem:[%s4242_s1 + $0xab0] sm:$0xff] }
  0x9e   :  { %2561 = vmatprep.subr.bf16.mxu0 %v2560_v9  ;;  %v359_v53 = vld [vmem:[%s4242_s1 + $0xa28] sm:$0xff]  ;;  %v2636_v55 = vpack.c.bf16 %v407_v47, %v406_v46  ;;  %v377_v41 = vld [vmem:[%s4242_s1 + $0xab8] sm:$0xff]  ;;  %v408_v58 = vld [vmem:[%s4242_s1 + $0xbb0] sm:$0xff] }
  0x9f   :  { %2591 = vmatpush3.bf16.msra.mxu1 %v2590_v8  ;;  %v409_v59 = vld [vmem:[%s4242_s1 + $0xbb8] sm:$0xff]  ;;  %v2608_v62 = vpack.c.bf16 %v377_v41, %v376_v56  ;;  %v360_v63 = vld [vmem:[%s4242_s1 + $0xa30] sm:$0xff]  ;;  %v378_v4 = vld [vmem:[%s4242_s1 + $0xac0] sm:$0xff] }
  0xa0   :  { %2593 = vmatprep.subr.bf16.mxu1 %v2592_v14  ;;  %v361_v0 = vld [vmem:[%s4242_s1 + $0xa38] sm:$0xff]  ;;  %v392_v1 = vld [vmem:[%s4242_s1 + $0xb30] sm:$0xff]  ;;  %v2640_v2 = vpack.c.bf16 %v409_v59, %v408_v58  ;;  %v379_v5 = vld [vmem:[%s4242_s1 + $0xac8] sm:$0xff]  ;;  %v2768_v59 = vmov 0.0|0.0  }
  0xa1   :  { %2563 = vmatpush3.bf16.msra.mxu0 %v2562_v21  ;;  %v393_v3 = vld [vmem:[%s4242_s1 + $0xb38] sm:$0xff]  ;;  %v410_v6 = vld [vmem:[%s4242_s1 + $0xbc0] sm:$0xff]  ;;  %v411_v7 = vld [vmem:[%s4242_s1 + $0xbc8] sm:$0xff]  ;;  %v2610_v8 = vpack.c.bf16 %v361_v0, %v360_v63  ;;  %v2612_v12 = vpack.c.bf16 %v379_v5, %v378_v4 }
  0xa2   :  { %2597 = vmatprep.subr.bf16.mxu0 %v2596_v23  ;;  %v2642_v9 = vpack.c.bf16 %v393_v3, %v392_v1  ;;  %v362_v11 = vld [vmem:[%s4242_s1 + $0xa40] sm:$0xff]  ;;  %v363_v13 = vld [vmem:[%s4242_s1 + $0xa48] sm:$0xff]  ;;  %v2644_v15 = vpack.c.bf16 %v411_v7, %v410_v6  ;;  %v380_v17 = vld [vmem:[%s4242_s1 + $0xad0] sm:$0xff]  ;;  %v2770_v1 = vmov 0.0  }
  0xa3   :  { %2595 = vmatpush3.bf16.msra.mxu1 %v2594_v22  ;;  %v394_v14 = vld [vmem:[%s4242_s1 + $0xb40] sm:$0xff]  ;;  %v395_v16 = vld [vmem:[%s4242_s1 + $0xb48] sm:$0xff]  ;;  %v381_v18 = vld [vmem:[%s4242_s1 + $0xad8] sm:$0xff]  ;;  %v2614_v21 = vpack.c.bf16 %v363_v13, %v362_v11 }
  0xa4   :  { %2629 = vmatprep.subr.bf16.mxu1 %v2628_v27  ;;  %1207 = vmatmul.mubr.f32.vlgmr.msra.gmra.mrb[8].mxu0 %v3664_v54  ;;  %v358_v54 = vld [vmem:[%s4242_s1 + $0xa20] sm:$0xff]  ;;  %v412_v19 = vld [vmem:[%s4242_s1 + $0xbd0] sm:$0xff]  ;;  %v413_v20 = vld [vmem:[%s4242_s1 + $0xbd8] sm:$0xff]  ;;  %v2646_v22 = vpack.c.bf16 %v395_v16, %v394_v14  ;;  %v2616_v23 = vpack.c.bf16 %v381_v18, %v380_v17 }
  0xa5   :  { %2599 = vmatpush3.bf16.msra.mxu0 %v2598_v35  ;;  %1346 = vmatprep.mubr.f32.mxu0 %v548_v45  ;;  %v2606_v60 = vpack.c.bf16 %v359_v53, %v358_v54  ;;  %v364_v24 = vld [vmem:[%s4242_s1 + $0xa50] sm:$0xff]  ;;  %v365_v25 = vld [vmem:[%s4242_s1 + $0xa58] sm:$0xff]  ;;  %v2648_v27 = vpack.c.bf16 %v413_v20, %v412_v19  ;;  %v382_v29 = vld [vmem:[%s4242_s1 + $0xae0] sm:$0xff] }
  0xa6   :  { %1277 = vmatmul.mubr.f32.vlgmr.msra.gmra.mrb[8].mxu1 %v3673_v57  ;;  %2601 = vmatprep.subr.bf16.mxu0 %v2600_v52  ;;  %v391_v57 = vld [vmem:[%s4242_s1 + $0xb28] sm:$0xff]  ;;  %v396_v26 = vld [vmem:[%s4242_s1 + $0xb50] sm:$0xff]  ;;  %v397_v28 = vld [vmem:[%s4242_s1 + $0xb58] sm:$0xff]  ;;  %v2618_v35 = vpack.c.bf16 %v365_v25, %v364_v24 }
  0xa7   :  { %2631 = vmatpush3.bf16.msra.mxu1 %v2630_v36  ;;  %1416 = vmatprep.mubr.f32.mxu1 %v549_v48  ;;  %v2638_v61 = vpack.c.bf16 %v391_v57, %v390_v32  ;;  %v383_v30 = vld [vmem:[%s4242_s1 + $0xae8] sm:$0xff]  ;;  %v414_v33 = vld [vmem:[%s4242_s1 + $0xbe0] sm:$0xff]  ;;  %v2650_v36 = vpack.c.bf16 %v397_v28, %v396_v26  ;;  %v384_v42 = vld [vmem:[%s4242_s1 + $0xaf0] sm:$0xff] }
  0xa8   :  { %2633 = vmatprep.subr.bf16.mxu1 %v2632_v10  ;;  %v415_v43 = vld [vmem:[%s4242_s1 + $0xbe8] sm:$0xff]  ;;  %v2620_v52 = vpack.c.bf16 %v383_v30, %v382_v29  ;;  %v366_v37 = vld [vmem:[%s4242_s1 + $0xa60] sm:$0xff]  ;;  %v385_v44 = vld [vmem:[%s4242_s1 + $0xaf8] sm:$0xff] }
  0xa9   :  { %2603 = vmatpush3.bf16.msra.mxu0 %v2602_v49  ;;  %v367_v38 = vld [vmem:[%s4242_s1 + $0xa68] sm:$0xff]  ;;  %v398_v39 = vld [vmem:[%s4242_s1 + $0xb60] sm:$0xff]  ;;  %v2652_v10 = vpack.c.bf16 %v415_v43, %v414_v33  ;;  %v416_v45 = vld [vmem:[%s4242_s1 + $0xbf0] sm:$0xff]  ;;  %v2624_v49 = vpack.c.bf16 %v385_v44, %v384_v42 }
  0xaa   :  { %2605 = vmatprep.subr.bf16.mxu0 %v2604_v51  ;;  %v399_v40 = vld [vmem:[%s4242_s1 + $0xb68] sm:$0xff]  ;;  %v417_v46 = vld [vmem:[%s4242_s1 + $0xbf8] sm:$0xff]  ;;  %v2622_v47 = vpack.c.bf16 %v367_v38, %v366_v37  ;;  %v400_v53 = vld [vmem:[%s4242_s1 + $0xb70] sm:$0xff] }
  0xab   :  { %2635 = vmatpush3.bf16.msra.mxu1 %v2634_v50  ;;  %v2654_v48 = vpack.c.bf16 %v399_v40, %v398_v39  ;;  %v368_v50 = vld [vmem:[%s4242_s1 + $0xa70] sm:$0xff]  ;;  %v369_v51 = vld [vmem:[%s4242_s1 + $0xa78] sm:$0xff]  ;;  %v2656_v54 = vpack.c.bf16 %v417_v46, %v416_v45  ;;  %v418_v56 = vld [vmem:[%s4242_s1 + $0xc00] sm:$0xff] }
  0xac   :  { %2637 = vmatprep.subr.bf16.mxu1 %v2636_v55  ;;  %v401_v32 = vld [vmem:[%s4242_s1 + $0xb78] sm:$0xff]  ;;  %v2626_v55 = vpack.c.bf16 %v369_v51, %v368_v50  ;;  %v419_v41 = vld [vmem:[%s4242_s1 + $0xc08] sm:$0xff]  ;;  %v422_v63 = vld [vmem:[%s4242_s1 + $0xc20] sm:$0xff] }
  0xad   :  { %2607 = vmatpush3.bf16.msra.mxu0 %v2606_v60  ;;  %v2658_v57 = vpack.c.bf16 %v401_v32, %v400_v53  ;;  %v2661_v58 = vpack.c.bf16 %v419_v41, %v418_v56  ;;  %v420_v60 = vld [vmem:[%s4242_s1 + $0xc10] sm:$0xff]  ;;  %v423_v0 = vld [vmem:[%s4242_s1 + $0xc28] sm:$0xff]  ;;  %v426_v4 = vld [vmem:[%s4242_s1 + $0xc40] sm:$0xff] }
  0xae   :  { %2609 = vmatprep.subr.bf16.mxu0 %v2608_v62  ;;  %v427_v5 = vld [vmem:[%s4242_s1 + $0xc48] sm:$0xff]  ;;  %v428_v7 = vld [vmem:[%s4242_s1 + $0xc50] sm:$0xff]  ;;  %v1696_v19 = vld [vmem:[%s4243_s2] ss:$0 sm:$0xff] }
  0xaf   :  { %2639 = vmatpush3.bf16.msra.mxu1 %v2638_v61  ;;  %v421_v61 = vld [vmem:[%s4242_s1 + $0xc18] sm:$0xff]  ;;  %v2673_v6 = vpack.c.bf16 %v427_v5, %v426_v4  ;;  %v431_v11 = vld [vmem:[%s4242_s1 + $0xc68] sm:$0xff]  ;;  %v432_v14 = vld [vmem:[%s4242_s1 + $0xc70] sm:$0xff] }
  0xb0   :  { %2641 = vmatprep.subr.bf16.mxu1 %v2640_v2  ;;  %v2664_v62 = vpack.c.bf16 %v421_v61, %v420_v60  ;;  %v425_v2 = vld [vmem:[%s4242_s1 + $0xc38] sm:$0xff]  ;;  %v1697_v17 = vld.sshfl [vmem:[%s4241_s0 + $0x30] sm:$0x3 pattern:$0x76325410]  ;;  %v1497_v42 = vld [vmem:[%s4244_s3 + $0x20] sm:$0xff] }
  0xb1   :  { %2611 = vmatpush3.bf16.msra.mxu0 %v2610_v8  ;;  %v429_v8 = vld [vmem:[%s4242_s1 + $0xc58] sm:$0xff]  ;;  %v1495_v38 = vld [vmem:[%s4244_s3 + $0x10] sm:$0xff]  ;;  %v1498_v44 = vld [vmem:[%s4244_s3 + $0x28] sm:$0xff] }
  0xb2   :  { %2613 = vmatprep.subr.bf16.mxu0 %v2612_v12  ;;  %v430_v12 = vld [vmem:[%s4242_s1 + $0xc60] sm:$0xff]  ;;  %v1496_v39 = vld [vmem:[%s4244_s3 + $0x18] sm:$0xff]  ;;  %v2691_v45 = vpack.c.bf16 %v1498_v44, %v1497_v42  ;;  %v1499_v46 = vld [vmem:[%s4244_s3 + $0x30] sm:$0xff] }
  0xb3   :  { %2643 = vmatpush3.bf16.msra.mxu1 %v2642_v9  ;;  %v2676_v9 = vpack.c.bf16 %v429_v8, %v428_v7  ;;  %v2679_v13 = vpack.c.bf16 %v431_v11, %v430_v12  ;;  %v2688_v40 = vpack.c.bf16 %v1496_v39, %v1495_v38  ;;  %v1502_v50 = vld [vmem:[%s4244_s3 + $0x48] sm:$0xff]  ;;  %v1504_v53 = vld [vmem:[%s4244_s3 + $0x58] sm:$0xff]  ;;  %v1507_v41 = vld [vmem:[%s4244_s3 + $0x70] sm:$0xff] }
  0xb4   :  { %2645 = vmatprep.subr.bf16.mxu1 %v2644_v15  ;;  %v433_v15 = vld [vmem:[%s4242_s1 + $0xc78] sm:$0xff]  ;;  %v1589_v4 = vld [vmem:[%s4246_s5 + $0x10] sm:$0xff]  ;;  %v1592_v12 = vld [vmem:[%s4246_s5 + $0x28] sm:$0xff] }
  0xb5   :  { %2615 = vmatpush3.bf16.msra.mxu0 %v2614_v21  ;;  %v2682_v16 = vpack.c.bf16 %v433_v15, %v432_v14  ;;  %v1590_v7 = vld [vmem:[%s4246_s5 + $0x18] sm:$0xff] }
  0xb6   :  { %2617 = vmatprep.subr.bf16.mxu0 %v2616_v23  ;;  %v2712_v8 = vpack.c.bf16 %v1590_v7, %v1589_v4  ;;  %v1594_v14 = vld [vmem:[%s4246_s5 + $0x38] sm:$0xff] }
  0xb7   :  { %2647 = vmatpush3.bf16.msra.mxu1 %v2646_v22 }
  0xb8   :  { %2649 = vmatprep.subr.bf16.mxu1 %v2648_v27 }
  0xb9   :  { %2619 = vmatpush3.bf16.msra.mxu0 %v2618_v35  ;;  %v1493_v35 = vld [vmem:[%s4244_s3] sm:$0xff] }
  0xba   :  { %2621 = vmatprep.subr.bf16.mxu0 %v2620_v52 }
  0xbb   :  { %2651 = vmatpush3.bf16.msra.mxu1 %v2650_v36  ;;  %v1494_v36 = vld [vmem:[%s4244_s3 + $0x8] sm:$0xff] }
  0xbc   :  { %2653 = vmatprep.subr.bf16.mxu1 %v2652_v10  ;;  %v2685_v37 = vpack.c.bf16 %v1494_v36, %v1493_v35 }
  0xbd   :  { %2623 = vmatpush3.bf16.msra.mxu0 %v2622_v47  ;;  %v1500_v47 = vld [vmem:[%s4244_s3 + $0x38] sm:$0xff] }
  0xbe   :  { %2625 = vmatprep.subr.bf16.mxu0 %v2624_v49  ;;  %v1501_v49 = vld [vmem:[%s4244_s3 + $0x40] sm:$0xff] }
  0xbf   :  { %2655 = vmatpush3.bf16.msra.mxu1 %v2654_v48  ;;  %v2694_v48 = vpack.c.bf16 %v1500_v47, %v1499_v46  ;;  %v2697_v51 = vpack.c.bf16 %v1502_v50, %v1501_v49 }
  0xc0   :  { %2657 = vmatprep.subr.bf16.mxu1 %v2656_v54  ;;  %v1503_v54 = vld [vmem:[%s4244_s3 + $0x50] sm:$0xff] }
  0xc1   :  { %2627 = vmatpush3.bf16.msra.mxu0 %v2626_v55  ;;  %v2700_v32 = vpack.c.bf16 %v1504_v53, %v1503_v54  ;;  %v1505_v55 = vld [vmem:[%s4244_s3 + $0x60] sm:$0xff] }
  0xc2   :  { %2660 = vmatprep.subr.bf16.mxu0 %v2768_v59 }
  0xc3   :  { %2659 = vmatpush3.bf16.msra.mxu1 %v2658_v57  ;;  %v1506_v57 = vld [vmem:[%s4244_s3 + $0x68] sm:$0xff] }
  0xc4   :  { %2684 = vmatprep.subr.bf16.mxu1 %v2768_v59  ;;  %1347 = vmatmul.mubr.f32.vlgmr.msra.gmra.mrb[10].mxu0 %v3871_v31  ;;  %v2667_v31 = vpack.c.bf16 %v423_v0, %v422_v63  ;;  %v2703_v56 = vpack.c.bf16 %v1506_v57, %v1505_v55  ;;  %v1602_v55 = vld [vmem:[%s4246_s5 + $0x78] sm:$0xff] }
  0xc5   :  { %2662 = vmatpush3.bf16.msra.mxu0 %v2661_v58  ;;  %2203 = vmatprep.mubr.msk.f32.mxu0 %vm2769_vm0, %v2770_v1  ;;  %v1508_v58 = vld [vmem:[%s4244_s3 + $0x78] sm:$0xff] }
  0xc6   :  { %1417 = vmatmul.mubr.f32.vlgmr.msra.gmra.mrb[10].mxu1 %v3880_v34  ;;  %2663 = vmatprep.subr.bf16.mxu0 %v2768_v59  ;;  %v424_v34 = vld [vmem:[%s4242_s1 + $0xc30] sm:$0xff]  ;;  %v2706_v61 = vpack.c.bf16 %v1508_v58, %v1507_v41 }
  0xc7   :  { %2238 = vmatprep.mubr.msk.f32.mxu1 %vm2769_vm0, %v2770_v1  ;;  %v2670_v3 = vpack.c.bf16 %v425_v2, %v424_v34  ;;  %2686 = vmatpush3.bf16.msra.mxu1 %v2685_v37  ;;  %v1587_v2 = vld [vmem:[%s4246_s5] sm:$0xff] }
  0xc8   :  { %2687 = vmatprep.subr.bf16.mxu1 %v2768_v59 }
  0xc9   :  { %2665 = vmatpush3.bf16.msra.mxu0 %v2664_v62 }
  0xca   :  { %2666 = vmatprep.subr.bf16.mxu0 %v2768_v59 }
  0xcb   :  { %2689 = vmatpush3.bf16.msra.mxu1 %v2688_v40 }
  0xcc   :  { %2690 = vmatprep.subr.bf16.mxu1 %v2768_v59 }
  0xcd   :  { %2668 = vmatpush3.bf16.msra.mxu0 %v2667_v31 }
  0xce   :  { %2669 = vmatprep.subr.bf16.mxu0 %v2768_v59 }
  0xcf   :  { %2692 = vmatpush3.bf16.msra.mxu1 %v2691_v45 }
  0xd0   :  { %2693 = vmatprep.subr.bf16.mxu1 %v2768_v59 }
  0xd1   :  { %2671 = vmatpush3.bf16.msra.mxu0 %v2670_v3  ;;  %v1588_v3 = vld [vmem:[%s4246_s5 + $0x8] sm:$0xff] }
  0xd2   :  { %2672 = vmatprep.subr.bf16.mxu0 %v2768_v59 }
  0xd3   :  { %2695 = vmatpush3.bf16.msra.mxu1 %v2694_v48 }
  0xd4   :  { %2696 = vmatprep.subr.bf16.mxu1 %v2768_v59 }
  0xd5   :  { %2674 = vmatpush3.bf16.msra.mxu0 %v2673_v6  ;;  %v2709_v6 = vpack.c.bf16 %v1588_v3, %v1587_v2 }
  0xd6   :  { %2675 = vmatprep.subr.bf16.mxu0 %v2768_v59 }
  0xd7   :  { %2698 = vmatpush3.bf16.msra.mxu1 %v2697_v51 }
  0xd8   :  { %2699 = vmatprep.subr.bf16.mxu1 %v2768_v59 }
  0xd9   :  { %2677 = vmatpush3.bf16.msra.mxu0 %v2676_v9  ;;  %v1591_v9 = vld [vmem:[%s4246_s5 + $0x20] sm:$0xff] }
  0xda   :  { %2678 = vmatprep.subr.bf16.mxu0 %v2768_v59  ;;  %v2715_v11 = vpack.c.bf16 %v1592_v12, %v1591_v9 }
  0xdb   :  { %2701 = vmatpush3.bf16.msra.mxu1 %v2700_v32  ;;  %v1601_v32 = vld [vmem:[%s4246_s5 + $0x70] sm:$0xff] }
  0xdc   :  { %2702 = vmatprep.subr.bf16.mxu1 %v2768_v59  ;;  %v2730_v57 = vpack.c.bf16 %v1602_v55, %v1601_v32 }
  0xdd   :  { %2680 = vmatpush3.bf16.msra.mxu0 %v2679_v13  ;;  %v1593_v13 = vld [vmem:[%s4246_s5 + $0x30] sm:$0xff] }
  0xde   :  { %2681 = vmatprep.subr.bf16.mxu0 %v2768_v59  ;;  %v2718_v15 = vpack.c.bf16 %v1594_v14, %v1593_v13 }
  0xdf   :  { %2704 = vmatpush3.bf16.msra.mxu1 %v2703_v56  ;;  %v1698_v56 = vld [vmem:[%s4245_s4] ss:$0 sm:$0xff] }
  0xe0   :  { %2705 = vmatprep.subr.bf16.mxu1 %v2768_v59 }
  0xe1   :  { %2683 = vmatpush3.bf16.msra.mxu0 %v2682_v16  ;;  %v1595_v16 = vld [vmem:[%s4246_s5 + $0x40] sm:$0xff] }
  0xe2   :  { %2708 = vmatprep.subr.bf16.mxu0 %v2768_v59 }
  0xe3   :  { %2707 = vmatpush3.bf16.msra.mxu1 %v2706_v61 }
  0xe4   :  { %2204 = vmatmul.mubr.f32.vlgmr.msra.gmra.mrb[12].mxu0 %v1697_v17  ;;  %v1596_v17 = vld [vmem:[%s4246_s5 + $0x48] sm:$0xff] }
  0xe5   :  { %2273 = vmatprep.mubr.msk.f32.mxu0 %vm2769_vm0, %v2770_v1  ;;  %2710 = vmatpush3.bf16.msra.mxu0 %v2709_v6 }
  0xe6   :  { %2711 = vmatprep.subr.bf16.mxu0 %v2768_v59 }
  0xe9   :  { %2713 = vmatpush3.bf16.msra.mxu0 %v2712_v8 }
  0xea   :  { %2714 = vmatprep.subr.bf16.mxu0 %v2768_v59 }
  0xed   :  { %2716 = vmatpush3.bf16.msra.mxu0 %v2715_v11 }
  0xee   :  { %2717 = vmatprep.subr.bf16.mxu0 %v2768_v59 }
  0xf1   :  { %2719 = vmatpush3.bf16.msra.mxu0 %v2718_v15 }
  0xf2   :  { %2720 = vmatprep.subr.bf16.mxu0 %v2768_v59 }
  0xf7   :  { %v1732_v18 = vpop.f32.mrb[0].mxu0 }
  0xf8   :  { %v1733_v20 = vpop.f32.mrb[1].mxu0 }
  0xf9   :  { %v1767_v21 = vpop.f32.mrb[0].mxu1  ;;  %v1734_v22 = vadd.f32 %v1733_v20, %v1732_v18  ;;  %v2721_v18 = vpack.c.bf16 %v1596_v17, %v1595_v16  ;;  %v1598_v20 = vld [vmem:[%s4246_s5 + $0x58] sm:$0xff] }
  0xfa   :  { %v1768_v23 = vpop.f32.mrb[1].mxu1 }
  0xfb   :  { %v1769_v24 = vadd.f32 %v1768_v23, %v1767_v21  ;;  %v649_v25 = vadd.f32 %v1734_v22, %v1696_v19  ;;  %v1597_v19 = vld [vmem:[%s4246_s5 + $0x50] sm:$0xff]  ;;  %2722 = vmatpush3.bf16.msra.mxu0 %v2721_v18  ;;  %v1599_v22 = vld [vmem:[%s4246_s5 + $0x60] sm:$0xff]  ;;  %v1600_v23 = vld [vmem:[%s4246_s5 + $0x68] sm:$0xff]  ;;  %s2743_s5 = scalar_lea.vmem %s1689_s24, 32 }
  0xfc   :  { %v2724_v21 = vpack.c.bf16 %v1598_v20, %v1597_v19  ;;  %2723 = vmatprep.subr.bf16.mxu0 %v2768_v59  ;;  %p2744_p0 = scmp.ne.s32.totalorder %s1689_s24, %s2743_s5  ;;  %p2749_p2 = scmp.lt.s32.totalorder %s2743_s5, %s2743_s5 }
  0xfd   :  { %v719_v26 = vadd.f32 %v1769_v24, %v649_v25  ;;  %v2727_v24 = vpack.c.bf16 %v1600_v23, %v1599_v22 }
  0xfe   :  { %p2750_p3 = por %p2749_p2, %p2748_p1 }
  0xff   :  { %2725 = vmatpush3.bf16.msra.mxu0 %v2724_v21 }
 0x100   :  { %2726 = vmatprep.subr.bf16.mxu0 %v2768_v59  ;;  %p2751_p4 = pnand %p2750_p3, %p2744_p0 }
 0x103   :  { %2728 = vmatpush3.bf16.msra.mxu0 %v2727_v24 }
 0x104   :  { %2729 = vmatprep.subr.bf16.mxu0 %v2768_v59 }
 0x107   :  { %2731 = vmatpush3.bf16.msra.mxu0 %v2730_v57 }
 0x117   :  { %v1802_v27 = vpop.f32.mrb[2].mxu0 }
 0x118   :  { %v1803_v28 = vpop.f32.mrb[3].mxu0 }
 0x119   :  { %v1837_v29 = vpop.f32.mrb[2].mxu1  ;;  %v1804_v30 = vadd.f32 %v1803_v28, %v1802_v27 }
 0x11a   :  { %v1838_v33 = vpop.f32.mrb[3].mxu1 }
 0x11b   :  { %v1839_v43 = vadd.f32 %v1838_v33, %v1837_v29  ;;  %v789_v52 = vadd.f32 %v1804_v30, %v719_v26 }
 0x11d   :  { %v859_v10 = vadd.f32 %v1839_v43, %v789_v52 }
 0x137   :  { %v1872_v60 = vpop.f32.mrb[4].mxu0 }
 0x138   :  { %v1873_v62 = vpop.f32.mrb[5].mxu0 }
 0x139   :  { %v1907_v63 = vpop.f32.mrb[4].mxu1  ;;  %v1874_v0 = vadd.f32 %v1873_v62, %v1872_v60  ;;  %v1699_v62 = vld [vmem:[%s4247_s6] ss:$0 sm:$0xff] }
 0x13a   :  { %v1908_v1 = vpop.f32.mrb[5].mxu1 }
 0x13b   :  { %v1909_v31 = vadd.f32 %v1908_v1, %v1907_v63  ;;  %v929_v34 = vadd.f32 %v1874_v0, %v859_v10 }
 0x13d   :  { %v999_v5 = vadd.f32 %v1909_v31, %v929_v34 }
 0x157   :  { %v1942_v25 = vpop.f32.mrb[6].mxu0 }
 0x158   :  { %v1943_v26 = vpop.f32.mrb[7].mxu0 }
 0x159   :  { %v1977_v27 = vpop.f32.mrb[6].mxu1  ;;  %v1944_v28 = vadd.f32 %v1943_v26, %v1942_v25 }
 0x15a   :  { %v1978_v29 = vpop.f32.mrb[7].mxu1 }
 0x15b   :  { %v1979_v30 = vadd.f32 %v1978_v29, %v1977_v27  ;;  %v1069_v33 = vadd.f32 %v1944_v28, %v999_v5 }
 0x15d   :  { %v1139_v43 = vadd.f32 %v1979_v30, %v1069_v33 }
 0x177   :  { %v2012_v35 = vpop.f32.mrb[8].mxu0 }
 0x178   :  { %v2013_v36 = vpop.f32.mrb[9].mxu0 }
 0x179   :  { %v2047_v52 = vpop.f32.mrb[8].mxu1  ;;  %v2014_v37 = vadd.f32 %v2013_v36, %v2012_v35 }
 0x17a   :  { %v2048_v38 = vpop.f32.mrb[9].mxu1 }
 0x17b   :  { %v2049_v39 = vadd.f32 %v2048_v38, %v2047_v52  ;;  %v1209_v10 = vadd.f32 %v2014_v37, %v1139_v43 }
 0x17d   :  { %v1279_v40 = vadd.f32 %v2049_v39, %v1209_v10 }
 0x197   :  { %v2082_v42 = vpop.f32.mrb[10].mxu0 }
 0x198   :  { %v2083_v44 = vpop.f32.mrb[11].mxu0 }
 0x199   :  { %v2117_v45 = vpop.f32.mrb[10].mxu1  ;;  %v2084_v46 = vadd.f32 %v2083_v44, %v2082_v42 }
 0x19a   :  { %v2118_v47 = vpop.f32.mrb[11].mxu1 }
 0x19b   :  { %v2119_v48 = vadd.f32 %v2118_v47, %v2117_v45  ;;  %v1349_v59 = vadd.f32 %v2084_v46, %v1279_v40 }
 0x19d   :  { %v1419_v49 = vadd.f32 %v2119_v48, %v1349_v59 }
 0x1b7   :  { %v1488_v50 = vpop.f32.mrb[12].mxu0 }
 0x1b8   :  { %v1489_v51 = vadd.f32 %v1488_v50, %v1419_v49  ;;  %v2205_v54 = vpop.f32.mrb[13].mxu0 }
 0x1ba   :  { %v1492_v53 = vmax.f32 %v1489_v51, 0.0 }
 0x1bc   :  { %2239 = vmatmul.mubr.f32.vlgmr.msra.gmra.mrb[12].mxu1 %v1492_v53 }
 0x28f   :  { %v1582_v41 = vpop.f32.mrb[12].mxu1 }
 0x290   :  { %v1583_v58 = vadd.f32 %v1698_v56, %v1582_v41  ;;  %v2240_v60 = vpop.f32.mrb[13].mxu1 }
 0x292   :  { %v1586_v61 = vmax.f32 %v1583_v58, 0.0 }
 0x294   :  { %2274 = vmatmul.mubr.f32.vlgmr.msra.gmra.mrb[14].mxu0 %v1586_v61 }
 0x367   :  { %v1676_v63 = vpop.f32.mrb[14].mxu0 }
 0x368   :  { %v1677_v0 = vadd.f32 %v1699_v62, %v1676_v63  ;;  %v2275_v1 = vpop.f32.mrb[15].mxu0 }
 0x36a   :  { %1681 = vst.msk [vmem:[#allocation2] sm:$0x3] %vm1680_vm1, %v1677_v0 }
 0x36b   :  { %2754 = shalt.err (!%p2751_p4)
}
 0x36c   :  { %s2755_s26 = scalar_lea.hbm %s4248_s7, 32 }
 0x36d   :  { %p2756_p5 = scmp.ne.s32.totalorder %s4248_s7, %s2755_s26  ;;  %p2759_p6 = scmp.lt.u32.totalorder %s2755_s26, %s4248_s7 }
 0x36f   :  { %p2761_p7 = pnand %p2759_p6, %p2756_p5 }
 0x371   :  { %2764 = shalt.err (!%p2761_p7)
}
 0x372   :  { %1691 = dma.vmem_to_hbm [thread:$0]  %s1689_s24, 32, %s4248_s7, [#allocation3]  }
 0x373   :  { %2765 = dma.done.wait [#allocation3], 32  }
 0x374   :  { %2766 = vsyncadd [#allocation3], 4294967264 }
 0x375   :  { %1695 = vsyncpa [#allocation3], 1 }

</bundles_post_ra>
